<compile_context>
chip_gen: v7x
topology: tpu7x:2x2x1
jax: 0.10.0
libtpu: 0.0.40
codegen_flags: <defaults>
</compile_context>

<pallas_src>
import functools

import jax
import jax.numpy as jnp
import numpy as np
from jax import lax
from jax.experimental import pallas as pl
from jax.experimental.pallas import tpu as pltpu

_NEG_PAD = -1.0e6  # transition score to/from padded label lanes (never on the best path)


def _token_cls_kernel(mask_ref, x_ref, scopes_ref, w_ref, b_ref, trans_ref, tstop_ref,
                      path_ref, crf_ref, h_ref, bp_ref, *, Bb, S, T, L2, L2P):
    """Per-grid-step kernel over Bb batch items.

    mask_ref   : SMEM (Bpad, T) i32      -- crf_mask (scalar prefetch, 1 = valid scope)
    x_ref      : VMEM (Bb*S, H) f32      -- encoder hidden states, Bb items stacked on rows
    scopes_ref : VMEM (Bb, T, 2) i32     -- (start, end) token spans, (0,0) = padding
    w_ref      : VMEM (H, L2P) f32       -- to_crf weight, label axis padded to 128
    b_ref      : VMEM (1, L2P) f32       -- to_crf bias (padded lanes = 0)
    trans_ref  : VMEM (L2P, L2P) f32     -- CRF transitions trans[from, to] (pad = -1e6)
    tstop_ref  : VMEM (1, L2P) f32       -- trans[:, STOP] as a lane-dense row
    path_ref   : VMEM (Bb, 1, T) i32     -- best Viterbi paths (output)
    crf_ref    : VMEM (Bb, T, L2P) f32   -- crf_input / emission scores (output, lane-dense)
    h_ref      : VMEM (Bb*S, L2P) f32    -- scratch: projected hidden states
    bp_ref     : VMEM (T, L2P) f32       -- scratch: backpointers (reused per item)
    """
    g = pl.program_id(0)
    START = L2 - 2

    # ---------------- to_crf projection for all Bb items at once (MXU) ----------------
    h_ref[...] = (jnp.dot(x_ref[...], w_ref[...], preferred_element_type=jnp.float32)
                  + b_ref[...])

    trans = trans_ref[...]                                        # (L2P, L2P)
    tstop = tstop_ref[...]                                        # (1, L2P)

    # constants hoisted out of all loops
    row_i = lax.broadcasted_iota(jnp.int32, (L2P, L2P), 0)
    col_i = lax.broadcasted_iota(jnp.int32, (L2P, L2P), 1)
    eye = (row_i == col_i).astype(jnp.float32)                    # identity for row->col move
    row_f = row_i.astype(jnp.float32)
    lane_f = lax.broadcasted_iota(jnp.int32, (1, L2P), 1).astype(jnp.float32)
    col_s = lax.broadcasted_iota(jnp.int32, (T, S), 1)
    col_t = lax.broadcasted_iota(jnp.int32, (1, T), 1)
    BIG = jnp.float32(L2P)

    for i in range(Bb):
        b_idx = g * Bb + i                                        # global batch index (SMEM reads)

        # ------------- scope mean pooling: (T,S) segment mask @ (S,L2P) -------------
        scp = scopes_ref[i]                                       # (T, 2) i32
        starts = scp[:, 0:1]                                      # (T, 1)
        ends = scp[:, 1:2]                                        # (T, 1)
        seg = jnp.logical_and(col_s >= starts, col_s < ends).astype(jnp.float32)   # (T, S)
        h = h_ref[i * S:(i + 1) * S, :]                           # (S, L2P)
        pooled = jnp.dot(seg, h, preferred_element_type=jnp.float32)               # (T, L2P)
        cnt = jnp.maximum((ends - starts).astype(jnp.float32), 1.0)                # (T, 1)
        crf2d = pooled / cnt                                      # padded scopes -> zero rows
        crf_ref[i] = crf2d                                        # lane-dense store

        # ------------- Viterbi forward (max-plus DP, vectorized over labels) -------------
        delta = trans_ref[pl.ds(START, 1), :] + crf2d[0:1, :]     # (1, L2P)
        for t in range(1, T):
            valid = mask_ref[b_idx, t] != 0
            # column-broadcast of delta via identity matmul: d_col[i,j] = delta[i]
            d_rep = jnp.broadcast_to(delta, (L2P, L2P))           # [k, j] = delta[j]
            d_col = lax.dot_general(eye, d_rep, (((1,), (1,)), ((), ())),
                                    preferred_element_type=jnp.float32)
            scores = d_col + trans                                # [from, to]
            best = jnp.max(scores, axis=0, keepdims=True)         # (1, L2P)
            bp_row = jnp.min(jnp.where(scores == best, row_f, BIG),
                             axis=0, keepdims=True)               # first-max tie-break
            new_delta = best + crf2d[t:t + 1, :]
            delta = jnp.where(valid, new_delta, delta)            # masked steps: carry
            bp_ref[t:t + 1, :] = bp_row

        # ------------- termination + backtrack -------------
        final = delta + tstop                                     # + trans[:, STOP]
        fmax = jnp.max(final, axis=1, keepdims=True)              # (1, 1)
        cur = jnp.min(jnp.where(final == fmax, lane_f, BIG), axis=1, keepdims=True)

        out_row = jnp.zeros((1, T), jnp.float32)
        for t in range(T - 1, -1, -1):
            valid = mask_ref[b_idx, t] != 0
            out_row = jnp.where(col_t == t, jnp.where(valid, cur, 0.0), out_row)
            if t > 0:
                bp_row = bp_ref[t:t + 1, :]                       # (1, L2P)
                prev = jnp.sum(jnp.where(lane_f == cur, bp_row, 0.0),
                               axis=1, keepdims=True)             # bp[t][cur]
                cur = jnp.where(valid, prev, cur)
        path_ref[i] = out_row.astype(jnp.int32)


def token_classification_forward(x, w, b, trans, scopes, crf_mask, *, block_b=8):
    """x: (B,S,H) f32; w: (H,L2); b: (1,L2); trans: (L2,L2); scopes: (B,T,2) i32;
    crf_mask: (B,T).  Returns (best_path (B,T) i32, crf_input (B,T,L2) f32)."""
    B, S, H = x.shape
    L2 = w.shape[1]
    T = crf_mask.shape[1]
    STOP = L2 - 1

    # ---- pad label axis to a lane-dense multiple of 128 ----
    L2P = ((L2 + 127) // 128) * 128
    padL = L2P - L2
    w_p = jnp.pad(w.astype(jnp.float32), ((0, 0), (0, padL)))
    b_p = jnp.pad(b.astype(jnp.float32), ((0, 0), (0, padL)))
    trans_p = jnp.pad(trans.astype(jnp.float32), ((0, padL), (0, padL)),
                      constant_values=_NEG_PAD)
    tstop = trans_p[:, STOP].reshape(1, L2P)

    # ---- block several batch items per grid step ----
    Bb = max(1, min(block_b, B))
    Bpad = ((B + Bb - 1) // Bb) * Bb
    padB = Bpad - B
    x_p = jnp.pad(x.astype(jnp.float32), ((0, padB), (0, 0), (0, 0)))
    scopes_p = jnp.pad(scopes.astype(jnp.int32), ((0, padB), (0, 0), (0, 0)))
    mask_p = jnp.pad(crf_mask.astype(jnp.int32), ((0, padB), (0, 0)))
    x2 = x_p.reshape(Bpad * S, H)                     # items stacked on rows (MXU-friendly M)

    kernel = functools.partial(_token_cls_kernel, Bb=Bb, S=S, T=T, L2=L2, L2P=L2P)
    grid_spec = pltpu.PrefetchScalarGridSpec(
        num_scalar_prefetch=1,
        grid=(Bpad // Bb,),
        in_specs=[
            pl.BlockSpec((Bb * S, H), lambda g, *_: (g, 0)),
            pl.BlockSpec((Bb, T, 2), lambda g, *_: (g, 0, 0)),
            pl.BlockSpec((H, L2P), lambda g, *_: (0, 0)),
            pl.BlockSpec((1, L2P), lambda g, *_: (0, 0)),
            pl.BlockSpec((L2P, L2P), lambda g, *_: (0, 0)),
            pl.BlockSpec((1, L2P), lambda g, *_: (0, 0)),
        ],
        out_specs=[
            pl.BlockSpec((Bb, 1, T), lambda g, *_: (g, 0, 0)),
            pl.BlockSpec((Bb, T, L2P), lambda g, *_: (g, 0, 0)),
        ],
        scratch_shapes=[
            pltpu.VMEM((Bb * S, L2P), jnp.float32),   # projected hidden states
            pltpu.VMEM((T, L2P), jnp.float32),        # backpointers (reused per item)
        ],
    )
    path3, crf_p = pl.pallas_call(
        kernel,
        grid_spec=grid_spec,
        out_shape=(jax.ShapeDtypeStruct((Bpad, 1, T), jnp.int32),
                   jax.ShapeDtypeStruct((Bpad, T, L2P), jnp.float32)),
        compiler_params=pltpu.CompilerParams(dimension_semantics=("parallel",)),
    )(mask_p, x2, scopes_p, w_p, b_p, trans_p, tstop)
    return path3[:B, 0, :], crf_p[:B, :, :L2]


def reference_forward(x, w, b, trans, scopes, crf_mask):
    """Pure numpy reference mirroring get_crf_input + masked Viterbi decode."""
    x = np.asarray(x); w = np.asarray(w); b = np.asarray(b); trans = np.asarray(trans)
    scopes = np.asarray(scopes); mask = np.asarray(crf_mask)
    B, S, H = x.shape; L2 = w.shape[1]; T = mask.shape[1]
    h = x @ w + b
    crf = np.zeros((B, T, L2), np.float32)
    for bi in range(B):
        for t in range(T):
            s0, s1 = scopes[bi, t]
            if s1 > s0:
                crf[bi, t] = h[bi, s0:s1].mean(axis=0)
    START, STOP = L2 - 2, L2 - 1
    paths = np.zeros((B, T), np.int32)
    for bi in range(B):
        delta = trans[START, :] + crf[bi, 0]
        bps = np.zeros((T, L2), np.int32)
        for t in range(1, T):
            if mask[bi, t]:
                m = delta[:, None] + trans
                bps[t] = np.argmax(m, axis=0)
                delta = m.max(axis=0) + crf[bi, t]
        cur = int(np.argmax(delta + trans[:, STOP]))
        for t in reversed(range(T)):
            if mask[bi, t]:
                paths[bi, t] = cur
                cur = int(bps[t, cur])
            else:
                paths[bi, t] = 0
    return paths, crf


if __name__ == "__main__":
    key = jax.random.PRNGKey(0)
    B, S, H = 2, 16, 32          # batch, seq_len, hidden (32 stands in for BERT's 768)
    L = 6                        # data.label_alphabet.size()
    L2 = L + 2                   # to_crf output dim = label_alphabet.size() + 2
    T = 4                        # max number of scopes per sentence
    vocab = 50

    k_emb, k_w, k_b, k_tr, k_ids = jax.random.split(key, 5)
    emb = jax.random.normal(k_emb, (vocab, H), jnp.float32) * 0.5
    w = jax.random.normal(k_w, (H, L2), jnp.float32) * 0.1
    bias = jax.random.normal(k_b, (1, L2), jnp.float32) * 0.1
    trans = jax.random.normal(k_tr, (L2, L2), jnp.float32) * 0.1
    START, STOP = L2 - 2, L2 - 1
    trans = trans.at[:, START].set(-10000.0)     # never transition TO START (NCRF++ style)
    trans = trans.at[STOP, :].set(-10000.0)      # never transition FROM STOP

    input_ids = jax.random.randint(k_ids, (B, S), 0, vocab)
    attention_mask = jnp.ones((B, S), jnp.int32)

    # TODO(synk): the pretrained BERT encoder (BertModel.from_pretrained) cannot be
    # reproduced in-script; a deterministic embedding lookup stands in for
    # pretrain_model(input_ids, attention_mask)[0].  nn.Dropout is unused in this path.
    x = emb[input_ids] * attention_mask[..., None].astype(jnp.float32)   # (B, S, H)

    # scopes: per-sentence list of (start, end) sub-token spans; (0,0) = padding.
    scopes = jnp.array([[[1, 3], [3, 5], [5, 9], [9, 12]],
                        [[1, 2], [2, 6], [6, 10], [0, 0]]], jnp.int32)   # (B, T, 2)
    crf_mask = jnp.array([[1, 1, 1, 1],
                          [1, 1, 1, 0]], jnp.int32)                      # (B, T)

    best_path, crf_input = token_classification_forward(x, w, bias, trans, scopes, crf_mask)
    best_path = jax.block_until_ready(best_path)
    crf_input = jax.block_until_ready(crf_input)

    ref_path, ref_crf = reference_forward(x, w, bias, trans, scopes, crf_mask)
    assert np.allclose(np.asarray(crf_input), ref_crf, atol=1e-4), "crf_input mismatch"
    assert np.array_equal(np.asarray(best_path), ref_path), "viterbi path mismatch"
    print("KERNEL_OK")
</pallas_src>

<mosaic_0001>
module attributes {stable_mosaic.version = 11 : i64} {
  func.func @_token_cls_kernel(%arg0: i32, %arg1: memref<2x4xi32, #tpu.memory_space<smem>>, %arg2: memref<32x32xf32, #tpu.memory_space<vmem>>, %arg3: memref<2x4x2xi32, #tpu.memory_space<vmem>>, %arg4: memref<32x128xf32, #tpu.memory_space<vmem>>, %arg5: memref<1x128xf32, #tpu.memory_space<vmem>>, %arg6: memref<128x128xf32, #tpu.memory_space<vmem>>, %arg7: memref<1x128xf32, #tpu.memory_space<vmem>>, %arg8: memref<2x1x4xi32, #tpu.memory_space<vmem>>, %arg9: memref<2x4x128xf32, #tpu.memory_space<vmem>>, %arg10: memref<32x128xf32, #tpu.memory_space<vmem>>, %arg11: memref<4x128xf32, #tpu.memory_space<vmem>>) attributes {dimension_semantics = [#tpu.dimension_semantics<parallel>], iteration_bounds = array<i64: 1>, scalar_prefetch = 1 : i64, scratch_operands = 2 : i64, tpu.core_type = #tpu.core_type<tc>, window_params = [{transform_indices = @transform_0, window_bounds = array<i64: 32, 32>}, {transform_indices = @transform_1, window_bounds = array<i64: 2, 4, 2>}, {pipeline_mode = #tpu.pipeline_mode<synchronous>, transform_indices = @transform_2, window_bounds = array<i64: 32, 128>}, {pipeline_mode = #tpu.pipeline_mode<synchronous>, transform_indices = @transform_3, window_bounds = array<i64: 1, 128>}, {pipeline_mode = #tpu.pipeline_mode<synchronous>, transform_indices = @transform_4, window_bounds = array<i64: 128, 128>}, {pipeline_mode = #tpu.pipeline_mode<synchronous>, transform_indices = @transform_5, window_bounds = array<i64: 1, 128>}, {transform_indices = @transform_6, window_bounds = array<i64: 2, 1, 4>}, {transform_indices = @transform_7, window_bounds = array<i64: 2, 4, 128>}]} {
    %c0 = arith.constant 0 : index
    %c0_0 = arith.constant 0 : index
    %0 = vector.load %arg2[%c0, %c0_0] : memref<32x32xf32, #tpu.memory_space<vmem>>, vector<32x32xf32>
    %c0_1 = arith.constant 0 : index
    %c0_2 = arith.constant 0 : index
    %1 = vector.load %arg4[%c0_1, %c0_2] : memref<32x128xf32, #tpu.memory_space<vmem>>, vector<32x128xf32>
    %cst = arith.constant dense<0.000000e+00> : vector<32x128xf32>
    %2 = tpu.matmul %0, %1, %cst {dimension_numbers = #tpu.dot_dimension_numbers<[1], [0], [0], [1], [0, 0, 1, 1], [], []>} : vector<32x32xf32>, vector<32x128xf32>, vector<32x128xf32> -> vector<32x128xf32>
    %c0_3 = arith.constant 0 : index
    %c0_4 = arith.constant 0 : index
    %3 = vector.load %arg5[%c0_3, %c0_4] : memref<1x128xf32, #tpu.memory_space<vmem>>, vector<1x128xf32>
    %4 = vector.broadcast %3 : vector<1x128xf32> to vector<32x128xf32>
    %5 = arith.addf %2, %4 : vector<32x128xf32>
    %c0_5 = arith.constant 0 : index
    %c0_6 = arith.constant 0 : index
    %6 = vector.load %arg10[%c0_5, %c0_6] : memref<32x128xf32, #tpu.memory_space<vmem>>, vector<32x128xf32>
    tpu.vector_store %arg10[%c0_5, %c0_6], %5 {strides = array<i32>} : memref<32x128xf32, #tpu.memory_space<vmem>>, vector<32x128xf32>,
    %c0_7 = arith.constant 0 : index
    %c0_8 = arith.constant 0 : index
    %7 = vector.load %arg6[%c0_7, %c0_8] : memref<128x128xf32, #tpu.memory_space<vmem>>, vector<128x128xf32>
    %c0_9 = arith.constant 0 : index
    %c0_10 = arith.constant 0 : index
    %8 = vector.load %arg7[%c0_9, %c0_10] : memref<1x128xf32, #tpu.memory_space<vmem>>, vector<1x128xf32>
    %9 = tpu.iota {dimensions = array<i32: 0>} : vector<128x128xi32>
    %10 = tpu.iota {dimensions = array<i32: 1>} : vector<128x128xi32>
    %11 = arith.cmpi eq, %9, %10 : vector<128x128xi32>
    %12 = arith.extui %11 : vector<128x128xi1> to vector<128x128xi32>
    %13 = arith.sitofp %12 : vector<128x128xi32> to vector<128x128xf32>
    %14 = arith.sitofp %9 : vector<128x128xi32> to vector<128x128xf32>
    %15 = tpu.iota {dimensions = array<i32: 1>} : vector<1x128xi32>
    %16 = arith.sitofp %15 : vector<1x128xi32> to vector<1x128xf32>
    %17 = tpu.iota {dimensions = array<i32: 1>} : vector<4x16xi32>
    %18 = tpu.iota {dimensions = array<i32: 1>} : vector<1x4xi32>
    %c2_i32 = arith.constant 2 : i32
    %19 = arith.muli %arg0, %c2_i32 : i32
    %c0_i32 = arith.constant 0 : i32
    %20 = arith.addi %19, %c0_i32 : i32
    %c0_11 = arith.constant 0 : index
    %c0_12 = arith.constant 0 : index
    %c0_13 = arith.constant 0 : index
    %21 = vector.load %arg3[%c0_11, %c0_12, %c0_13] : memref<2x4x2xi32, #tpu.memory_space<vmem>>, vector<1x4x2xi32>
    %22 = vector.shape_cast %21 : vector<1x4x2xi32> to vector<4x2xi32>
    %23 = vector.extract_strided_slice %22 {offsets = [0, 0], sizes = [4, 1], strides = [1, 1]} : vector<4x2xi32> to vector<4x1xi32>
    %24 = vector.extract_strided_slice %22 {offsets = [0, 1], sizes = [4, 1], strides = [1, 1]} : vector<4x2xi32> to vector<4x1xi32>
    %25 = vector.broadcast %23 : vector<4x1xi32> to vector<4x16xi32>
    %26 = arith.cmpi sge, %17, %25 : vector<4x16xi32>
    %27 = vector.broadcast %24 : vector<4x1xi32> to vector<4x16xi32>
    %28 = arith.cmpi slt, %17, %27 : vector<4x16xi32>
    %29 = arith.andi %26, %28 : vector<4x16xi1>
    %30 = arith.extui %29 : vector<4x16xi1> to vector<4x16xi32>
    %31 = arith.sitofp %30 : vector<4x16xi32> to vector<4x16xf32>
    %c0_14 = arith.constant 0 : index
    %c0_15 = arith.constant 0 : index
    %32 = vector.load %arg10[%c0_14, %c0_15] : memref<32x128xf32, #tpu.memory_space<vmem>>, vector<16x128xf32>
    %cst_16 = arith.constant dense<0.000000e+00> : vector<4x128xf32>
    %33 = tpu.matmul %31, %32, %cst_16 {dimension_numbers = #tpu.dot_dimension_numbers<[1], [0], [0], [1], [0, 0, 1, 1], [], []>} : vector<4x16xf32>, vector<16x128xf32>, vector<4x128xf32> -> vector<4x128xf32>
    %34 = arith.subi %24, %23 : vector<4x1xi32>
    %35 = arith.sitofp %34 : vector<4x1xi32> to vector<4x1xf32>
    %cst_17 = arith.constant 1.000000e+00 : f32
    %36 = vector.broadcast %cst_17 : f32 to vector<4x1xf32>
    %37 = arith.maximumf %35, %36 : vector<4x1xf32>
    %38 = vector.broadcast %37 : vector<4x1xf32> to vector<4x128xf32>
    %39 = arith.divf %33, %38 : vector<4x128xf32>
    %c0_18 = arith.constant 0 : index
    %c0_19 = arith.constant 0 : index
    %c0_20 = arith.constant 0 : index
    %40 = vector.load %arg9[%c0_18, %c0_19, %c0_20] : memref<2x4x128xf32, #tpu.memory_space<vmem>>, vector<1x4x128xf32>
    %41 = vector.shape_cast %40 : vector<1x4x128xf32> to vector<4x128xf32>
    %42 = vector.shape_cast %39 : vector<4x128xf32> to vector<1x4x128xf32>
    tpu.vector_store %arg9[%c0_18, %c0_19, %c0_20], %42 {strides = array<i32>} : memref<2x4x128xf32, #tpu.memory_space<vmem>>, vector<1x4x128xf32>,
    %c6 = arith.constant 6 : index
    %c0_21 = arith.constant 0 : index
    %43 = vector.load %arg6[%c6, %c0_21] : memref<128x128xf32, #tpu.memory_space<vmem>>, vector<1x128xf32>
    %44 = vector.extract_strided_slice %39 {offsets = [0, 0], sizes = [1, 128], strides = [1, 1]} : vector<4x128xf32> to vector<1x128xf32>
    %45 = arith.addf %43, %44 : vector<1x128xf32>
    %46 = arith.index_cast %20 : i32 to index
    %c1 = arith.constant 1 : index
    %47 = memref.load %arg1[%46, %c1] : memref<2x4xi32, #tpu.memory_space<smem>>
    %c0_i32_22 = arith.constant 0 : i32
    %48 = arith.cmpi ne, %47, %c0_i32_22 : i32
    %49 = vector.shape_cast %45 : vector<1x128xf32> to vector<1x128xf32>
    %50 = vector.broadcast %49 : vector<1x128xf32> to vector<128x128xf32>
    %cst_23 = arith.constant dense<0.000000e+00> : vector<128x128xf32>
    %51 = tpu.matmul %13, %50, %cst_23 {dimension_numbers = #tpu.dot_dimension_numbers<[1], [1], [0], [0], [0, 0, 1, 0], [], []>} : vector<128x128xf32>, vector<128x128xf32>, vector<128x128xf32> -> vector<128x128xf32>
    %52 = arith.addf %51, %7 : vector<128x128xf32>
    %cst_24 = arith.constant dense<0xFF800000> : vector<128xf32>
    %53 = vector.multi_reduction <maximumf>, %52, %cst_24 [0] : vector<128x128xf32> to vector<128xf32>
    %54 = vector.shape_cast %53 : vector<128xf32> to vector<1x128xf32>
    %55 = vector.broadcast %54 : vector<1x128xf32> to vector<128x128xf32>
    %56 = arith.cmpf oeq, %52, %55 : vector<128x128xf32>
    %cst_25 = arith.constant 1.280000e+02 : f32
    %57 = vector.broadcast %cst_25 : f32 to vector<128x128xf32>
    %58 = arith.select %56, %14, %57 : vector<128x128xi1>, vector<128x128xf32>
    %cst_26 = arith.constant dense<0x7F800000> : vector<128xf32>
    %59 = vector.multi_reduction <minimumf>, %58, %cst_26 [0] : vector<128x128xf32> to vector<128xf32>
    %60 = vector.shape_cast %59 : vector<128xf32> to vector<1x128xf32>
    %61 = vector.extract_strided_slice %39 {offsets = [1, 0], sizes = [1, 128], strides = [1, 1]} : vector<4x128xf32> to vector<1x128xf32>
    %62 = arith.addf %54, %61 : vector<1x128xf32>
    %63 = arith.select %48, %62, %45 : vector<1x128xf32>
    %c1_27 = arith.constant 1 : index
    %c0_28 = arith.constant 0 : index
    %64 = vector.load %arg11[%c1_27, %c0_28] : memref<4x128xf32, #tpu.memory_space<vmem>>, vector<1x128xf32>
    tpu.vector_store %arg11[%c1_27, %c0_28], %60 {strides = array<i32>} : memref<4x128xf32, #tpu.memory_space<vmem>>, vector<1x128xf32>,
    %65 = arith.index_cast %20 : i32 to index
    %c2 = arith.constant 2 : index
    %66 = memref.load %arg1[%65, %c2] : memref<2x4xi32, #tpu.memory_space<smem>>
    %c0_i32_29 = arith.constant 0 : i32
    %67 = arith.cmpi ne, %66, %c0_i32_29 : i32
    %68 = vector.shape_cast %63 : vector<1x128xf32> to vector<1x128xf32>
    %69 = vector.broadcast %68 : vector<1x128xf32> to vector<128x128xf32>
    %cst_30 = arith.constant dense<0.000000e+00> : vector<128x128xf32>
    %70 = tpu.matmul %13, %69, %cst_30 {dimension_numbers = #tpu.dot_dimension_numbers<[1], [1], [0], [0], [0, 0, 1, 0], [], []>} : vector<128x128xf32>, vector<128x128xf32>, vector<128x128xf32> -> vector<128x128xf32>
    %71 = arith.addf %70, %7 : vector<128x128xf32>
    %cst_31 = arith.constant dense<0xFF800000> : vector<128xf32>
    %72 = vector.multi_reduction <maximumf>, %71, %cst_31 [0] : vector<128x128xf32> to vector<128xf32>
    %73 = vector.shape_cast %72 : vector<128xf32> to vector<1x128xf32>
    %74 = vector.broadcast %73 : vector<1x128xf32> to vector<128x128xf32>
    %75 = arith.cmpf oeq, %71, %74 : vector<128x128xf32>
    %cst_32 = arith.constant 1.280000e+02 : f32
    %76 = vector.broadcast %cst_32 : f32 to vector<128x128xf32>
    %77 = arith.select %75, %14, %76 : vector<128x128xi1>, vector<128x128xf32>
    %cst_33 = arith.constant dense<0x7F800000> : vector<128xf32>
    %78 = vector.multi_reduction <minimumf>, %77, %cst_33 [0] : vector<128x128xf32> to vector<128xf32>
    %79 = vector.shape_cast %78 : vector<128xf32> to vector<1x128xf32>
    %80 = vector.extract_strided_slice %39 {offsets = [2, 0], sizes = [1, 128], strides = [1, 1]} : vector<4x128xf32> to vector<1x128xf32>
    %81 = arith.addf %73, %80 : vector<1x128xf32>
    %82 = arith.select %67, %81, %63 : vector<1x128xf32>
    %c2_34 = arith.constant 2 : index
    %c0_35 = arith.constant 0 : index
    %83 = vector.load %arg11[%c2_34, %c0_35] : memref<4x128xf32, #tpu.memory_space<vmem>>, vector<1x128xf32>
    tpu.vector_store %arg11[%c2_34, %c0_35], %79 {strides = array<i32>} : memref<4x128xf32, #tpu.memory_space<vmem>>, vector<1x128xf32>,
    %84 = arith.index_cast %20 : i32 to index
    %c3 = arith.constant 3 : index
    %85 = memref.load %arg1[%84, %c3] : memref<2x4xi32, #tpu.memory_space<smem>>
    %c0_i32_36 = arith.constant 0 : i32
    %86 = arith.cmpi ne, %85, %c0_i32_36 : i32
    %87 = vector.shape_cast %82 : vector<1x128xf32> to vector<1x128xf32>
    %88 = vector.broadcast %87 : vector<1x128xf32> to vector<128x128xf32>
    %cst_37 = arith.constant dense<0.000000e+00> : vector<128x128xf32>
    %89 = tpu.matmul %13, %88, %cst_37 {dimension_numbers = #tpu.dot_dimension_numbers<[1], [1], [0], [0], [0, 0, 1, 0], [], []>} : vector<128x128xf32>, vector<128x128xf32>, vector<128x128xf32> -> vector<128x128xf32>
    %90 = arith.addf %89, %7 : vector<128x128xf32>
    %cst_38 = arith.constant dense<0xFF800000> : vector<128xf32>
    %91 = vector.multi_reduction <maximumf>, %90, %cst_38 [0] : vector<128x128xf32> to vector<128xf32>
    %92 = vector.shape_cast %91 : vector<128xf32> to vector<1x128xf32>
    %93 = vector.broadcast %92 : vector<1x128xf32> to vector<128x128xf32>
    %94 = arith.cmpf oeq, %90, %93 : vector<128x128xf32>
    %cst_39 = arith.constant 1.280000e+02 : f32
    %95 = vector.broadcast %cst_39 : f32 to vector<128x128xf32>
    %96 = arith.select %94, %14, %95 : vector<128x128xi1>, vector<128x128xf32>
    %cst_40 = arith.constant dense<0x7F800000> : vector<128xf32>
    %97 = vector.multi_reduction <minimumf>, %96, %cst_40 [0] : vector<128x128xf32> to vector<128xf32>
    %98 = vector.shape_cast %97 : vector<128xf32> to vector<1x128xf32>
    %99 = vector.extract_strided_slice %39 {offsets = [3, 0], sizes = [1, 128], strides = [1, 1]} : vector<4x128xf32> to vector<1x128xf32>
    %100 = arith.addf %92, %99 : vector<1x128xf32>
    %101 = arith.select %86, %100, %82 : vector<1x128xf32>
    %c3_41 = arith.constant 3 : index
    %c0_42 = arith.constant 0 : index
    %102 = vector.load %arg11[%c3_41, %c0_42] : memref<4x128xf32, #tpu.memory_space<vmem>>, vector<1x128xf32>
    tpu.vector_store %arg11[%c3_41, %c0_42], %98 {strides = array<i32>} : memref<4x128xf32, #tpu.memory_space<vmem>>, vector<1x128xf32>,
    %103 = arith.addf %101, %8 : vector<1x128xf32>
    %cst_43 = arith.constant dense<0xFF800000> : vector<1xf32>
    %104 = vector.multi_reduction <maximumf>, %103, %cst_43 [1] : vector<1x128xf32> to vector<1xf32>
    %105 = vector.shape_cast %104 : vector<1xf32> to vector<1x1xf32>
    %106 = vector.broadcast %105 : vector<1x1xf32> to vector<1x128xf32>
    %107 = arith.cmpf oeq, %103, %106 : vector<1x128xf32>
    %cst_44 = arith.constant 1.280000e+02 : f32
    %108 = vector.broadcast %cst_44 : f32 to vector<1x128xf32>
    %109 = arith.select %107, %16, %108 : vector<1x128xi1>, vector<1x128xf32>
    %cst_45 = arith.constant dense<0x7F800000> : vector<1xf32>
    %110 = vector.multi_reduction <minimumf>, %109, %cst_45 [1] : vector<1x128xf32> to vector<1xf32>
    %111 = vector.shape_cast %110 : vector<1xf32> to vector<1x1xf32>
    %cst_46 = arith.constant 0.000000e+00 : f32
    %112 = vector.broadcast %cst_46 : f32 to vector<1x4xf32>
    %113 = arith.index_cast %20 : i32 to index
    %c3_47 = arith.constant 3 : index
    %114 = memref.load %arg1[%113, %c3_47] : memref<2x4xi32, #tpu.memory_space<smem>>
    %c0_i32_48 = arith.constant 0 : i32
    %115 = arith.cmpi ne, %114, %c0_i32_48 : i32
    %c3_i32 = arith.constant 3 : i32
    %116 = vector.broadcast %c3_i32 : i32 to vector<1x4xi32>
    %117 = arith.cmpi eq, %18, %116 : vector<1x4xi32>
    %cst_49 = arith.constant 0.000000e+00 : f32
    %118 = vector.broadcast %cst_49 : f32 to vector<1x1xf32>
    %119 = arith.select %115, %111, %118 : vector<1x1xf32>
    %120 = vector.shape_cast %119 : vector<1x1xf32> to vector<1x1xf32>
    %121 = vector.broadcast %120 : vector<1x1xf32> to vector<1x4xf32>
    %122 = arith.select %117, %121, %112 : vector<1x4xi1>, vector<1x4xf32>
    %c3_50 = arith.constant 3 : index
    %c0_51 = arith.constant 0 : index
    %123 = vector.load %arg11[%c3_50, %c0_51] : memref<4x128xf32, #tpu.memory_space<vmem>>, vector<1x128xf32>
    %124 = vector.broadcast %111 : vector<1x1xf32> to vector<1x128xf32>
    %125 = arith.cmpf oeq, %16, %124 : vector<1x128xf32>
    %cst_52 = arith.constant 0.000000e+00 : f32
    %126 = vector.broadcast %cst_52 : f32 to vector<1x128xf32>
    %127 = arith.select %125, %123, %126 : vector<1x128xi1>, vector<1x128xf32>
    %cst_53 = arith.constant dense<0.000000e+00> : vector<1xf32>
    %128 = vector.multi_reduction <add>, %127, %cst_53 [1] : vector<1x128xf32> to vector<1xf32>
    %129 = vector.shape_cast %128 : vector<1xf32> to vector<1x1xf32>
    %130 = arith.select %115, %129, %111 : vector<1x1xf32>
    %131 = arith.index_cast %20 : i32 to index
    %c2_54 = arith.constant 2 : index
    %132 = memref.load %arg1[%131, %c2_54] : memref<2x4xi32, #tpu.memory_space<smem>>
    %c0_i32_55 = arith.constant 0 : i32
    %133 = arith.cmpi ne, %132, %c0_i32_55 : i32
    %c2_i32_56 = arith.constant 2 : i32
    %134 = vector.broadcast %c2_i32_56 : i32 to vector<1x4xi32>
    %135 = arith.cmpi eq, %18, %134 : vector<1x4xi32>
    %cst_57 = arith.constant 0.000000e+00 : f32
    %136 = vector.broadcast %cst_57 : f32 to vector<1x1xf32>
    %137 = arith.select %133, %130, %136 : vector<1x1xf32>
    %138 = vector.shape_cast %137 : vector<1x1xf32> to vector<1x1xf32>
    %139 = vector.broadcast %138 : vector<1x1xf32> to vector<1x4xf32>
    %140 = arith.select %135, %139, %122 : vector<1x4xi1>, vector<1x4xf32>
    %c2_58 = arith.constant 2 : index
    %c0_59 = arith.constant 0 : index
    %141 = vector.load %arg11[%c2_58, %c0_59] : memref<4x128xf32, #tpu.memory_space<vmem>>, vector<1x128xf32>
    %142 = vector.broadcast %130 : vector<1x1xf32> to vector<1x128xf32>
    %143 = arith.cmpf oeq, %16, %142 : vector<1x128xf32>
    %cst_60 = arith.constant 0.000000e+00 : f32
    %144 = vector.broadcast %cst_60 : f32 to vector<1x128xf32>
    %145 = arith.select %143, %141, %144 : vector<1x128xi1>, vector<1x128xf32>
    %cst_61 = arith.constant dense<0.000000e+00> : vector<1xf32>
    %146 = vector.multi_reduction <add>, %145, %cst_61 [1] : vector<1x128xf32> to vector<1xf32>
    %147 = vector.shape_cast %146 : vector<1xf32> to vector<1x1xf32>
    %148 = arith.select %133, %147, %130 : vector<1x1xf32>
    %149 = arith.index_cast %20 : i32 to index
    %c1_62 = arith.constant 1 : index
    %150 = memref.load %arg1[%149, %c1_62] : memref<2x4xi32, #tpu.memory_space<smem>>
    %c0_i32_63 = arith.constant 0 : i32
    %151 = arith.cmpi ne, %150, %c0_i32_63 : i32
    %c1_i32 = arith.constant 1 : i32
    %152 = vector.broadcast %c1_i32 : i32 to vector<1x4xi32>
    %153 = arith.cmpi eq, %18, %152 : vector<1x4xi32>
    %cst_64 = arith.constant 0.000000e+00 : f32
    %154 = vector.broadcast %cst_64 : f32 to vector<1x1xf32>
    %155 = arith.select %151, %148, %154 : vector<1x1xf32>
    %156 = vector.shape_cast %155 : vector<1x1xf32> to vector<1x1xf32>
    %157 = vector.broadcast %156 : vector<1x1xf32> to vector<1x4xf32>
    %158 = arith.select %153, %157, %140 : vector<1x4xi1>, vector<1x4xf32>
    %c1_65 = arith.constant 1 : index
    %c0_66 = arith.constant 0 : index
    %159 = vector.load %arg11[%c1_65, %c0_66] : memref<4x128xf32, #tpu.memory_space<vmem>>, vector<1x128xf32>
    %160 = vector.broadcast %148 : vector<1x1xf32> to vector<1x128xf32>
    %161 = arith.cmpf oeq, %16, %160 : vector<1x128xf32>
    %cst_67 = arith.constant 0.000000e+00 : f32
    %162 = vector.broadcast %cst_67 : f32 to vector<1x128xf32>
    %163 = arith.select %161, %159, %162 : vector<1x128xi1>, vector<1x128xf32>
    %cst_68 = arith.constant dense<0.000000e+00> : vector<1xf32>
    %164 = vector.multi_reduction <add>, %163, %cst_68 [1] : vector<1x128xf32> to vector<1xf32>
    %165 = vector.shape_cast %164 : vector<1xf32> to vector<1x1xf32>
    %166 = arith.select %151, %165, %148 : vector<1x1xf32>
    %167 = arith.index_cast %20 : i32 to index
    %c0_69 = arith.constant 0 : index
    %168 = memref.load %arg1[%167, %c0_69] : memref<2x4xi32, #tpu.memory_space<smem>>
    %c0_i32_70 = arith.constant 0 : i32
    %169 = arith.cmpi ne, %168, %c0_i32_70 : i32
    %c0_i32_71 = arith.constant 0 : i32
    %170 = vector.broadcast %c0_i32_71 : i32 to vector<1x4xi32>
    %171 = arith.cmpi eq, %18, %170 : vector<1x4xi32>
    %cst_72 = arith.constant 0.000000e+00 : f32
    %172 = vector.broadcast %cst_72 : f32 to vector<1x1xf32>
    %173 = arith.select %169, %166, %172 : vector<1x1xf32>
    %174 = vector.shape_cast %173 : vector<1x1xf32> to vector<1x1xf32>
    %175 = vector.broadcast %174 : vector<1x1xf32> to vector<1x4xf32>
    %176 = arith.select %171, %175, %158 : vector<1x4xi1>, vector<1x4xf32>
    %177 = arith.fptosi %176 : vector<1x4xf32> to vector<1x4xi32>
    %c0_73 = arith.constant 0 : index
    %c0_74 = arith.constant 0 : index
    %c0_75 = arith.constant 0 : index
    %178 = vector.load %arg8[%c0_73, %c0_74, %c0_75] : memref<2x1x4xi32, #tpu.memory_space<vmem>>, vector<1x1x4xi32>
    %179 = vector.shape_cast %178 : vector<1x1x4xi32> to vector<1x4xi32>
    %180 = vector.shape_cast %177 : vector<1x4xi32> to vector<1x1x4xi32>
    tpu.vector_store %arg8[%c0_73, %c0_74, %c0_75], %180 {strides = array<i32>} : memref<2x1x4xi32, #tpu.memory_space<vmem>>, vector<1x1x4xi32>,
    %c2_i32_76 = arith.constant 2 : i32
    %181 = arith.muli %arg0, %c2_i32_76 : i32
    %c1_i32_77 = arith.constant 1 : i32
    %182 = arith.addi %181, %c1_i32_77 : i32
    %c1_78 = arith.constant 1 : index
    %c0_79 = arith.constant 0 : index
    %c0_80 = arith.constant 0 : index
    %183 = vector.load %arg3[%c1_78, %c0_79, %c0_80] : memref<2x4x2xi32, #tpu.memory_space<vmem>>, vector<1x4x2xi32>
    %184 = vector.shape_cast %183 : vector<1x4x2xi32> to vector<4x2xi32>
    %185 = vector.extract_strided_slice %184 {offsets = [0, 0], sizes = [4, 1], strides = [1, 1]} : vector<4x2xi32> to vector<4x1xi32>
    %186 = vector.extract_strided_slice %184 {offsets = [0, 1], sizes = [4, 1], strides = [1, 1]} : vector<4x2xi32> to vector<4x1xi32>
    %187 = vector.broadcast %185 : vector<4x1xi32> to vector<4x16xi32>
    %188 = arith.cmpi sge, %17, %187 : vector<4x16xi32>
    %189 = vector.broadcast %186 : vector<4x1xi32> to vector<4x16xi32>
    %190 = arith.cmpi slt, %17, %189 : vector<4x16xi32>
    %191 = arith.andi %188, %190 : vector<4x16xi1>
    %192 = arith.extui %191 : vector<4x16xi1> to vector<4x16xi32>
    %193 = arith.sitofp %192 : vector<4x16xi32> to vector<4x16xf32>
    %c16 = arith.constant 16 : index
    %c0_81 = arith.constant 0 : index
    %194 = vector.load %arg10[%c16, %c0_81] : memref<32x128xf32, #tpu.memory_space<vmem>>, vector<16x128xf32>
    %cst_82 = arith.constant dense<0.000000e+00> : vector<4x128xf32>
    %195 = tpu.matmul %193, %194, %cst_82 {dimension_numbers = #tpu.dot_dimension_numbers<[1], [0], [0], [1], [0, 0, 1, 1], [], []>} : vector<4x16xf32>, vector<16x128xf32>, vector<4x128xf32> -> vector<4x128xf32>
    %196 = arith.subi %186, %185 : vector<4x1xi32>
    %197 = arith.sitofp %196 : vector<4x1xi32> to vector<4x1xf32>
    %cst_83 = arith.constant 1.000000e+00 : f32
    %198 = vector.broadcast %cst_83 : f32 to vector<4x1xf32>
    %199 = arith.maximumf %197, %198 : vector<4x1xf32>
    %200 = vector.broadcast %199 : vector<4x1xf32> to vector<4x128xf32>
    %201 = arith.divf %195, %200 : vector<4x128xf32>
    %c1_84 = arith.constant 1 : index
    %c0_85 = arith.constant 0 : index
    %c0_86 = arith.constant 0 : index
    %202 = vector.load %arg9[%c1_84, %c0_85, %c0_86] : memref<2x4x128xf32, #tpu.memory_space<vmem>>, vector<1x4x128xf32>
    %203 = vector.shape_cast %202 : vector<1x4x128xf32> to vector<4x128xf32>
    %204 = vector.shape_cast %201 : vector<4x128xf32> to vector<1x4x128xf32>
    tpu.vector_store %arg9[%c1_84, %c0_85, %c0_86], %204 {strides = array<i32>} : memref<2x4x128xf32, #tpu.memory_space<vmem>>, vector<1x4x128xf32>,
    %c6_87 = arith.constant 6 : index
    %c0_88 = arith.constant 0 : index
    %205 = vector.load %arg6[%c6_87, %c0_88] : memref<128x128xf32, #tpu.memory_space<vmem>>, vector<1x128xf32>
    %206 = vector.extract_strided_slice %201 {offsets = [0, 0], sizes = [1, 128], strides = [1, 1]} : vector<4x128xf32> to vector<1x128xf32>
    %207 = arith.addf %205, %206 : vector<1x128xf32>
    %208 = arith.index_cast %182 : i32 to index
    %c1_89 = arith.constant 1 : index
    %209 = memref.load %arg1[%208, %c1_89] : memref<2x4xi32, #tpu.memory_space<smem>>
    %c0_i32_90 = arith.constant 0 : i32
    %210 = arith.cmpi ne, %209, %c0_i32_90 : i32
    %211 = vector.shape_cast %207 : vector<1x128xf32> to vector<1x128xf32>
    %212 = vector.broadcast %211 : vector<1x128xf32> to vector<128x128xf32>
    %cst_91 = arith.constant dense<0.000000e+00> : vector<128x128xf32>
    %213 = tpu.matmul %13, %212, %cst_91 {dimension_numbers = #tpu.dot_dimension_numbers<[1], [1], [0], [0], [0, 0, 1, 0], [], []>} : vector<128x128xf32>, vector<128x128xf32>, vector<128x128xf32> -> vector<128x128xf32>
    %214 = arith.addf %213, %7 : vector<128x128xf32>
    %cst_92 = arith.constant dense<0xFF800000> : vector<128xf32>
    %215 = vector.multi_reduction <maximumf>, %214, %cst_92 [0] : vector<128x128xf32> to vector<128xf32>
    %216 = vector.shape_cast %215 : vector<128xf32> to vector<1x128xf32>
    %217 = vector.broadcast %216 : vector<1x128xf32> to vector<128x128xf32>
    %218 = arith.cmpf oeq, %214, %217 : vector<128x128xf32>
    %cst_93 = arith.constant 1.280000e+02 : f32
    %219 = vector.broadcast %cst_93 : f32 to vector<128x128xf32>
    %220 = arith.select %218, %14, %219 : vector<128x128xi1>, vector<128x128xf32>
    %cst_94 = arith.constant dense<0x7F800000> : vector<128xf32>
    %221 = vector.multi_reduction <minimumf>, %220, %cst_94 [0] : vector<128x128xf32> to vector<128xf32>
    %222 = vector.shape_cast %221 : vector<128xf32> to vector<1x128xf32>
    %223 = vector.extract_strided_slice %201 {offsets = [1, 0], sizes = [1, 128], strides = [1, 1]} : vector<4x128xf32> to vector<1x128xf32>
    %224 = arith.addf %216, %223 : vector<1x128xf32>
    %225 = arith.select %210, %224, %207 : vector<1x128xf32>
    %c1_95 = arith.constant 1 : index
    %c0_96 = arith.constant 0 : index
    %226 = vector.load %arg11[%c1_95, %c0_96] : memref<4x128xf32, #tpu.memory_space<vmem>>, vector<1x128xf32>
    tpu.vector_store %arg11[%c1_95, %c0_96], %222 {strides = array<i32>} : memref<4x128xf32, #tpu.memory_space<vmem>>, vector<1x128xf32>,
    %227 = arith.index_cast %182 : i32 to index
    %c2_97 = arith.constant 2 : index
    %228 = memref.load %arg1[%227, %c2_97] : memref<2x4xi32, #tpu.memory_space<smem>>
    %c0_i32_98 = arith.constant 0 : i32
    %229 = arith.cmpi ne, %228, %c0_i32_98 : i32
    %230 = vector.shape_cast %225 : vector<1x128xf32> to vector<1x128xf32>
    %231 = vector.broadcast %230 : vector<1x128xf32> to vector<128x128xf32>
    %cst_99 = arith.constant dense<0.000000e+00> : vector<128x128xf32>
    %232 = tpu.matmul %13, %231, %cst_99 {dimension_numbers = #tpu.dot_dimension_numbers<[1], [1], [0], [0], [0, 0, 1, 0], [], []>} : vector<128x128xf32>, vector<128x128xf32>, vector<128x128xf32> -> vector<128x128xf32>
    %233 = arith.addf %232, %7 : vector<128x128xf32>
    %cst_100 = arith.constant dense<0xFF800000> : vector<128xf32>
    %234 = vector.multi_reduction <maximumf>, %233, %cst_100 [0] : vector<128x128xf32> to vector<128xf32>
    %235 = vector.shape_cast %234 : vector<128xf32> to vector<1x128xf32>
    %236 = vector.broadcast %235 : vector<1x128xf32> to vector<128x128xf32>
    %237 = arith.cmpf oeq, %233, %236 : vector<128x128xf32>
    %cst_101 = arith.constant 1.280000e+02 : f32
    %238 = vector.broadcast %cst_101 : f32 to vector<128x128xf32>
    %239 = arith.select %237, %14, %238 : vector<128x128xi1>, vector<128x128xf32>
    %cst_102 = arith.constant dense<0x7F800000> : vector<128xf32>
    %240 = vector.multi_reduction <minimumf>, %239, %cst_102 [0] : vector<128x128xf32> to vector<128xf32>
    %241 = vector.shape_cast %240 : vector<128xf32> to vector<1x128xf32>
    %242 = vector.extract_strided_slice %201 {offsets = [2, 0], sizes = [1, 128], strides = [1, 1]} : vector<4x128xf32> to vector<1x128xf32>
    %243 = arith.addf %235, %242 : vector<1x128xf32>
    %244 = arith.select %229, %243, %225 : vector<1x128xf32>
    %c2_103 = arith.constant 2 : index
    %c0_104 = arith.constant 0 : index
    %245 = vector.load %arg11[%c2_103, %c0_104] : memref<4x128xf32, #tpu.memory_space<vmem>>, vector<1x128xf32>
    tpu.vector_store %arg11[%c2_103, %c0_104], %241 {strides = array<i32>} : memref<4x128xf32, #tpu.memory_space<vmem>>, vector<1x128xf32>,
    %246 = arith.index_cast %182 : i32 to index
    %c3_105 = arith.constant 3 : index
    %247 = memref.load %arg1[%246, %c3_105] : memref<2x4xi32, #tpu.memory_space<smem>>
    %c0_i32_106 = arith.constant 0 : i32
    %248 = arith.cmpi ne, %247, %c0_i32_106 : i32
    %249 = vector.shape_cast %244 : vector<1x128xf32> to vector<1x128xf32>
    %250 = vector.broadcast %249 : vector<1x128xf32> to vector<128x128xf32>
    %cst_107 = arith.constant dense<0.000000e+00> : vector<128x128xf32>
    %251 = tpu.matmul %13, %250, %cst_107 {dimension_numbers = #tpu.dot_dimension_numbers<[1], [1], [0], [0], [0, 0, 1, 0], [], []>} : vector<128x128xf32>, vector<128x128xf32>, vector<128x128xf32> -> vector<128x128xf32>
    %252 = arith.addf %251, %7 : vector<128x128xf32>
    %cst_108 = arith.constant dense<0xFF800000> : vector<128xf32>
    %253 = vector.multi_reduction <maximumf>, %252, %cst_108 [0] : vector<128x128xf32> to vector<128xf32>
    %254 = vector.shape_cast %253 : vector<128xf32> to vector<1x128xf32>
    %255 = vector.broadcast %254 : vector<1x128xf32> to vector<128x128xf32>
    %256 = arith.cmpf oeq, %252, %255 : vector<128x128xf32>
    %cst_109 = arith.constant 1.280000e+02 : f32
    %257 = vector.broadcast %cst_109 : f32 to vector<128x128xf32>
    %258 = arith.select %256, %14, %257 : vector<128x128xi1>, vector<128x128xf32>
    %cst_110 = arith.constant dense<0x7F800000> : vector<128xf32>
    %259 = vector.multi_reduction <minimumf>, %258, %cst_110 [0] : vector<128x128xf32> to vector<128xf32>
    %260 = vector.shape_cast %259 : vector<128xf32> to vector<1x128xf32>
    %261 = vector.extract_strided_slice %201 {offsets = [3, 0], sizes = [1, 128], strides = [1, 1]} : vector<4x128xf32> to vector<1x128xf32>
    %262 = arith.addf %254, %261 : vector<1x128xf32>
    %263 = arith.select %248, %262, %244 : vector<1x128xf32>
    %c3_111 = arith.constant 3 : index
    %c0_112 = arith.constant 0 : index
    %264 = vector.load %arg11[%c3_111, %c0_112] : memref<4x128xf32, #tpu.memory_space<vmem>>, vector<1x128xf32>
    tpu.vector_store %arg11[%c3_111, %c0_112], %260 {strides = array<i32>} : memref<4x128xf32, #tpu.memory_space<vmem>>, vector<1x128xf32>,
    %265 = arith.addf %263, %8 : vector<1x128xf32>
    %cst_113 = arith.constant dense<0xFF800000> : vector<1xf32>
    %266 = vector.multi_reduction <maximumf>, %265, %cst_113 [1] : vector<1x128xf32> to vector<1xf32>
    %267 = vector.shape_cast %266 : vector<1xf32> to vector<1x1xf32>
    %268 = vector.broadcast %267 : vector<1x1xf32> to vector<1x128xf32>
    %269 = arith.cmpf oeq, %265, %268 : vector<1x128xf32>
    %cst_114 = arith.constant 1.280000e+02 : f32
    %270 = vector.broadcast %cst_114 : f32 to vector<1x128xf32>
    %271 = arith.select %269, %16, %270 : vector<1x128xi1>, vector<1x128xf32>
    %cst_115 = arith.constant dense<0x7F800000> : vector<1xf32>
    %272 = vector.multi_reduction <minimumf>, %271, %cst_115 [1] : vector<1x128xf32> to vector<1xf32>
    %273 = vector.shape_cast %272 : vector<1xf32> to vector<1x1xf32>
    %cst_116 = arith.constant 0.000000e+00 : f32
    %274 = vector.broadcast %cst_116 : f32 to vector<1x4xf32>
    %275 = arith.index_cast %182 : i32 to index
    %c3_117 = arith.constant 3 : index
    %276 = memref.load %arg1[%275, %c3_117] : memref<2x4xi32, #tpu.memory_space<smem>>
    %c0_i32_118 = arith.constant 0 : i32
    %277 = arith.cmpi ne, %276, %c0_i32_118 : i32
    %c3_i32_119 = arith.constant 3 : i32
    %278 = vector.broadcast %c3_i32_119 : i32 to vector<1x4xi32>
    %279 = arith.cmpi eq, %18, %278 : vector<1x4xi32>
    %cst_120 = arith.constant 0.000000e+00 : f32
    %280 = vector.broadcast %cst_120 : f32 to vector<1x1xf32>
    %281 = arith.select %277, %273, %280 : vector<1x1xf32>
    %282 = vector.shape_cast %281 : vector<1x1xf32> to vector<1x1xf32>
    %283 = vector.broadcast %282 : vector<1x1xf32> to vector<1x4xf32>
    %284 = arith.select %279, %283, %274 : vector<1x4xi1>, vector<1x4xf32>
    %c3_121 = arith.constant 3 : index
    %c0_122 = arith.constant 0 : index
    %285 = vector.load %arg11[%c3_121, %c0_122] : memref<4x128xf32, #tpu.memory_space<vmem>>, vector<1x128xf32>
    %286 = vector.broadcast %273 : vector<1x1xf32> to vector<1x128xf32>
    %287 = arith.cmpf oeq, %16, %286 : vector<1x128xf32>
    %cst_123 = arith.constant 0.000000e+00 : f32
    %288 = vector.broadcast %cst_123 : f32 to vector<1x128xf32>
    %289 = arith.select %287, %285, %288 : vector<1x128xi1>, vector<1x128xf32>
    %cst_124 = arith.constant dense<0.000000e+00> : vector<1xf32>
    %290 = vector.multi_reduction <add>, %289, %cst_124 [1] : vector<1x128xf32> to vector<1xf32>
    %291 = vector.shape_cast %290 : vector<1xf32> to vector<1x1xf32>
    %292 = arith.select %277, %291, %273 : vector<1x1xf32>
    %293 = arith.index_cast %182 : i32 to index
    %c2_125 = arith.constant 2 : index
    %294 = memref.load %arg1[%293, %c2_125] : memref<2x4xi32, #tpu.memory_space<smem>>
    %c0_i32_126 = arith.constant 0 : i32
    %295 = arith.cmpi ne, %294, %c0_i32_126 : i32
    %c2_i32_127 = arith.constant 2 : i32
    %296 = vector.broadcast %c2_i32_127 : i32 to vector<1x4xi32>
    %297 = arith.cmpi eq, %18, %296 : vector<1x4xi32>
    %cst_128 = arith.constant 0.000000e+00 : f32
    %298 = vector.broadcast %cst_128 : f32 to vector<1x1xf32>
    %299 = arith.select %295, %292, %298 : vector<1x1xf32>
    %300 = vector.shape_cast %299 : vector<1x1xf32> to vector<1x1xf32>
    %301 = vector.broadcast %300 : vector<1x1xf32> to vector<1x4xf32>
    %302 = arith.select %297, %301, %284 : vector<1x4xi1>, vector<1x4xf32>
    %c2_129 = arith.constant 2 : index
    %c0_130 = arith.constant 0 : index
    %303 = vector.load %arg11[%c2_129, %c0_130] : memref<4x128xf32, #tpu.memory_space<vmem>>, vector<1x128xf32>
    %304 = vector.broadcast %292 : vector<1x1xf32> to vector<1x128xf32>
    %305 = arith.cmpf oeq, %16, %304 : vector<1x128xf32>
    %cst_131 = arith.constant 0.000000e+00 : f32
    %306 = vector.broadcast %cst_131 : f32 to vector<1x128xf32>
    %307 = arith.select %305, %303, %306 : vector<1x128xi1>, vector<1x128xf32>
    %cst_132 = arith.constant dense<0.000000e+00> : vector<1xf32>
    %308 = vector.multi_reduction <add>, %307, %cst_132 [1] : vector<1x128xf32> to vector<1xf32>
    %309 = vector.shape_cast %308 : vector<1xf32> to vector<1x1xf32>
    %310 = arith.select %295, %309, %292 : vector<1x1xf32>
    %311 = arith.index_cast %182 : i32 to index
    %c1_133 = arith.constant 1 : index
    %312 = memref.load %arg1[%311, %c1_133] : memref<2x4xi32, #tpu.memory_space<smem>>
    %c0_i32_134 = arith.constant 0 : i32
    %313 = arith.cmpi ne, %312, %c0_i32_134 : i32
    %c1_i32_135 = arith.constant 1 : i32
    %314 = vector.broadcast %c1_i32_135 : i32 to vector<1x4xi32>
    %315 = arith.cmpi eq, %18, %314 : vector<1x4xi32>
    %cst_136 = arith.constant 0.000000e+00 : f32
    %316 = vector.broadcast %cst_136 : f32 to vector<1x1xf32>
    %317 = arith.select %313, %310, %316 : vector<1x1xf32>
    %318 = vector.shape_cast %317 : vector<1x1xf32> to vector<1x1xf32>
    %319 = vector.broadcast %318 : vector<1x1xf32> to vector<1x4xf32>
    %320 = arith.select %315, %319, %302 : vector<1x4xi1>, vector<1x4xf32>
    %c1_137 = arith.constant 1 : index
    %c0_138 = arith.constant 0 : index
    %321 = vector.load %arg11[%c1_137, %c0_138] : memref<4x128xf32, #tpu.memory_space<vmem>>, vector<1x128xf32>
    %322 = vector.broadcast %310 : vector<1x1xf32> to vector<1x128xf32>
    %323 = arith.cmpf oeq, %16, %322 : vector<1x128xf32>
    %cst_139 = arith.constant 0.000000e+00 : f32
    %324 = vector.broadcast %cst_139 : f32 to vector<1x128xf32>
    %325 = arith.select %323, %321, %324 : vector<1x128xi1>, vector<1x128xf32>
    %cst_140 = arith.constant dense<0.000000e+00> : vector<1xf32>
    %326 = vector.multi_reduction <add>, %325, %cst_140 [1] : vector<1x128xf32> to vector<1xf32>
    %327 = vector.shape_cast %326 : vector<1xf32> to vector<1x1xf32>
    %328 = arith.select %313, %327, %310 : vector<1x1xf32>
    %329 = arith.index_cast %182 : i32 to index
    %c0_141 = arith.constant 0 : index
    %330 = memref.load %arg1[%329, %c0_141] : memref<2x4xi32, #tpu.memory_space<smem>>
    %c0_i32_142 = arith.constant 0 : i32
    %331 = arith.cmpi ne, %330, %c0_i32_142 : i32
    %c0_i32_143 = arith.constant 0 : i32
    %332 = vector.broadcast %c0_i32_143 : i32 to vector<1x4xi32>
    %333 = arith.cmpi eq, %18, %332 : vector<1x4xi32>
    %cst_144 = arith.constant 0.000000e+00 : f32
    %334 = vector.broadcast %cst_144 : f32 to vector<1x1xf32>
    %335 = arith.select %331, %328, %334 : vector<1x1xf32>
    %336 = vector.shape_cast %335 : vector<1x1xf32> to vector<1x1xf32>
    %337 = vector.broadcast %336 : vector<1x1xf32> to vector<1x4xf32>
    %338 = arith.select %333, %337, %320 : vector<1x4xi1>, vector<1x4xf32>
    %339 = arith.fptosi %338 : vector<1x4xf32> to vector<1x4xi32>
    %c1_145 = arith.constant 1 : index
    %c0_146 = arith.constant 0 : index
    %c0_147 = arith.constant 0 : index
    %340 = vector.load %arg8[%c1_145, %c0_146, %c0_147] : memref<2x1x4xi32, #tpu.memory_space<vmem>>, vector<1x1x4xi32>
    %341 = vector.shape_cast %340 : vector<1x1x4xi32> to vector<1x4xi32>
    %342 = vector.shape_cast %339 : vector<1x4xi32> to vector<1x1x4xi32>
    tpu.vector_store %arg8[%c1_145, %c0_146, %c0_147], %342 {strides = array<i32>} : memref<2x1x4xi32, #tpu.memory_space<vmem>>, vector<1x1x4xi32>,
    return
  }
  func.func @transform_0(%arg0: i32, %arg1: memref<2x4xi32, #tpu.memory_space<smem>>) -> (i32, i32) {
    %c0_i32 = arith.constant 0 : i32
    %c0_i32_0 = arith.constant 0 : i32
    return %arg0, %c0_i32 : i32, i32
  }
  func.func @transform_1(%arg0: i32, %arg1: memref<2x4xi32, #tpu.memory_space<smem>>) -> (i32, i32, i32) {
    %c0_i32 = arith.constant 0 : i32
    %c0_i32_0 = arith.constant 0 : i32
    %c0_i32_1 = arith.constant 0 : i32
    return %arg0, %c0_i32, %c0_i32_0 : i32, i32, i32
  }
  func.func @transform_2(%arg0: i32, %arg1: memref<2x4xi32, #tpu.memory_space<smem>>) -> (i32, i32) {
    %c0_i32 = arith.constant 0 : i32
    %c0_i32_0 = arith.constant 0 : i32
    %c0_i32_1 = arith.constant 0 : i32
    return %c0_i32, %c0_i32_0 : i32, i32
  }
  func.func @transform_3(%arg0: i32, %arg1: memref<2x4xi32, #tpu.memory_space<smem>>) -> (i32, i32) {
    %c0_i32 = arith.constant 0 : i32
    %c0_i32_0 = arith.constant 0 : i32
    %c0_i32_1 = arith.constant 0 : i32
    return %c0_i32, %c0_i32_0 : i32, i32
  }
  func.func @transform_4(%arg0: i32, %arg1: memref<2x4xi32, #tpu.memory_space<smem>>) -> (i32, i32) {
    %c0_i32 = arith.constant 0 : i32
    %c0_i32_0 = arith.constant 0 : i32
    %c0_i32_1 = arith.constant 0 : i32
    return %c0_i32, %c0_i32_0 : i32, i32
  }
  func.func @transform_5(%arg0: i32, %arg1: memref<2x4xi32, #tpu.memory_space<smem>>) -> (i32, i32) {
    %c0_i32 = arith.constant 0 : i32
    %c0_i32_0 = arith.constant 0 : i32
    %c0_i32_1 = arith.constant 0 : i32
    return %c0_i32, %c0_i32_0 : i32, i32
  }
  func.func @transform_6(%arg0: i32, %arg1: memref<2x4xi32, #tpu.memory_space<smem>>) -> (i32, i32, i32) {
    %c0_i32 = arith.constant 0 : i32
    %c0_i32_0 = arith.constant 0 : i32
    %c0_i32_1 = arith.constant 0 : i32
    return %arg0, %c0_i32, %c0_i32_0 : i32, i32, i32
  }
  func.func @transform_7(%arg0: i32, %arg1: memref<2x4xi32, #tpu.memory_space<smem>>) -> (i32, i32, i32) {
    %c0_i32 = arith.constant 0 : i32
    %c0_i32_0 = arith.constant 0 : i32
    %c0_i32_1 = arith.constant 0 : i32
    return %arg0, %c0_i32, %c0_i32_0 : i32, i32, i32
  }
}

</mosaic_0001>

<bundles_post_ra>
// kernel: tpu_custom_call.1
= control target key start
LH: loop header
LB: loop body
LE: loop exit
PB: predicated region body
PF: predicated region fallthrough
CT: control target
= control target key end

     0   :  { %s4940_s0 = inlined_call_operand.vmem [shape: s32[2,4], index: 0, kind: input, shape index: {}]   ;;  %s4941_s1 = inlined_call_operand.hbm [shape: f32[32,32], index: 1, kind: input, shape index: {}]   ;;  %s4942_s2 = inlined_call_operand.vmem [shape: s32[2,4,2], index: 2, kind: input, shape index: {}]   ;;  %s4943_s3 = inlined_call_operand.hbm [shape: f32[32,128], index: 3, kind: input, shape index: {}]   ;;  %s4944_s4 = inlined_call_operand.vmem [shape: f32[1,128], index: 4, kind: input, shape index: {}]   ;;  %s4945_s5 = inlined_call_operand.hbm [shape: f32[128,128], index: 5, kind: input, shape index: {}]   ;;  %s4946_s6 = inlined_call_operand.vmem [shape: f32[1,128], index: 6, kind: input, shape index: {}]   ;;  %s4947_s7 = inlined_call_operand.hbm [shape: s32[2,1,4], index: 7, kind: output, shape index: {0}]   ;;  %s4948_s8 = inlined_call_operand.hbm [shape: f32[2,4,128], index: 8, kind: output, shape index: {1}]  }
   0x1   :  { %s14_s29 = sshll.u32 %s4940_s0, 4  ;;  %s15_s29 = int_to_ptr.vmem [resolvable:$true] %s14_s29 }
   0x2   :  { %s3057_s30 = scalar_lea.vmem %s15_s29, 32  ;;  %p3062_p1 = scmp.lt.s32.totalorder %s15_s29, %s15_s29 }
   0x3   :  { %p3058_p0 = scmp.ne.s32.totalorder %s15_s29, %s3057_s30  ;;  %p3063_p2 = scmp.lt.s32.totalorder %s3057_s30, %s3057_s30 }
   0x5   :  { %p3064_p3 = por %p3063_p2, %p3062_p1 }
   0x7   :  { %p3065_p4 = pnand %p3064_p3, %p3058_p0 }
   0x9   :  { %3068 = shalt.err (!%p3065_p4)  }
   0xa   :  { %s3189_s9 = smov [#allocation5]  }
   0xb   :  { %17 = dma.vmem_to_smem %s15_s29, 32, %s3189_s9, [#allocation4] }
   0xc   :  { %3179 = dma.done.wait [#allocation4], 32 }
   0xd   :  { %3180 = vsyncadd [#allocation4], 4294967264 }
   0xe   :  { %19 = sfence }
   0xf   :  { %20 = vsyncpa [#allocation7], 0 }
  0x10   :  { %21 = vsyncpa [#allocation10], 0 }
  0x11   :  { %22 = vsyncpa [#allocation8], 0 }
  0x12   :  { %23 = vsyncpa [#allocation14], 0  ;;  %s3190_s10 = smov [#allocation9]   ;;  %s3191_s0 = smov [#allocation6]  }
  0x13   :  { %s43_s11 = sshll.u32 %s3190_s10, 4  ;;  %s29_s12 = sshll.u32 %s3191_s0, 4  ;;  %s44_s11 = int_to_ptr.vmem [resolvable:$true] %s43_s11  ;;  %s3255_s12 = int_to_ptr.vmem [resolvable:$true] %s29_s12 }
  0x14   :  { %s3069_s15 = scalar_lea.hbm %s4943_s3, 512 }
  0x15   :  { %p3070_p5 = scmp.ne.s32.totalorder %s4943_s3, %s3069_s15  ;;  %p3073_p6 = scmp.lt.u32.totalorder %s3069_s15, %s4943_s3 }
  0x17   :  { %p3075_p7 = pnand %p3073_p6, %p3070_p5 }
  0x19   :  { %3078 = shalt.err (!%p3075_p7)
}
  0x1a   :  { %s3079_s20 = scalar_lea.vmem %s44_s11, 512  ;;  %p3084_p9 = scmp.lt.s32.totalorder %s44_s11, %s44_s11 }
  0x1b   :  { %p3080_p8 = scmp.ne.s32.totalorder %s44_s11, %s3079_s20  ;;  %p3085_p10 = scmp.lt.s32.totalorder %s3079_s20, %s3079_s20 }
  0x1d   :  { %p3086_p11 = por %p3085_p10, %p3084_p9 }
  0x1f   :  { %p3087_p12 = pnand %p3086_p11, %p3080_p8 }
  0x21   :  { %3090 = shalt.err (!%p3087_p12)
}
  0x22   :  { %s3192_s21 = smov 128   ;;  %s3193_s22 = smov 8  }
  0x23   :  { %49 = dma.hbm_to_vmem [thread:$0]  %s4943_s3, 512, %s44_s11, [#allocation10], %s3192_s21, %s3192_s21, %s3193_s22  }
  0x24   :  { %s3091_s27 = scalar_lea.hbm %s4941_s1, 512 }
  0x25   :  { %p3092_p13 = scmp.ne.s32.totalorder %s4941_s1, %s3091_s27  ;;  %p3095_p0 = scmp.lt.u32.totalorder %s3091_s27, %s4941_s1 }
  0x27   :  { %p3097_p1 = pnand %p3095_p0, %p3092_p13 }
  0x29   :  { %3100 = shalt.err (!%p3097_p1)
}
  0x2a   :  { %s3101_s10 = scalar_lea.vmem %s3255_s12, 512  ;;  %p3106_p3 = scmp.lt.s32.totalorder %s3255_s12, %s3255_s12 }
  0x2b   :  { %p3102_p2 = scmp.ne.s32.totalorder %s3255_s12, %s3101_s10  ;;  %p3107_p4 = scmp.lt.s32.totalorder %s3101_s10, %s3101_s10 }
  0x2d   :  { %p3108_p5 = por %p3107_p4, %p3106_p3 }
  0x2f   :  { %p3109_p6 = pnand %p3108_p5, %p3102_p2 }
  0x31   :  { %3112 = shalt.err (!%p3109_p6)
}
  0x32   :  { %35 = dma.hbm_to_vmem [thread:$0]  %s4941_s1, 512, %s3255_s12, [#allocation7], %s3192_s21, %s3192_s21, %s3193_s22  }
  0x33   :  { %s3194_s0 = smov [#allocation11]   ;;  %s3113_s16 = scalar_lea.hbm %s4945_s5, 2048 }
  0x34   :  { %s57_s13 = sshll.u32 %s3194_s0, 4  ;;  %p3114_p7 = scmp.ne.s32.totalorder %s4945_s5, %s3113_s16  ;;  %s58_s13 = int_to_ptr.vmem [resolvable:$true] %s57_s13 }
  0x35   :  { %p3117_p8 = scmp.lt.u32.totalorder %s3113_s16, %s4945_s5 }
  0x37   :  { %p3119_p9 = pnand %p3117_p8, %p3114_p7 }
  0x39   :  { %3122 = shalt.err (!%p3119_p9)
}
  0x3a   :  { %s3123_s23 = scalar_lea.vmem %s58_s13, 2048  ;;  %p3128_p11 = scmp.lt.s32.totalorder %s58_s13, %s58_s13 }
  0x3b   :  { %p3124_p10 = scmp.ne.s32.totalorder %s58_s13, %s3123_s23  ;;  %p3129_p12 = scmp.lt.s32.totalorder %s3123_s23, %s3123_s23 }
  0x3d   :  { %p3130_p13 = por %p3129_p12, %p3128_p11 }
  0x3f   :  { %p3131_p0 = pnand %p3130_p13, %p3124_p10 }
  0x41   :  { %3134 = shalt.err (!%p3131_p0)
}
  0x42   :  { %63 = dma.hbm_to_vmem [thread:$0]  %s4945_s5, 2048, %s58_s13, [#allocation10], %s3192_s21, %s3192_s21, %s3193_s22  }
  0x43   :  { %3181 = dma.done.wait [#allocation7], 512  }
  0x44   :  { %3182 = vsyncadd [#allocation7], 4294966784 }
  0x45   :  { %3183 = dma.done.wait [#allocation10], 2560  }
  0x46   :  { %3184 = vsyncadd [#allocation10], 4294964736  ;;  %v3195_v0 = vmov 0   ;;  %v3196_v1 = vmov 1   ;;  %vm90_vm0 = vcmask 261120   ;;  %v79_v3 = vld [vmem:[#allocation9] sm:$0xff]  ;;  %v209_v21 = vlaneseq }
  0x47   :  { %3033 = vset.pattern.permute.xlu0 %v3195_v0  ;;  %3035 = vset.pattern.permute.xlu1 %v3196_v1  ;;  %v294_v2 = vld [vmem:[%s4942_s2] sm:$0xf]  ;;  %v80_v4 = vld [vmem:[#allocation9 + $0x8] sm:$0xff]  ;;  %s3197_s26 = smov 1   ;;  %v81_v6 = vld [vmem:[#allocation9 + $0x10] sm:$0xff]  ;;  %v4956_v14 = vmov 0.0|0.0  }
  0x48   :  { %382 = vrot.lane.b32.xlu1 %v294_v2, %s3197_s26  ;;  %v2805_v5 = vpack.c.bf16 %v80_v4, %v79_v3  ;;  %v82_v7 = vld [vmem:[#allocation9 + $0x18] sm:$0xff]  ;;  %v75_v8 = vld [vmem:[#allocation6] sm:$0xff]  ;;  %296 = vperm.xlu0 %3033, %v294_v2   ;;  %v76_v11 = vld [vmem:[#allocation6 + $0x8] sm:$0xff]  ;;  %vm4950_vm1 = vmmov 0   ;;  %v4952_v15 = vmov 0.0   ;;  %v3322_v22 = vand.u32 127, %v209_v21 }
  0x49   :  { %v2809_v9 = vpack.c.bf16 %v82_v7, %v81_v6  ;;  %2449 = vmatprep.mubr.msk.f32.mxu1 %vm90_vm0, %v75_v8  ;;  %v2177_v10 = vld [vmem:[%s4942_s2 + $0x4] sm:$0xf]  ;;  %v77_v12 = vld [vmem:[#allocation6 + $0x10] sm:$0xff]  ;;  %v78_v13 = vld [vmem:[#allocation6 + $0x18] sm:$0xff]  ;;  %vm4949_vm5 = vcmask 130048   ;;  %v3339_v42 = vshrl.u32 %v209_v21, 7 }
  0x4a   :  { %2806 = vmatprep.subr.bf16.mxu1 %v2805_v5  ;;  %5103 = vst [vmem:[#allocation20_spill] sm:$0xff] %v3322_v22  ;;  %v2099_v23 = vld [vmem:[%s4944_s4] ss:$0 sm:$0xff]  ;;  %v5106_v43 = vmov 0  ;;  %v4954_v44 = vmov 1.0   ;;  %v5110_v56 = vmov 0 }
  0x4b   :  { %2808 = vmatpush3.bf16.msra.mxu1 %v2805_v5  ;;  %5105 = vst [vmem:[#allocation22_spill] sm:$0xff] %v3339_v42  ;;  %vm3343_vm6 = vcmp.eq.s32.totalorder %v3339_v42, %v3322_v22  ;;  %v395_v47 = vld [vmem:[#allocation11 + $0x6] sm:$0x1]  ;;  %v4951_v49 = vsub.s32 0, %v3339_v42  ;;  %v3364_v54 = vadd.s32 8, %v3339_v42  ;;  %v3367_v55 = vadd.s32 16, %v3339_v42 }
  0x4c   :  { %2810 = vmatprep.subr.bf16.mxu1 %v2809_v9  ;;  %3034 = vset.pattern.permute.xlu0 %v3196_v1  ;;  %v5107_v43 = vsel %vm3343_vm6, 4294967295, %v5106_v43  ;;  %v3376_v57 = vadd.s32 24, %v3339_v42  ;;  %v5113_v58 = vmov 0  ;;  %v3385_v59 = vadd.s32 32, %v3339_v42  ;;  %s2122_s4 = sld [smem:[#allocation5 + $0x1]]  ;;  %s2139_s28 = sld [smem:[#allocation5 + $0x2]] }
  0x4d   :  { %300 = vperm.xlu0 %3034, %v294_v2   ;;  %5108 = vst [vmem:[#allocation23_spill] sm:$0xff] %v5107_v43  ;;  %2550 = vmatprep.mubr.msk.f32.mxu0 %vm3343_vm6, %v4954_v44  ;;  %vm3371_vm7 = vcmp.eq.s32.totalorder %v3364_v54, %v3322_v22  ;;  %vm3380_vm8 = vcmp.eq.s32.totalorder %v3367_v55, %v3322_v22  ;;  %v5116_v60 = vmov 0  ;;  %v3400_v61 = vadd.s32 40, %v3339_v42  ;;  %s2180_s30 = sld [smem:[#allocation5 + $0x81]]  ;;  %s2156_s10 = sld [smem:[#allocation5 + $0x3]] }
  0x4e   :  { %v5111_v56 = vsel %vm3371_vm7, 4294967295, %v5110_v56  ;;  %v5114_v58 = vsel %vm3380_vm8, 4294967295, %v5113_v58  ;;  %vm3395_vm9 = vcmp.eq.s32.totalorder %v3376_v57, %v3322_v22  ;;  %vm3404_vm10 = vcmp.eq.s32.totalorder %v3385_v59, %v3322_v22  ;;  %s2214_s14 = sld [smem:[#allocation5 + $0x83]]  ;;  %s2175_s16 = sld [smem:[#allocation5 + $0x2]] }
  0x4f   :  { %2812 = vmatpush3.bf16.msra.mxu1 %v2809_v9  ;;  %5112 = vst [vmem:[#allocation25_spill] sm:$0xff] %v5111_v56  ;;  %5115 = vst [vmem:[#allocation26_spill] sm:$0xff] %v5114_v58  ;;  %v5117_v60 = vsel %vm3395_vm9, 4294967295, %v5116_v60  ;;  %v5119_v62 = vmov 0  ;;  %v3409_v63 = vadd.s32 48, %v3339_v42  ;;  %vm3419_vm11 = vcmp.eq.s32.totalorder %v3400_v61, %v3322_v22  ;;  %s2176_s18 = sld [smem:[#allocation5 + $0x1]] }
  0x50   :  { %2813 = vmatprep.subr.bf16.mxu1 %v4956_v14  ;;  %5118 = vst [vmem:[#allocation27_spill] sm:$0xff] %v5117_v60  ;;  %v5120_v62 = vsel %vm3404_vm10, 4294967295, %v5119_v62  ;;  %v3424_v1 = vadd.s32 56, %v3339_v42  ;;  %v3433_v3 = vadd.s32 64, %v3339_v42  ;;  %v5128_v4 = vmov 0  ;;  %s1173_s19 = sld [smem:[#allocation5]] }
  0x51   :  { %1192 = vperm.xlu0 %3034, %v2177_v10   ;;  %5121 = vst [vmem:[#allocation28_spill] sm:$0xff] %v5120_v62  ;;  %vm3428_vm12 = vcmp.eq.s32.totalorder %v3409_v63, %v3322_v22  ;;  %v3448_v5 = vadd.s32 72, %v3339_v42  ;;  %v5131_v6 = vmov 0  ;;  %v3457_v7 = vadd.s32 80, %v3339_v42  ;;  %s3202_s1 = smov [#allocation13]  }
  0x52   :  { %2450 = vmatmul.mubr.msk.f32.vlgmr.msra.gmra.mrb[0].mxu1 %vm90_vm0, %v76_v11  ;;  %vm3443_vm13 = vcmp.eq.s32.totalorder %v3424_v1, %v3322_v22  ;;  %vm3452_vm14 = vcmp.eq.s32.totalorder %v3433_v3, %v3322_v22  ;;  %v5134_v8 = vmov 0  ;;  %v3472_v9 = vadd.s32 88, %v3339_v42  ;;  %p400_p1 = scmp.ne.s32.totalorder %s2122_s4, 0  ;;  %p635_p2 = scmp.ne.s32.totalorder %s2139_s28, 0 }
  0x53   :  { %2452 = vmatprep.mubr.msk.f32.mxu1 %vm90_vm0, %v77_v12  ;;  %v5129_v4 = vsel %vm3443_vm13, 4294967295, %v5128_v4  ;;  %v5132_v6 = vsel %vm3452_vm14, 4294967295, %v5131_v6  ;;  %vm3467_vm15 = vcmp.eq.s32.totalorder %v3448_v5, %v3322_v22  ;;  %v3481_v11 = vadd.s32 96, %v3339_v42  ;;  %p1292_p3 = scmp.ne.s32.totalorder %s2180_s30, 0  ;;  %p870_p4 = scmp.ne.s32.totalorder %s2156_s10, 0 }
  0x54   :  { %5130 = vst [vmem:[#allocation31_spill] sm:$0xff] %v5129_v4  ;;  %5133 = vst [vmem:[#allocation32_spill] sm:$0xff] %v5132_v6  ;;  %v5135_v8 = vsel %vm3467_vm15, 4294967295, %v5134_v8  ;;  %v5140_v12 = vmov 0  ;;  %v5152_v21 = vmov 0  ;;  %p1762_p6 = scmp.ne.s32.totalorder %s2214_s14, 0 }
  0x55   :  { %5136 = vst [vmem:[#allocation33_spill] sm:$0xff] %v5135_v8  ;;  %s3642_s27 = scalar_select %p400_p1, 1, 0 }
  0x56   :  { %2453 = vmatmul.mubr.msk.f32.gmra.mrb[2].mxu1 %vm90_vm0, %v78_v13  ;;  %vm3476_vm0 = vcmp.eq.s32.totalorder %v3457_v7, %v3322_v22  ;;  %v3496_v13 = vadd.s32 104, %v3339_v42  ;;  %s3908_s29 = scalar_select %p635_p2, 1, 0 }
  0x57   :  { %2459 = vmatprep.mubr.msk.f32.mxu1 %vm4950_vm1, %v4952_v15  ;;  %s4203_s9 = scalar_select %p1292_p3, 1, 0 }
  0x58   :  { %s4355_s3 = scalar_select %p870_p4, 1, 0 }
  0x59   :  { %s4757_s15 = scalar_select %p1762_p6, 1, 0 }
  0x5a   :  { %p1138_p7 = scmp.ne.s32.totalorder %s2175_s16, 0  ;;  %p1156_p8 = scmp.ne.s32.totalorder %s2176_s18, 0 }
  0x5b   :  { %p1174_p9 = scmp.ne.s32.totalorder %s1173_s19, 0  ;;  %s2082_s12 = sshll.u32 %s3202_s1, 4  ;;  %s2083_s12 = int_to_ptr.vmem [resolvable:$true] %s2082_s12 }
  0x5c   :  { %s1140_s17 = scalar_select %p1138_p7, 1, 0 }
  0x5d   :  { %s1158_s20 = scalar_select %p1156_p8, 1, 0 }
  0x5e   :  { %s1176_s23 = scalar_select %p1174_p9, 1, 0 }
  0x5f   :  { %s3135_s24 = scalar_lea.vmem %s2083_s12, 128  ;;  %p3140_p11 = scmp.lt.s32.totalorder %s2083_s12, %s2083_s12 }
  0x60   :  { %p3136_p10 = scmp.ne.s32.totalorder %s2083_s12, %s3135_s24  ;;  %p3141_p12 = scmp.lt.s32.totalorder %s3135_s24, %s3135_s24 }
  0x62   :  { %p3142_p13 = por %p3141_p12, %p3140_p11 }
  0x64   :  { %p3143_p0 = pnand %p3142_p13, %p3136_p10 }
  0xba   :  { %v383_v16 = vpop.permute.xlu1 %382 }
  0xbb   :  { %v384_v17 = vsub.s32 %v294_v2, %v383_v16  ;;  %v5125_v2 = vmov 0  ;;  %v5143_v16 = vmov 0 }
  0xbc   :  { %v5126_v2 = vsel %vm3428_vm12, 4294967295, %v5125_v2 }
  0xbd   :  { %v385_v18 = vcvt.s32.f32 %v384_v17  ;;  %5127 = vst [vmem:[#allocation30_spill] sm:$0xff] %v5126_v2  ;;  %v3505_v17 = vadd.s32 112, %v3339_v42 }
  0xbf   :  { %v386_v19 = vmax.f32 %v385_v18, 1.0  ;;  %v5146_v18 = vmov 0 }
  0xc1   :  { %389 = vperm.xlu1 %3035, %v386_v19   ;;  %v3520_v19 = vadd.s32 120, %v3339_v42 }
  0xc3   :  { %vm3536_vm1 = vcmp.eq.s32.totalorder %v3520_v19, %v3322_v22 }
  0xc4   :  { %v5153_v21 = vsel %vm3536_vm1, 4294967295, %v5152_v21 }
  0xc5   :  { %3036 = vset.pattern.permute.xlu1 %v3195_v0  ;;  %v5122_v0 = vmov 0  ;;  %5154 = vst [vmem:[#allocation39_spill] sm:$0xff] %v5153_v21 }
  0xc6   :  { %1188 = vperm.xlu1 %3036, %v2177_v10   ;;  %v5123_v0 = vsel %vm3419_vm11, 4294967295, %v5122_v0 }
  0xc7   :  { %v297_v20 = vpop.permute.xlu0 %296  ;;  %5124 = vst [vmem:[#allocation29_spill] sm:$0xff] %v5123_v0 }
  0xc8   :  { %vm298_vm2 = vcmp.ge.s32.totalorder %v3322_v22, %v297_v20  ;;  %v5149_v20 = vmov 0 }
  0xca   :  { %1273 = vrot.lane.b32.xlu1 %v2177_v10, %s3197_s26 }
  0xcc   :  { %v301_v24 = vpop.permute.xlu0 %300 }
  0xcd   :  { %vm302_vm3 = vcmp.lt.s32.totalorder %v3322_v22, %v301_v24 }
  0xce   :  { %vm303_vm4 = vmand %vm298_vm2, %vm302_vm3  ;;  %vm3491_vm2 = vcmp.eq.s32.totalorder %v3472_v9, %v3322_v22  ;;  %vm3500_vm3 = vcmp.eq.s32.totalorder %v3481_v11, %v3322_v22 }
  0xcf   :  { %v2120_v30 = vsel %vm303_vm4, 1.0, %v4952_v15  ;;  %v5141_v12 = vsel %vm3491_vm2, 4294967295, %v5140_v12  ;;  %v5144_v16 = vsel %vm3500_vm3, 4294967295, %v5143_v16  ;;  %vm3515_vm4 = vcmp.eq.s32.totalorder %v3496_v13, %v3322_v22  ;;  %v3590_v15 = vld [vmem:[#allocation11 + $0x48] sm:$0xff] }
  0xd0   :  { %5142 = vst [vmem:[#allocation35_spill] sm:$0xff] %v5141_v12  ;;  %5145 = vst [vmem:[#allocation36_spill] sm:$0xff] %v5144_v16  ;;  %v5147_v18 = vsel %vm3515_vm4, 4294967295, %v5146_v18 }
  0xd1   :  { %5148 = vst [vmem:[#allocation37_spill] sm:$0xff] %v5147_v18  ;;  %5163 = vst [vmem:[#allocation48_spill] sm:$0xff] %v3590_v15 }
 0x125   :  { %v2451_v25 = vpop.f32.mrb[0].mxu1 }
 0x126   :  { %v175_v26 = vadd.f32 %v2451_v25, %v2099_v23  ;;  %v169_v27 = vpop.f32.mrb[1].mxu1 }
 0x127   :  { %v170_v28 = vadd.f32 %v2099_v23, %v169_v27  ;;  %v3546_v27 = vld [vmem:[#allocation11 + $0x8] sm:$0xff] }
 0x128   :  { %5155 = vst [vmem:[#allocation40_spill] sm:$0xff] %v3546_v27 }
 0x129   :  { %v2814_v29 = vpack.c.bf16 %v175_v26, %v170_v28  ;;  %v2454_v37 = vpop.f32.mrb[2].mxu1  ;;  %v3548_v28 = vld [vmem:[#allocation11 + $0x28] sm:$0xff] }
 0x12a   :  { %v3333_v38 = vadd.f32 %v2454_v37, %v2099_v23  ;;  %v179_v39 = vpop.f32.mrb[3].mxu1  ;;  %5156 = vst [vmem:[#allocation41_spill] sm:$0xff] %v3548_v28  ;;  %v3563_v37 = vld [vmem:[#allocation11 + $0x18] sm:$0xff] }
 0x12b   :  { %2815 = vmatpush3.bf16.msra.mxu1 %v2814_v29  ;;  %v3335_v40 = vadd.f32 %v2099_v23, %v179_v39  ;;  %v3550_v29 = vld [vmem:[#allocation11] sm:$0xff]  ;;  %5159 = vst [vmem:[#allocation44_spill] sm:$0xff] %v3563_v37 }
 0x12c   :  { %5157 = vst [vmem:[#allocation42_spill] sm:$0xff] %v3550_v29 }
 0x12e   :  { %2460 = vmatmul.mubr.msk.f32.vlgmr.msra.gmra.mrb[4].mxu1 %vm4949_vm5, %v2120_v30  ;;  %vm3524_vm5 = vcmp.eq.s32.totalorder %v3505_v17, %v3322_v22  ;;  %v3552_v30 = vld [vmem:[#allocation11 + $0x20] sm:$0xff] }
 0x12f   :  { %2494 = vmatprep.mubr.msk.f32.mxu1 %vm3343_vm6, %v4954_v44  ;;  %v5150_v20 = vsel %vm3524_vm5, 4294967295, %v5149_v20  ;;  %5158 = vst [vmem:[#allocation43_spill] sm:$0xff] %v3552_v30 }
 0x130   :  { %5151 = vst [vmem:[#allocation38_spill] sm:$0xff] %v5150_v20 }
 0x140   :  { %v390_v31 = vpop.permute.xlu1 %389 }
 0x141   :  { %3037 = vrcp.f32 %v390_v31 }
 0x145   :  { %v3331_v32 = vpop.permute.xlu1 %1188 }
 0x146   :  { %5104 = vst [vmem:[#allocation21_spill] sm:$0xff] %v3331_v32 }
 0x149   :  { %v1274_v33 = vpop.permute.xlu1 %1273 }
 0x14a   :  { %v1275_v34 = vsub.s32 %v2177_v10, %v1274_v33  ;;  %v5137_v10 = vmov 0 }
 0x14b   :  { %v3038_v45 = vpop.eup %3037  ;;  %v5138_v10 = vsel %vm3476_vm0, 4294967295, %v5137_v10 }
 0x14c   :  { %v1276_v35 = vcvt.s32.f32 %v1275_v34  ;;  %5139 = vst [vmem:[#allocation34_spill] sm:$0xff] %v5138_v10 }
 0x14e   :  { %v1277_v36 = vmax.f32 %v1276_v35, 1.0 }
 0x150   :  { %1280 = vperm.xlu0 %3034, %v1277_v36  }
 0x201   :  { %v378_v46 = vpop.f32.mrb[4].mxu1 }
 0x202   :  { %v3353_v48 = vmul.f32 %v3038_v45, %v378_v46  ;;  %v2461_v50 = vpop.f32.mrb[5].mxu1  ;;  %v3568_v45 = vld [vmem:[#allocation11 + $0x38] sm:$0xff]  ;;  %v3570_v46 = vld [vmem:[#allocation11 + $0x10] sm:$0xff] }
 0x203   :  { %5160 = vst [vmem:[#allocation45_spill] sm:$0xff] %v3568_v45  ;;  %5161 = vst [vmem:[#allocation46_spill] sm:$0xff] %v3570_v46  ;;  %v3574_v50 = vld [vmem:[#allocation11 + $0x30] sm:$0xff] }
 0x204   :  { %5109 = vst [vmem:[#allocation24_spill] sm:$0xff] %v3353_v48  ;;  %v3357_v51 = vadd.f32 %v395_v47, %v3353_v48  ;;  %394 = vst [vmem:[#allocation13] sm:$0xf] %v3353_v48 }
 0x205   :  { %5162 = vst [vmem:[#allocation47_spill] sm:$0xff] %v3574_v50 }
 0x206   :  { %v404_v52 = vrot.slane %v3357_v51, %v4951_v49 }
 0x208   :  { %v2816_v53 = vpack.c.bf16 %v404_v52, %v404_v52 }
 0x20a   :  { %2817 = vmatprep.subr.bf16.mxu1 %v2816_v53 }
 0x20b   :  { %2819 = vmatpush3.bf16.xpose.msra.mxu1 %v2816_v53 }
 0x20c   :  { %2821 = vmatprep.subr.bf16.mxu1 %v2816_v53 }
 0x213   :  { %2823 = vmatpush3.bf16.xpose.msra.mxu1 %v2816_v53 }
 0x214   :  { %2825 = vmatprep.subr.bf16.mxu1 %v2816_v53 }
 0x21b   :  { %2827 = vmatpush3.bf16.xpose.msra.mxu1 %v2816_v53 }
 0x21c   :  { %2829 = vmatprep.subr.bf16.mxu1 %v2816_v53 }
 0x223   :  { %2831 = vmatpush3.bf16.xpose.msra.mxu1 %v2816_v53 }
 0x224   :  { %2833 = vmatprep.subr.bf16.mxu1 %v2816_v53 }
 0x22b   :  { %2835 = vmatpush3.bf16.xpose.msra.mxu1 %v2816_v53 }
 0x22c   :  { %2837 = vmatprep.subr.bf16.mxu1 %v2816_v53 }
 0x233   :  { %2839 = vmatpush3.bf16.xpose.msra.mxu1 %v2816_v53 }
 0x234   :  { %2841 = vmatprep.subr.bf16.mxu1 %v2816_v53 }
 0x23b   :  { %2843 = vmatpush3.bf16.xpose.msra.mxu1 %v2816_v53 }
 0x23c   :  { %2845 = vmatprep.subr.bf16.mxu1 %v2816_v53 }
 0x243   :  { %2847 = vmatpush3.bf16.xpose.msra.mxu1 %v2816_v53 }
 0x24a   :  { %2495 = vmatmul.mubr.msk.f32.vlgmr.msra.gmra.mrb[6].mxu1 %vm3371_vm7, %v4954_v44 }
 0x24b   :  { %2497 = vmatprep.mubr.msk.f32.mxu1 %vm3380_vm8, %v4954_v44 }
 0x24e   :  { %2498 = vmatmul.mubr.msk.f32.gmra.mrb[8].mxu1 %vm3395_vm9, %v4954_v44 }
 0x24f   :  { %2500 = vmatprep.mubr.msk.f32.mxu1 %vm3404_vm10, %v4954_v44 }
 0x252   :  { %2501 = vmatmul.mubr.msk.f32.gmra.mrb[10].mxu1 %vm3419_vm11, %v4954_v44 }
 0x253   :  { %2503 = vmatprep.mubr.msk.f32.mxu1 %vm3428_vm12, %v4954_v44 }
 0x256   :  { %2504 = vmatmul.mubr.msk.f32.gmra.mrb[12].mxu1 %vm3443_vm13, %v4954_v44 }
 0x257   :  { %2506 = vmatprep.mubr.msk.f32.mxu1 %vm3452_vm14, %v4954_v44 }
 0x25a   :  { %2507 = vmatmul.mubr.msk.f32.gmra.mrb[14].mxu1 %vm3467_vm15, %v4954_v44 }
 0x25b   :  { %2509 = vmatprep.mubr.msk.f32.mxu1 %vm3476_vm0, %v4954_v44 }
 0x25e   :  { %2510 = vmatmul.mubr.msk.f32.gmra.mrb[16].mxu1 %vm3491_vm2, %v4954_v44 }
 0x25f   :  { %2512 = vmatprep.mubr.msk.f32.mxu1 %vm3500_vm3, %v4954_v44 }
 0x262   :  { %2513 = vmatmul.mubr.msk.f32.gmra.mrb[18].mxu1 %vm3515_vm4, %v4954_v44 }
 0x263   :  { %2515 = vmatprep.mubr.msk.f32.mxu1 %vm3524_vm5, %v4954_v44 }
 0x266   :  { %2516 = vmatmul.mubr.msk.f32.gmra.mrb[20].mxu1 %vm3536_vm1, %v4954_v44 }
 0x267   :  { %2606 = vmatprep.mubr.msk.f32.mxu1 %vm3343_vm6, %v4954_v44  ;;  %v3594_v44 = vld [vmem:[#allocation11 + $0x40] sm:$0xff] }
 0x268   :  { %5164 = vst [vmem:[#allocation49_spill] sm:$0xff] %v3594_v44 }
 0x31d   :  { %v2496_v23 = vpop.f32.mrb[6].mxu1 }
 0x31e   :  { %v471_v24 = vpop.f32.mrb[7].mxu1  ;;  %v3555_v33 = vadd.f32 %v2496_v23, %v3546_v27 }
 0x31f   :  { %v3561_v36 = vadd.f32 %v471_v24, %v3550_v29 }
 0x321   :  { %v2499_v25 = vpop.f32.mrb[8].mxu1 }
 0x322   :  { %v481_v26 = vpop.f32.mrb[9].mxu1  ;;  %v3579_v23 = vadd.f32 %v2499_v25, %v3563_v37 }
 0x325   :  { %v2502_v31 = vpop.f32.mrb[10].mxu1 }
 0x326   :  { %v3558_v34 = vadd.f32 %v2502_v31, %v3548_v28  ;;  %v491_v35 = vpop.f32.mrb[11].mxu1 }
 0x327   :  { %v3566_v39 = vadd.f32 %v491_v35, %v3552_v30  ;;  %v3585_v35 = vadd.f32 %v481_v26, %v3570_v46  ;;  %v3607_v46 = vld [vmem:[#allocation11 + $0x50] sm:$0xff] }
 0x328   :  { %v551_v47 = vmax.f32 %v3555_v33, %v3558_v34  ;;  %5166 = vst [vmem:[#allocation51_spill] sm:$0xff] %v3607_v46 }
 0x329   :  { %v550_v52 = vmax.f32 %v3561_v36, %v3566_v39  ;;  %v2505_v53 = vpop.f32.mrb[12].mxu1 }
 0x32a   :  { %v3582_v24 = vadd.f32 %v2505_v53, %v3568_v45  ;;  %v501_v31 = vpop.f32.mrb[13].mxu1 }
 0x32b   :  { %v3588_v49 = vadd.f32 %v501_v31, %v3574_v50  ;;  %v3604_v31 = vld [vmem:[#allocation11 + $0x58] sm:$0xff] }
 0x32c   :  { %v553_v41 = vmax.f32 %v3579_v23, %v3582_v24  ;;  %5165 = vst [vmem:[#allocation50_spill] sm:$0xff] %v3604_v31 }
 0x32d   :  { %v552_v25 = vmax.f32 %v3585_v35, %v3588_v49  ;;  %v2508_v14 = vpop.f32.mrb[14].mxu1 }
 0x32e   :  { %v3599_v53 = vadd.f32 %v2508_v14, %v3590_v15  ;;  %v511_v45 = vpop.f32.mrb[15].mxu1  ;;  %v3616_v15 = vld [vmem:[#allocation11 + $0x68] sm:$0xff] }
 0x32f   :  { %v3602_v26 = vadd.f32 %v511_v45, %v3594_v44  ;;  %5167 = vst [vmem:[#allocation52_spill] sm:$0xff] %v3616_v15  ;;  %v3619_v44 = vld [vmem:[#allocation11 + $0x60] sm:$0xff] }
 0x330   :  { %v555_v50 = vmax.f32 %v551_v47, %v3599_v53  ;;  %5168 = vst [vmem:[#allocation53_spill] sm:$0xff] %v3619_v44 }
 0x331   :  { %v554_v37 = vmax.f32 %v550_v52, %v3602_v26  ;;  %v2511_v30 = vpop.f32.mrb[16].mxu1 }
 0x332   :  { %v3611_v29 = vadd.f32 %v2511_v30, %v3604_v31  ;;  %v521_v28 = vpop.f32.mrb[17].mxu1  ;;  %v3628_v31 = vld [vmem:[#allocation11 + $0x78] sm:$0xff] }
 0x333   :  { %v3614_v14 = vadd.f32 %v521_v28, %v3607_v46  ;;  %v3631_v46 = vld [vmem:[#allocation11 + $0x70] sm:$0xff] }
 0x334   :  { %v557_v45 = vmax.f32 %v553_v41, %v3611_v29  ;;  %5169 = vst [vmem:[#allocation54_spill] sm:$0xff] %v3631_v46 }
 0x335   :  { %v556_v47 = vmax.f32 %v552_v25, %v3614_v14  ;;  %v2514_v27 = vpop.f32.mrb[18].mxu1 }
 0x336   :  { %v3623_v43 = vadd.f32 %v2514_v27, %v3616_v15  ;;  %v531_v52 = vpop.f32.mrb[19].mxu1  ;;  %v5271_v0 = vld [vmem:[#allocation52_spill] sm:$0xff] }
 0x337   :  { %v3626_v30 = vadd.f32 %v531_v52, %v3619_v44 }
 0x338   :  { %v559_v28 = vmax.f32 %v555_v50, %v3623_v43 }
 0x339   :  { %v558_v41 = vmax.f32 %v554_v37, %v3626_v30  ;;  %v2517_v21 = vpop.f32.mrb[20].mxu1 }
 0x33a   :  { %v3635_v20 = vadd.f32 %v2517_v21, %v3628_v31  ;;  %v541_v25 = vpop.f32.mrb[21].mxu1  ;;  %v3645_v21 = vcvt.s32.f32 %v3364_v54  ;;  %v3666_v54 = vcvt.s32.f32 %v3433_v3 }
 0x33b   :  { %v562_v22 = vmax.f32 %v558_v41, %v559_v28  ;;  %v3638_v27 = vadd.f32 %v541_v25, %v3631_v46  ;;  %v3648_v28 = vcvt.s32.f32 %v3367_v55  ;;  %v3669_v55 = vcvt.s32.f32 %v3448_v5 }
 0x33c   :  { %v561_v52 = vmax.f32 %v557_v45, %v3635_v20  ;;  %v3651_v45 = vcvt.s32.f32 %v3376_v57  ;;  %v3672_v57 = vcvt.s32.f32 %v3457_v7  ;;  %v3732_v41 = vcvt.s32.f32 %v3520_v19 }
 0x33d   :  { %v560_v44 = vmax.f32 %v556_v47, %v3638_v27 }
 0x33e   :  { %5170 = vst [vmem:[#allocation55_spill] sm:$0xff] %v3672_v57 }
 0x33f   :  { %v563_v15 = vmax.f32 %v560_v44, %v561_v52  ;;  %v3663_v44 = vcvt.s32.f32 %v3424_v1  ;;  %v626_v1 = vstv %s3642_s27 }
 0x341   :  { %v564_v50 = vmax.f32 %v562_v22, %v563_v15  ;;  %v3654_v15 = vcvt.s32.f32 %v3385_v59  ;;  %v3657_v22 = vcvt.s32.f32 %v3400_v61  ;;  %v3678_v61 = vcvt.s32.f32 %v3481_v11 }
 0x343   :  { %v565_v32 = vrot.slane %v564_v50, 4  ;;  %5172 = vst [vmem:[#allocation57_spill] sm:$0xff] %v3678_v61 }
 0x345   :  { %v566_v18 = vmax.f32 %v564_v50, %v565_v32  ;;  %v3660_v32 = vcvt.s32.f32 %v3409_v63  ;;  %v3681_v63 = vcvt.s32.f32 %v3339_v42 }
 0x347   :  { %v567_v37 = vrot.slane %v566_v18, 2 }
 0x349   :  { %v568_v16 = vmax.f32 %v566_v18, %v567_v37  ;;  %v3675_v18 = vcvt.s32.f32 %v3472_v9 }
 0x34b   :  { %v569_v47 = vrot.slane %v568_v16, 1  ;;  %5171 = vst [vmem:[#allocation56_spill] sm:$0xff] %v3675_v18 }
 0x34d   :  { %v570_v59 = vmax.f32 %v568_v16, %v569_v47 }
 0x34f   :  { %vm578_vm15 = vcmp.eq.f32.partialorder %v3582_v24, %v570_v59  ;;  %vm580_vm13 = vcmp.eq.f32.partialorder %v3599_v53, %v570_v59  ;;  %vm582_vm1 = vcmp.eq.f32.partialorder %v3611_v29, %v570_v59  ;;  %vm584_vm4 = vcmp.eq.f32.partialorder %v3623_v43, %v570_v59 }
 0x350   :  { %vm5173_vm0 = vcmp.eq.f32.partialorder %v3561_v36, %v570_v59  ;;  %vm5174_vm14 = vcmp.eq.f32.partialorder %v3555_v33, %v570_v59  ;;  %vm5175_vm6 = vcmp.eq.f32.partialorder %v3585_v35, %v570_v59  ;;  %vm5176_vm5 = vcmp.eq.f32.partialorder %v3579_v23, %v570_v59 }
 0x351   :  { %v587_v3 = vsel %vm5173_vm0, %v3681_v63, 128.0  ;;  %v588_v5 = vsel %vm5174_vm14, %v3645_v21, 128.0  ;;  %v589_v7 = vsel %vm5175_vm6, %v3648_v28, 128.0  ;;  %v590_v9 = vsel %vm5176_vm5, %v3651_v45, 128.0 }
 0x352   :  { %vm5177_vm3 = vcmp.eq.f32.partialorder %v3566_v39, %v570_v59  ;;  %vm5178_vm2 = vcmp.eq.f32.partialorder %v3558_v34, %v570_v59  ;;  %vm5179_vm0 = vcmp.eq.f32.partialorder %v3588_v49, %v570_v59  ;;  %v594_v36 = vsel %vm578_vm15, %v3663_v44, 128.0 }
 0x353   :  { %v591_v11 = vsel %vm5177_vm3, %v3654_v15, 128.0  ;;  %v592_v16 = vsel %vm5178_vm2, %v3657_v22, 128.0  ;;  %v593_v33 = vsel %vm5179_vm0, %v3660_v32, 128.0  ;;  %v629_v35 = vrot.slane %v3357_v51, 7 }
 0x354   :  { %v3726_v23 = vcvt.s32.f32 %v3496_v13  ;;  %v3729_v39 = vcvt.s32.f32 %v3505_v17  ;;  %vm5182_vm5 = vcmp.eq.f32.partialorder %v3602_v26, %v570_v59  ;;  %v596_v34 = vsel %vm580_vm13, %v3669_v55, 128.0 }
 0x355   :  { %v595_v49 = vsel %vm5182_vm5, %v3666_v54, 128.0  ;;  %vm3740_vm6 = vcmp.eq.s32.totalorder %v626_v1, 1  ;;  %v5017_v51 = vsub.s32 1, %v3339_v42  ;;  %v603_v13 = vmin.f32 %v587_v3, %v591_v11 }
 0x356   :  { %5180 = vst [vmem:[#allocation58_spill] sm:$0xff] %v3726_v23  ;;  %5181 = vst [vmem:[#allocation59_spill] sm:$0xff] %v3729_v39  ;;  %v604_v17 = vmin.f32 %v588_v5, %v592_v16  ;;  %v605_v25 = vmin.f32 %v589_v7, %v593_v33  ;;  %v606_v52 = vmin.f32 %v590_v9, %v594_v36  ;;  %v598_v26 = vsel %vm582_vm1, %v3675_v18, 128.0 }
 0x357   :  { %vm5185_vm14 = vcmp.eq.f32.partialorder %v3614_v14, %v570_v59  ;;  %vm5186_vm13 = vcmp.eq.f32.partialorder %v3626_v30, %v570_v59  ;;  %v624_v50 = vadd.f32 %v570_v59, %v3353_v48  ;;  %v607_v37 = vmin.f32 %v603_v13, %v595_v49 }
 0x358   :  { %v597_v19 = vsel %vm5185_vm14, %v3672_v57, 128.0  ;;  %v599_v53 = vsel %vm5186_vm13, %v3678_v61, 128.0  ;;  %v608_v47 = vmin.f32 %v604_v17, %v596_v34  ;;  %v610_v3 = vmin.f32 %v606_v52, %v598_v26  ;;  %v5201_v26 = vld [vmem:[#allocation21_spill] sm:$0xff] }
 0x359   :  { %v609_v1 = vmin.f32 %v605_v25, %v597_v19  ;;  %v600_v5 = vsel %vm584_vm4, %v3726_v23, 128.0  ;;  %vm5187_vm15 = vcmp.eq.f32.partialorder %v3638_v27, %v570_v59  ;;  %vm5188_vm1 = vcmp.eq.f32.partialorder %v3635_v20, %v570_v59  ;;  %v5199_v19 = vld [vmem:[#allocation37_spill] sm:$0xff] }
 0x35a   :  { %v601_v14 = vsel %vm5187_vm15, %v3729_v39, 128.0  ;;  %v602_v29 = vsel %vm5188_vm1, %v3732_v41, 128.0  ;;  %v3766_v30 = vsel %vm3740_vm6, %v624_v50, %v629_v35  ;;  %v611_v7 = vmin.f32 %v607_v37, %v599_v53  ;;  %v5202_v53 = vld [vmem:[#allocation20_spill] sm:$0xff]  ;;  %v5203_v50 = vld [vmem:[#allocation38_spill] sm:$0xff]  ;;  %v5205_v37 = vld [vmem:[#allocation39_spill] sm:$0xff] }
 0x35b   :  { %v612_v9 = vmin.f32 %v608_v47, %v600_v5  ;;  %v613_v11 = vmin.f32 %v609_v1, %v601_v14  ;;  %v614_v16 = vmin.f32 %v610_v3, %v602_v29  ;;  %v639_v43 = vrot.slane %v3766_v30, %v5017_v51  ;;  %v5210_v3 = vld [vmem:[#allocation23_spill] sm:$0xff] }
 0x35c   :  { %v5189_v17 = vmov 0.0|0.0   ;;  %v5190_v25 = vmov 1.0   ;;  %v5191_v52 = vpack.c.bf16 %v3333_v38, %v3335_v40  ;;  %vm5192_vm2 = vnez %v5129_v4  ;;  %v5197_v38 = vld [vmem:[#allocation36_spill] sm:$0xff]  ;;  %v1193_v40 = vpop.permute.xlu0 %1192 }
 0x35d   :  { %v615_v33 = vmin.f32 %v611_v7, %v612_v9  ;;  %v616_v36 = vmin.f32 %v613_v11, %v614_v16  ;;  %v2848_v27 = vpack.c.bf16 %v639_v43, %v639_v43  ;;  %vm5193_vm3 = vnez %v5132_v6  ;;  %v5212_v11 = vld [vmem:[#allocation40_spill] sm:$0xff]  ;;  %v5213_v43 = vld [vmem:[#allocation41_spill] sm:$0xff] }
 0x35e   :  { %vm5194_vm4 = vnez %v5135_v8  ;;  %vm5195_vm0 = vnez %v5138_v10  ;;  %vm5196_vm5 = vnez %v5141_v12  ;;  %vm5198_vm6 = vnez %v5197_v38 }
 0x35f   :  { %v617_v49 = vmin.f32 %v615_v33, %v616_v36  ;;  %2849 = vmatprep.subr.bf16.mxu0 %v2848_v27  ;;  %vm5200_vm14 = vnez %v5199_v19  ;;  %vm1190_vm13 = vcmp.ge.s32.totalorder %v5202_v53, %v5201_v26  ;;  %vm5204_vm15 = vnez %v5203_v50  ;;  %v5225_v50 = vld [vmem:[#allocation53_spill] sm:$0xff] }
 0x360   :  { %2851 = vmatpush3.bf16.xpose.msra.mxu0 %v2848_v27  ;;  %vm1194_vm1 = vcmp.lt.s32.totalorder %v5202_v53, %v1193_v40  ;;  %v5207_v47 = vmov 0.0   ;;  %v5220_v53 = vld [vmem:[#allocation48_spill] sm:$0xff] }
 0x361   :  { %v618_v34 = vrot.slane %v617_v49, 4  ;;  %2853 = vmatprep.subr.bf16.mxu0 %v2848_v27 }
 0x363   :  { %v619_v20 = vmin.f32 %v617_v49, %v618_v34  ;;  %v5215_v34 = vld [vmem:[#allocation43_spill] sm:$0xff] }
 0x365   :  { %v620_v59 = vrot.slane %v619_v20, 2 }
 0x367   :  { %v621_v35 = vmin.f32 %v619_v20, %v620_v59 }
 0x368   :  { %2855 = vmatpush3.bf16.xpose.msra.mxu0 %v2848_v27 }
 0x369   :  { %v622_v24 = vrot.slane %v621_v35, 1  ;;  %2857 = vmatprep.subr.bf16.mxu0 %v2848_v27 }
 0x36b   :  { %v623_v13 = vmin.f32 %v621_v35, %v622_v24 }
 0x36d   :  { %632 = vst [vmem:[#allocation3 + $0x1] sm:$0x1] %v623_v13  ;;  %v5216_v13 = vld [vmem:[#allocation44_spill] sm:$0xff] }
 0x370   :  { %2859 = vmatpush3.bf16.xpose.msra.mxu0 %v2848_v27 }
 0x371   :  { %2861 = vmatprep.subr.bf16.mxu0 %v2848_v27 }
 0x378   :  { %2863 = vmatpush3.bf16.xpose.msra.mxu0 %v2848_v27 }
 0x379   :  { %2865 = vmatprep.subr.bf16.mxu0 %v2848_v27 }
 0x380   :  { %2867 = vmatpush3.bf16.xpose.msra.mxu0 %v2848_v27 }
 0x381   :  { %2869 = vmatprep.subr.bf16.mxu0 %v2848_v27 }
 0x388   :  { %2871 = vmatpush3.bf16.xpose.msra.mxu0 %v2848_v27 }
 0x389   :  { %2873 = vmatprep.subr.bf16.mxu0 %v2848_v27 }
 0x390   :  { %2875 = vmatpush3.bf16.xpose.msra.mxu0 %v2848_v27 }
 0x391   :  { %2877 = vmatprep.subr.bf16.mxu0 %v2848_v27 }
 0x398   :  { %2879 = vmatpush3.bf16.xpose.msra.mxu0 %v2848_v27  ;;  %v5214_v27 = vld [vmem:[#allocation42_spill] sm:$0xff] }
 0x399   :  { %2912 = vmatprep.subr.bf16.mxu0 %v5189_v17 }
 0x39f   :  { %2551 = vmatmul.mubr.msk.f32.vlgmr.msra.gmra.mrb[0].mxu0 %vm3371_vm7, %v5190_v25 }
 0x3a0   :  { %2914 = vmatpush3.bf16.msra.mxu0 %v5191_v52  ;;  %2553 = vmatprep.mubr.msk.f32.mxu0 %vm3380_vm8, %v5190_v25  ;;  %v5217_v52 = vld [vmem:[#allocation45_spill] sm:$0xff] }
 0x3a3   :  { %2554 = vmatmul.mubr.msk.f32.gmra.mrb[2].mxu0 %vm3395_vm9, %v5190_v25 }
 0x3a4   :  { %2556 = vmatprep.mubr.msk.f32.mxu0 %vm3404_vm10, %v5190_v25 }
 0x3a7   :  { %2557 = vmatmul.mubr.msk.f32.gmra.mrb[4].mxu0 %vm3419_vm11, %v5190_v25 }
 0x3a8   :  { %2559 = vmatprep.mubr.msk.f32.mxu0 %vm3428_vm12, %v5190_v25 }
 0x3ab   :  { %2560 = vmatmul.mubr.msk.f32.gmra.mrb[6].mxu0 %vm5192_vm2, %v5190_v25 }
 0x3ac   :  { %2562 = vmatprep.mubr.msk.f32.mxu0 %vm5193_vm3, %v5190_v25 }
 0x3af   :  { %2563 = vmatmul.mubr.msk.f32.gmra.mrb[8].mxu0 %vm5194_vm4, %v5190_v25  ;;  %vm5211_vm4 = vnez %v5210_v3 }
 0x3b0   :  { %2565 = vmatprep.mubr.msk.f32.mxu0 %vm5195_vm0, %v5190_v25  ;;  %vm1195_vm0 = vmand %vm1190_vm13, %vm1194_vm1 }
 0x3b1   :  { %v2178_v1 = vsel %vm1195_vm0, 1.0, %v5207_v47 }
 0x3b3   :  { %2566 = vmatmul.mubr.msk.f32.gmra.mrb[10].mxu0 %vm5196_vm5, %v5190_v25  ;;  %vm5206_vm5 = vnez %v5205_v37 }
 0x3b4   :  { %2568 = vmatprep.mubr.msk.f32.mxu0 %vm5198_vm6, %v5190_v25  ;;  %vm5208_vm6 = vmmov 0  }
 0x3b7   :  { %2569 = vmatmul.mubr.msk.f32.gmra.mrb[12].mxu0 %vm5200_vm14, %v5190_v25  ;;  %vm5209_vm14 = vcmask 130048  }
 0x3b8   :  { %2571 = vmatprep.mubr.msk.f32.mxu0 %vm5204_vm15, %v5190_v25 }
 0x3bb   :  { %2572 = vmatmul.mubr.msk.f32.gmra.mrb[14].mxu0 %vm5206_vm5, %v5190_v25 }
 0x3bc   :  { %2634 = vmatprep.mubr.msk.f32.mxu0 %vm5208_vm6, %v5207_v47  ;;  %v5218_v47 = vld [vmem:[#allocation46_spill] sm:$0xff] }
 0x3bf   :  { %2635 = vmatmul.mubr.msk.f32.vlgmr.msra.gmra.mrb[16].mxu0 %vm5209_vm14, %v2178_v1 }
 0x3c0   :  { %2669 = vmatprep.mubr.msk.f32.mxu0 %vm5211_vm4, %v5190_v25 }
 0x472   :  { %v2552_v5 = vpop.f32.mrb[0].mxu0 }
 0x473   :  { %v706_v14 = vpop.f32.mrb[1].mxu0  ;;  %v3831_v16 = vadd.f32 %v2552_v5, %v5212_v11  ;;  %v5219_v5 = vld [vmem:[#allocation47_spill] sm:$0xff] }
 0x474   :  { %v3837_v49 = vadd.f32 %v706_v14, %v5214_v27  ;;  %v5223_v11 = vld [vmem:[#allocation51_spill] sm:$0xff] }
 0x476   :  { %v2555_v29 = vpop.f32.mrb[2].mxu0 }
 0x477   :  { %v716_v7 = vpop.f32.mrb[3].mxu0  ;;  %v3847_v17 = vadd.f32 %v2555_v29, %v5216_v13 }
 0x478   :  { %v3853_v1 = vadd.f32 %v716_v7, %v5218_v47  ;;  %v5222_v47 = vld [vmem:[#allocation50_spill] sm:$0xff] }
 0x47a   :  { %v2558_v9 = vpop.f32.mrb[4].mxu0 }
 0x47b   :  { %v3834_v33 = vadd.f32 %v2558_v9, %v5213_v43  ;;  %v726_v36 = vpop.f32.mrb[5].mxu0 }
 0x47c   :  { %v3840_v20 = vadd.f32 %v726_v36, %v5215_v34  ;;  %v1281_v34 = vpop.permute.xlu0 %1280 }
 0x47d   :  { %v786_v59 = vmax.f32 %v3831_v16, %v3834_v33  ;;  %3039 = vrcp.f32 %v1281_v34 }
 0x47e   :  { %v785_v35 = vmax.f32 %v3837_v49, %v3840_v20  ;;  %v2561_v24 = vpop.f32.mrb[6].mxu0 }
 0x47f   :  { %v3850_v40 = vadd.f32 %v2561_v24, %v5217_v52  ;;  %v736_v26 = vpop.f32.mrb[7].mxu0  ;;  %v5221_v24 = vld [vmem:[#allocation49_spill] sm:$0xff] }
 0x480   :  { %v3856_v14 = vadd.f32 %v736_v26, %v5219_v5 }
 0x481   :  { %v788_v9 = vmax.f32 %v3847_v17, %v3850_v40 }
 0x482   :  { %v787_v36 = vmax.f32 %v3853_v1, %v3856_v14  ;;  %v2564_v51 = vpop.f32.mrb[8].mxu0 }
 0x483   :  { %v3863_v29 = vadd.f32 %v2564_v51, %v5220_v53  ;;  %v746_v13 = vpop.f32.mrb[9].mxu0 }
 0x484   :  { %v3866_v52 = vadd.f32 %v746_v13, %v5221_v24  ;;  %v5224_v24 = vld [vmem:[#allocation52_spill] sm:$0xff] }
 0x485   :  { %v790_v7 = vmax.f32 %v786_v59, %v3863_v29 }
 0x486   :  { %v789_v26 = vmax.f32 %v785_v35, %v3866_v52  ;;  %v2567_v5 = vpop.f32.mrb[10].mxu0 }
 0x487   :  { %v3871_v27 = vadd.f32 %v2567_v5, %v5222_v47  ;;  %v756_v43 = vpop.f32.mrb[11].mxu0 }
 0x488   :  { %v3874_v3 = vadd.f32 %v756_v43, %v5223_v11 }
 0x489   :  { %v792_v51 = vmax.f32 %v788_v9, %v3871_v27 }
 0x48a   :  { %v791_v53 = vmax.f32 %v787_v36, %v3874_v3  ;;  %v2570_v13 = vpop.f32.mrb[12].mxu0 }
 0x48b   :  { %v3879_v37 = vadd.f32 %v2570_v13, %v5224_v24  ;;  %v766_v59 = vpop.f32.mrb[13].mxu0  ;;  %v3040_v24 = vpop.eup %3039 }
 0x48c   :  { %v3882_v35 = vadd.f32 %v766_v59, %v5225_v50  ;;  %v1287_v50 = vld [vmem:[#allocation11 + $0x6] sm:$0x1] }
 0x48d   :  { %v794_v5 = vmax.f32 %v790_v7, %v3879_v37 }
 0x48e   :  { %v793_v47 = vmax.f32 %v789_v26, %v3882_v35  ;;  %v2573_v34 = vpop.f32.mrb[14].mxu0 }
 0x48f   :  { %v3887_v43 = vadd.f32 %v2573_v34, %v3628_v31  ;;  %v776_v11 = vpop.f32.mrb[15].mxu0 }
 0x490   :  { %v797_v9 = vmax.f32 %v793_v47, %v794_v5  ;;  %v3890_v36 = vadd.f32 %v776_v11, %v3631_v46  ;;  %v5228_v11 = vsub.s32 0, %v3339_v42 }
 0x491   :  { %v796_v13 = vmax.f32 %v792_v51, %v3887_v43 }
 0x492   :  { %v795_v19 = vmax.f32 %v791_v53, %v3890_v36  ;;  %v1269_v59 = vpop.f32.mrb[16].mxu0 }
 0x493   :  { %v3894_v38 = vmul.f32 %v3040_v24, %v1269_v59  ;;  %v2636_v7 = vpop.f32.mrb[17].mxu0 }
 0x494   :  { %v798_v26 = vmax.f32 %v795_v19, %v796_v13  ;;  %v861_v13 = vstv %s3908_s29 }
 0x495   :  { %5226 = vst [vmem:[#allocation21_spill] sm:$0xff] %v3894_v38  ;;  %v3897_v34 = vadd.f32 %v1287_v50, %v3894_v38  ;;  %1286 = vst [vmem:[#allocation13 + $0x4] sm:$0xf] %v3894_v38 }
 0x496   :  { %v799_v47 = vmax.f32 %v797_v9, %v798_v26 }
 0x497   :  { %5227 = vst [vmem:[#allocation60_spill] sm:$0xff] %v3897_v34  ;;  %v1296_v51 = vrot.slane %v3897_v34, %v5228_v11 }
 0x498   :  { %v800_v5 = vrot.slane %v799_v47, 4 }
 0x499   :  { %v3903_v46 = vpack.c.bf16 %v1296_v51, %v1296_v51  ;;  %v864_v51 = vrot.slane %v3766_v30, 7 }
 0x49a   :  { %v801_v53 = vmax.f32 %v799_v47, %v800_v5 }
 0x49b   :  { %2916 = vmatprep.subr.bf16.mxu0 %v3903_v46 }
 0x49c   :  { %v802_v24 = vrot.slane %v801_v53, 2  ;;  %2918 = vmatpush3.bf16.xpose.msra.mxu0 %v3903_v46 }
 0x49d   :  { %2920 = vmatprep.subr.bf16.mxu0 %v3903_v46 }
 0x49e   :  { %v803_v19 = vmax.f32 %v801_v53, %v802_v24 }
 0x4a0   :  { %v804_v50 = vrot.slane %v803_v19, 1 }
 0x4a2   :  { %v805_v9 = vmax.f32 %v803_v19, %v804_v50 }
 0x4a4   :  { %2922 = vmatpush3.bf16.xpose.msra.mxu0 %v3903_v46  ;;  %vm815_vm6 = vcmp.eq.f32.partialorder %v3863_v29, %v805_v9  ;;  %vm817_vm13 = vcmp.eq.f32.partialorder %v3871_v27, %v805_v9  ;;  %vm819_vm1 = vcmp.eq.f32.partialorder %v3879_v37, %v805_v9  ;;  %vm5229_vm15 = vcmp.eq.f32.partialorder %v3837_v49, %v805_v9 }
 0x4a5   :  { %2924 = vmatprep.subr.bf16.mxu0 %v3903_v46  ;;  %v822_v59 = vsel %vm5229_vm15, %v3681_v63, 128.0  ;;  %vm5230_vm0 = vcmp.eq.f32.partialorder %v3831_v16, %v805_v9  ;;  %vm5231_vm14 = vcmp.eq.f32.partialorder %v3853_v1, %v805_v9  ;;  %vm5232_vm3 = vcmp.eq.f32.partialorder %v3847_v17, %v805_v9 }
 0x4a6   :  { %v823_v7 = vsel %vm5230_vm0, %v3645_v21, 128.0  ;;  %v824_v26 = vsel %vm5231_vm14, %v3648_v28, 128.0  ;;  %v825_v47 = vsel %vm5232_vm3, %v3651_v45, 128.0  ;;  %vm5233_vm4 = vcmp.eq.f32.partialorder %v3840_v20, %v805_v9 }
 0x4a7   :  { %v826_v11 = vsel %vm5233_vm4, %v3654_v15, 128.0  ;;  %vm5234_vm5 = vcmp.eq.f32.partialorder %v3834_v33, %v805_v9  ;;  %vm5235_vm15 = vcmp.eq.f32.partialorder %v3856_v14, %v805_v9  ;;  %vm5236_vm0 = vcmp.eq.f32.partialorder %v3850_v40, %v805_v9 }
 0x4a8   :  { %v827_v49 = vsel %vm5234_vm5, %v3657_v22, 128.0  ;;  %v828_v16 = vsel %vm5235_vm15, %v3660_v32, 128.0  ;;  %v829_v1 = vsel %vm5236_vm0, %v3663_v44, 128.0  ;;  %vm5237_vm3 = vcmp.eq.f32.partialorder %v3866_v52, %v805_v9 }
 0x4a9   :  { %v830_v17 = vsel %vm5237_vm3, %v3666_v54, 128.0  ;;  %v831_v20 = vsel %vm815_vm6, %v3669_v55, 128.0  ;;  %vm3960_vm4 = vcmp.eq.s32.totalorder %v861_v13, 1  ;;  %v5021_v14 = vsub.s32 2, %v3339_v42 }
 0x4aa   :  { %v838_v5 = vmin.f32 %v822_v59, %v826_v11  ;;  %v839_v53 = vmin.f32 %v823_v7, %v827_v49  ;;  %v840_v40 = vmin.f32 %v824_v26, %v828_v16  ;;  %v841_v24 = vmin.f32 %v825_v47, %v829_v1 }
 0x4ab   :  { %vm5240_vm5 = vcmp.eq.f32.partialorder %v3874_v3, %v805_v9  ;;  %v833_v52 = vsel %vm817_vm13, %v3675_v18, 128.0  ;;  %vm5241_vm6 = vcmp.eq.f32.partialorder %v3882_v35, %v805_v9  ;;  %v859_v19 = vadd.f32 %v805_v9, %v3353_v48  ;;  %v5273_v48 = vld [vmem:[#allocation54_spill] sm:$0xff] }
 0x4ac   :  { %2926 = vmatpush3.bf16.xpose.msra.mxu0 %v3903_v46  ;;  %v832_v30 = vsel %vm5240_vm5, %v3672_v57, 128.0  ;;  %v834_v29 = vsel %vm5241_vm6, %v3678_v61, 128.0  ;;  %v842_v50 = vmin.f32 %v838_v5, %v830_v17  ;;  %v843_v13 = vmin.f32 %v839_v53, %v831_v20 }
 0x4ad   :  { %2928 = vmatprep.subr.bf16.mxu0 %v3903_v46  ;;  %v844_v59 = vmin.f32 %v840_v40, %v832_v30  ;;  %v845_v7 = vmin.f32 %v841_v24, %v833_v52  ;;  %v835_v3 = vsel %vm819_vm1, %v3726_v23, 128.0  ;;  %vm5242_vm14 = vcmp.eq.f32.partialorder %v3890_v36, %v805_v9  ;;  %v5251_v40 = vld [vmem:[#allocation37_spill] sm:$0xff]  ;;  %v5253_v24 = vld [vmem:[#allocation38_spill] sm:$0xff]  ;;  %v5255_v30 = vld [vmem:[#allocation39_spill] sm:$0xff] }
 0x4ae   :  { %v836_v27 = vsel %vm5242_vm14, %v3729_v39, 128.0  ;;  %vm5243_vm13 = vcmp.eq.f32.partialorder %v3887_v43, %v805_v9  ;;  %v3988_v26 = vsel %vm3960_vm4, %v859_v19, %v864_v51  ;;  %v846_v47 = vmin.f32 %v842_v50, %v834_v29  ;;  %v5257_v52 = vld [vmem:[#allocation23_spill] sm:$0xff] }
 0x4af   :  { %v837_v35 = vsel %vm5243_vm13, %v3732_v41, 128.0  ;;  %5244 = vst [vmem:[#allocation61_spill] sm:$0xff] %v3988_v26  ;;  %v847_v11 = vmin.f32 %v843_v13, %v835_v3  ;;  %v848_v49 = vmin.f32 %v844_v59, %v836_v27  ;;  %v874_v37 = vrot.slane %v3988_v26, %v5021_v14  ;;  %v5260_v27 = vld [vmem:[#allocation41_spill] sm:$0xff]  ;;  %v5267_v14 = vld [vmem:[#allocation48_spill] sm:$0xff] }
 0x4b0   :  { %v849_v16 = vmin.f32 %v845_v7, %v837_v35  ;;  %vm5245_vm1 = vnez %v5132_v6  ;;  %vm5246_vm15 = vnez %v5135_v8  ;;  %vm5247_vm0 = vnez %v5138_v10  ;;  %v5259_v7 = vld [vmem:[#allocation40_spill] sm:$0xff]  ;;  %v5270_v8 = vld [vmem:[#allocation51_spill] sm:$0xff] }
 0x4b1   :  { %v850_v1 = vmin.f32 %v846_v47, %v847_v11  ;;  %v2880_v36 = vpack.c.bf16 %v874_v37, %v874_v37  ;;  %vm5248_vm3 = vnez %v5141_v12  ;;  %vm5252_vm5 = vnez %v5251_v40  ;;  %v5261_v11 = vld [vmem:[#allocation42_spill] sm:$0xff] }
 0x4b2   :  { %v851_v17 = vmin.f32 %v848_v49, %v849_v16  ;;  %vm5254_vm6 = vnez %v5253_v24  ;;  %vm5256_vm14 = vnez %v5255_v30  ;;  %vm5258_vm13 = vnez %v5257_v52  ;;  %v5262_v16 = vld [vmem:[#allocation43_spill] sm:$0xff] }
 0x4b3   :  { %2881 = vmatprep.subr.bf16.mxu1 %v2880_v36  ;;  %v5266_v52 = vld [vmem:[#allocation47_spill] sm:$0xff] }
 0x4b4   :  { %v852_v20 = vmin.f32 %v850_v1, %v851_v17  ;;  %2930 = vmatpush3.bf16.xpose.msra.mxu0 %v3903_v46  ;;  %2883 = vmatpush3.bf16.xpose.msra.mxu1 %v2880_v36 }
 0x4b5   :  { %2932 = vmatprep.subr.bf16.mxu0 %v3903_v46  ;;  %2885 = vmatprep.subr.bf16.mxu1 %v2880_v36 }
 0x4b6   :  { %v853_v43 = vrot.slane %v852_v20, 4 }
 0x4b8   :  { %v854_v9 = vmin.f32 %v852_v20, %v853_v43  ;;  %v5263_v20 = vld [vmem:[#allocation44_spill] sm:$0xff] }
 0x4ba   :  { %v855_v51 = vrot.slane %v854_v9, 2 }
 0x4bc   :  { %v856_v33 = vmin.f32 %v854_v9, %v855_v51  ;;  %2934 = vmatpush3.bf16.xpose.msra.mxu0 %v3903_v46  ;;  %2887 = vmatpush3.bf16.xpose.msra.mxu1 %v2880_v36  ;;  %v5264_v9 = vld [vmem:[#allocation45_spill] sm:$0xff] }
 0x4bd   :  { %2936 = vmatprep.subr.bf16.mxu0 %v3903_v46  ;;  %2889 = vmatprep.subr.bf16.mxu1 %v2880_v36 }
 0x4be   :  { %v857_v5 = vrot.slane %v856_v33, 1 }
 0x4c0   :  { %v858_v53 = vmin.f32 %v856_v33, %v857_v5  ;;  %v5265_v5 = vld [vmem:[#allocation46_spill] sm:$0xff] }
 0x4c2   :  { %867 = vst [vmem:[#allocation3 + $0x2] sm:$0x1] %v858_v53 }
 0x4c4   :  { %2938 = vmatpush3.bf16.xpose.msra.mxu0 %v3903_v46  ;;  %2891 = vmatpush3.bf16.xpose.msra.mxu1 %v2880_v36 }
 0x4c5   :  { %2940 = vmatprep.subr.bf16.mxu0 %v3903_v46  ;;  %2893 = vmatprep.subr.bf16.mxu1 %v2880_v36 }
 0x4cc   :  { %2942 = vmatpush3.bf16.xpose.msra.mxu0 %v3903_v46  ;;  %2895 = vmatpush3.bf16.xpose.msra.mxu1 %v2880_v36 }
 0x4cd   :  { %2944 = vmatprep.subr.bf16.mxu0 %v3903_v46  ;;  %2897 = vmatprep.subr.bf16.mxu1 %v2880_v36 }
 0x4d4   :  { %2946 = vmatpush3.bf16.xpose.msra.mxu0 %v3903_v46  ;;  %2899 = vmatpush3.bf16.xpose.msra.mxu1 %v2880_v36  ;;  %v5249_v46 = vld [vmem:[#allocation36_spill] sm:$0xff] }
 0x4d5   :  { %2901 = vmatprep.subr.bf16.mxu1 %v2880_v36  ;;  %vm5250_vm4 = vnez %v5249_v46  ;;  %v5269_v46 = vld [vmem:[#allocation50_spill] sm:$0xff] }
 0x4db   :  { %2670 = vmatmul.mubr.msk.f32.vlgmr.msra.gmra.mrb[18].mxu0 %vm3371_vm7, %v5190_v25 }
 0x4dc   :  { %2672 = vmatprep.mubr.msk.f32.mxu0 %vm3380_vm8, %v5190_v25  ;;  %2903 = vmatpush3.bf16.xpose.msra.mxu1 %v2880_v36 }
 0x4dd   :  { %2905 = vmatprep.subr.bf16.mxu1 %v2880_v36 }
 0x4df   :  { %2673 = vmatmul.mubr.msk.f32.gmra.mrb[20].mxu0 %vm3395_vm9, %v5190_v25 }
 0x4e0   :  { %2675 = vmatprep.mubr.msk.f32.mxu0 %vm3404_vm10, %v5190_v25 }
 0x4e3   :  { %2676 = vmatmul.mubr.msk.f32.gmra.mrb[22].mxu0 %vm3419_vm11, %v5190_v25 }
 0x4e4   :  { %2678 = vmatprep.mubr.msk.f32.mxu0 %vm3428_vm12, %v5190_v25  ;;  %2907 = vmatpush3.bf16.xpose.msra.mxu1 %v2880_v36 }
 0x4e5   :  { %2909 = vmatprep.subr.bf16.mxu1 %v2880_v36 }
 0x4e7   :  { %2679 = vmatmul.mubr.msk.f32.gmra.mrb[24].mxu0 %vm5192_vm2, %v5190_v25 }
 0x4e8   :  { %2681 = vmatprep.mubr.msk.f32.mxu0 %vm5245_vm1, %v5190_v25 }
 0x4eb   :  { %2682 = vmatmul.mubr.msk.f32.gmra.mrb[26].mxu0 %vm5246_vm15, %v5190_v25 }
 0x4ec   :  { %2684 = vmatprep.mubr.msk.f32.mxu0 %vm5247_vm0, %v5190_v25  ;;  %2911 = vmatpush3.bf16.xpose.msra.mxu1 %v2880_v36 }
 0x4ef   :  { %2685 = vmatmul.mubr.msk.f32.gmra.mrb[28].mxu0 %vm5248_vm3, %v5190_v25 }
 0x4f0   :  { %2687 = vmatprep.mubr.msk.f32.mxu0 %vm5250_vm4, %v5190_v25 }
 0x4f3   :  { %2688 = vmatmul.mubr.msk.f32.gmra.mrb[30].mxu0 %vm5252_vm5, %v5190_v25  ;;  %2607 = vmatmul.mubr.msk.f32.vlgmr.msra.gmra.mrb[22].mxu1 %vm3371_vm7, %v5190_v25 }
 0x4f4   :  { %2690 = vmatprep.mubr.msk.f32.mxu0 %vm5254_vm6, %v5190_v25  ;;  %2609 = vmatprep.mubr.msk.f32.mxu1 %vm3380_vm8, %v5190_v25 }
 0x4f7   :  { %2691 = vmatmul.mubr.msk.f32.gmra.mrb[32].mxu0 %vm5256_vm14, %v5190_v25  ;;  %2610 = vmatmul.mubr.msk.f32.gmra.mrb[24].mxu1 %vm3395_vm9, %v5190_v25 }
 0x4f8   :  { %2781 = vmatprep.mubr.msk.f32.mxu0 %vm5258_vm13, %v5190_v25  ;;  %2612 = vmatprep.mubr.msk.f32.mxu1 %vm3404_vm10, %v5190_v25 }
 0x4fb   :  { %2613 = vmatmul.mubr.msk.f32.gmra.mrb[26].mxu1 %vm3419_vm11, %v5190_v25 }
 0x4fc   :  { %2615 = vmatprep.mubr.msk.f32.mxu1 %vm3428_vm12, %v5190_v25 }
 0x4ff   :  { %2616 = vmatmul.mubr.msk.f32.gmra.mrb[28].mxu1 %vm5192_vm2, %v5190_v25 }
 0x500   :  { %2618 = vmatprep.mubr.msk.f32.mxu1 %vm5245_vm1, %v5190_v25 }
 0x503   :  { %2619 = vmatmul.mubr.msk.f32.gmra.mrb[30].mxu1 %vm5246_vm15, %v5190_v25 }
 0x504   :  { %2621 = vmatprep.mubr.msk.f32.mxu1 %vm5247_vm0, %v5190_v25 }
 0x507   :  { %2622 = vmatmul.mubr.msk.f32.gmra.mrb[32].mxu1 %vm5248_vm3, %v5190_v25 }
 0x508   :  { %2624 = vmatprep.mubr.msk.f32.mxu1 %vm5250_vm4, %v5190_v25 }
 0x50b   :  { %2625 = vmatmul.mubr.msk.f32.gmra.mrb[34].mxu1 %vm5252_vm5, %v5190_v25 }
 0x50c   :  { %2627 = vmatprep.mubr.msk.f32.mxu1 %vm5254_vm6, %v5190_v25 }
 0x50f   :  { %2628 = vmatmul.mubr.msk.f32.gmra.mrb[36].mxu1 %vm5256_vm14, %v5190_v25 }
 0x510   :  { %2725 = vmatprep.mubr.msk.f32.mxu1 %vm5258_vm13, %v5190_v25 }
 0x5ae   :  { %v2671_v29 = vpop.f32.mrb[18].mxu0 }
 0x5af   :  { %v1363_v19 = vpop.f32.mrb[19].mxu0  ;;  %v4099_v3 = vadd.f32 %v2671_v29, %v5259_v7 }
 0x5b0   :  { %v4105_v49 = vadd.f32 %v1363_v19, %v5261_v11 }
 0x5b2   :  { %v2674_v50 = vpop.f32.mrb[20].mxu0 }
 0x5b3   :  { %v1373_v13 = vpop.f32.mrb[21].mxu0  ;;  %v4115_v43 = vadd.f32 %v2674_v50, %v5263_v20 }
 0x5b4   :  { %v4121_v53 = vadd.f32 %v1373_v13, %v5265_v5 }
 0x5b6   :  { %v2677_v59 = vpop.f32.mrb[22].mxu0 }
 0x5b7   :  { %v4102_v35 = vadd.f32 %v2677_v59, %v5260_v27  ;;  %v1383_v47 = vpop.f32.mrb[23].mxu0 }
 0x5b8   :  { %v4108_v37 = vadd.f32 %v1383_v47, %v5262_v16 }
 0x5b9   :  { %v1443_v1 = vmax.f32 %v4099_v3, %v4102_v35 }
 0x5ba   :  { %v1442_v17 = vmax.f32 %v4105_v49, %v4108_v37  ;;  %v2680_v36 = vpop.f32.mrb[24].mxu0 }
 0x5bb   :  { %v4118_v51 = vadd.f32 %v2680_v36, %v5264_v9  ;;  %v1393_v33 = vpop.f32.mrb[25].mxu0  ;;  %v5268_v36 = vld [vmem:[#allocation49_spill] sm:$0xff] }
 0x5bc   :  { %v4124_v29 = vadd.f32 %v1393_v33, %v5266_v52 }
 0x5bd   :  { %v1445_v19 = vmax.f32 %v4115_v43, %v4118_v51 }
 0x5be   :  { %v1444_v59 = vmax.f32 %v4121_v53, %v4124_v29  ;;  %v2683_v47 = vpop.f32.mrb[26].mxu0 }
 0x5bf   :  { %v4131_v50 = vadd.f32 %v2683_v47, %v5267_v14  ;;  %v1403_v30 = vpop.f32.mrb[27].mxu0 }
 0x5c0   :  { %v4134_v24 = vadd.f32 %v1403_v30, %v5268_v36 }
 0x5c1   :  { %v1447_v13 = vmax.f32 %v1443_v1, %v4131_v50  ;;  %v5272_v1 = vld [vmem:[#allocation53_spill] sm:$0xff] }
 0x5c2   :  { %v1446_v40 = vmax.f32 %v1442_v17, %v4134_v24  ;;  %v2686_v33 = vpop.f32.mrb[28].mxu0 }
 0x5c3   :  { %v4139_v12 = vadd.f32 %v2686_v33, %v5269_v46  ;;  %v1413_v10 = vpop.f32.mrb[29].mxu0 }
 0x5c4   :  { %v4142_v6 = vadd.f32 %v1413_v10, %v5270_v8 }
 0x5c5   :  { %v1449_v4 = vmax.f32 %v1445_v19, %v4139_v12 }
 0x5c6   :  { %v1448_v47 = vmax.f32 %v1444_v59, %v4142_v6  ;;  %v2689_v2 = vpop.f32.mrb[30].mxu0  ;;  %v2608_v17 = vpop.f32.mrb[22].mxu1 }
 0x5c7   :  { %v4147_v30 = vadd.f32 %v2689_v2, %v5271_v0  ;;  %v1423_v62 = vpop.f32.mrb[31].mxu0  ;;  %v941_v58 = vpop.f32.mrb[23].mxu1 }
 0x5c8   :  { %v4150_v60 = vadd.f32 %v1423_v62, %v5272_v1  ;;  %v4166_v34 = vadd.f32 %v941_v58, %v5261_v11 }
 0x5c9   :  { %v1451_v33 = vmax.f32 %v1447_v13, %v4147_v30  ;;  %v4163_v13 = vadd.f32 %v2608_v17, %v5259_v7 }
 0x5ca   :  { %v1450_v56 = vmax.f32 %v1446_v40, %v4150_v60  ;;  %v2692_v10 = vpop.f32.mrb[32].mxu0  ;;  %v2611_v2 = vpop.f32.mrb[24].mxu1 }
 0x5cb   :  { %v4155_v25 = vadd.f32 %v2692_v10, %v3628_v31  ;;  %v1433_v19 = vpop.f32.mrb[33].mxu0  ;;  %v951_v62 = vpop.f32.mrb[25].mxu1 }
 0x5cc   :  { %v1454_v59 = vmax.f32 %v1450_v56, %v1451_v33  ;;  %v4158_v26 = vadd.f32 %v1433_v19, %v5273_v48 }
 0x5cd   :  { %v1453_v42 = vmax.f32 %v1449_v4, %v4155_v25  ;;  %v4175_v4 = vadd.f32 %v2611_v2, %v5263_v20 }
 0x5ce   :  { %v1452_v38 = vmax.f32 %v1448_v47, %v4158_v26  ;;  %v2614_v10 = vpop.f32.mrb[26].mxu1 }
 0x5cf   :  { %v4169_v56 = vadd.f32 %v2614_v10, %v5260_v27  ;;  %v961_v33 = vpop.f32.mrb[27].mxu1 }
 0x5d0   :  { %v1455_v40 = vmax.f32 %v1452_v38, %v1453_v42  ;;  %v4172_v48 = vadd.f32 %v961_v33, %v5262_v16  ;;  %v4180_v42 = vadd.f32 %v951_v62, %v5265_v5 }
 0x5d1   :  { %v1021_v7 = vmax.f32 %v4163_v13, %v4169_v56 }
 0x5d2   :  { %v1456_v19 = vmax.f32 %v1454_v59, %v1455_v40  ;;  %v1020_v58 = vmax.f32 %v4166_v34, %v4172_v48  ;;  %v2617_v38 = vpop.f32.mrb[28].mxu1 }
 0x5d3   :  { %v4185_v27 = vadd.f32 %v2617_v38, %v5264_v9  ;;  %v971_v11 = vpop.f32.mrb[29].mxu1 }
 0x5d4   :  { %v1457_v47 = vrot.slane %v1456_v19, 4  ;;  %v4188_v17 = vadd.f32 %v971_v11, %v5266_v52 }
 0x5d5   :  { %v1023_v20 = vmax.f32 %v4175_v4, %v4185_v27 }
 0x5d6   :  { %v1458_v16 = vmax.f32 %v1456_v19, %v1457_v47  ;;  %v1022_v5 = vmax.f32 %v4180_v42, %v4188_v17  ;;  %v2620_v2 = vpop.f32.mrb[30].mxu1 }
 0x5d7   :  { %v4195_v62 = vadd.f32 %v2620_v2, %v5267_v14  ;;  %v981_v40 = vpop.f32.mrb[31].mxu1 }
 0x5d8   :  { %v1459_v59 = vrot.slane %v1458_v16, 2  ;;  %v4198_v10 = vadd.f32 %v981_v40, %v5268_v36 }
 0x5d9   :  { %v4201_v52 = vmax.f32 %v1021_v7, %v4195_v62 }
 0x5da   :  { %v1460_v9 = vmax.f32 %v1458_v16, %v1459_v59  ;;  %v4206_v19 = vmax.f32 %v1020_v58, %v4198_v10  ;;  %v2623_v47 = vpop.f32.mrb[32].mxu1  ;;  %v1518_v16 = vstv %s4203_s9 }
 0x5db   :  { %v4209_v38 = vadd.f32 %v2623_v47, %v5269_v46  ;;  %v991_v14 = vpop.f32.mrb[33].mxu1  ;;  %vm4268_vm6 = vcmp.eq.s32.totalorder %v1518_v16, 1 }
 0x5dc   :  { %v1461_v33 = vrot.slane %v1460_v9, 1  ;;  %v4217_v7 = vadd.f32 %v991_v14, %v5270_v8 }
 0x5dd   :  { %v4214_v36 = vmax.f32 %v1023_v20, %v4209_v38 }
 0x5de   :  { %v4211_v11 = vmax.f32 %v1460_v9, %v1461_v33  ;;  %v2626_v46 = vpop.f32.mrb[34].mxu1  ;;  %v5278_v9 = vmov 0 }
 0x5df   :  { %v1001_v8 = vpop.f32.mrb[35].mxu1  ;;  %v5279_v9 = vsel %vm4268_vm6, 4294967295, %v5278_v9 }
 0x5e0   :  { %vm1473_vm14 = vcmp.eq.f32.partialorder %v4142_v6, %v4211_v11  ;;  %vm1475_vm3 = vcmp.eq.f32.partialorder %v4150_v60, %v4211_v11  ;;  %vm5274_vm5 = vcmp.eq.f32.partialorder %v4105_v49, %v4211_v11  ;;  %vm5275_vm4 = vcmp.eq.f32.partialorder %v4099_v3, %v4211_v11  ;;  %5280 = vst [vmem:[#allocation23_spill] sm:$0xff] %v5279_v9 }
 0x5e1   :  { %v1479_v58 = vsel %vm5274_vm5, %v3681_v63, 128.0  ;;  %v1480_v20 = vsel %vm5275_vm4, %v3645_v21, 128.0  ;;  %vm5276_vm0 = vcmp.eq.f32.partialorder %v4121_v53, %v4211_v11  ;;  %vm5277_vm13 = vcmp.eq.f32.partialorder %v4115_v43, %v4211_v11 }
 0x5e2   :  { %v1481_v59 = vsel %vm5276_vm0, %v3648_v28, 128.0  ;;  %v1482_v2 = vsel %vm5277_vm13, %v3651_v45, 128.0  ;;  %v2629_v40 = vpop.f32.mrb[36].mxu1  ;;  %vm5281_vm5 = vcmp.eq.f32.partialorder %v4108_v37, %v4211_v11  ;;  %vm5282_vm4 = vcmp.eq.f32.partialorder %v4102_v35, %v4211_v11 }
 0x5e3   :  { %v1483_v3 = vsel %vm5281_vm5, %v3654_v15, 128.0  ;;  %v1484_v49 = vsel %vm5282_vm4, %v3657_v22, 128.0  ;;  %vm5283_vm0 = vcmp.eq.f32.partialorder %v4124_v29, %v4211_v11  ;;  %vm5284_vm13 = vcmp.eq.f32.partialorder %v4118_v51, %v4211_v11  ;;  %v1011_v33 = vpop.f32.mrb[37].mxu1 }
 0x5e4   :  { %v1485_v43 = vsel %vm5283_vm0, %v3660_v32, 128.0  ;;  %v1486_v53 = vsel %vm5284_vm13, %v3663_v44, 128.0  ;;  %vm5285_vm5 = vcmp.eq.f32.partialorder %v4134_v24, %v4211_v11  ;;  %vm5286_vm4 = vcmp.eq.f32.partialorder %v4131_v50, %v4211_v11 }
 0x5e5   :  { %v1487_v37 = vsel %vm5285_vm5, %v3666_v54, 128.0  ;;  %v1488_v35 = vsel %vm5286_vm4, %v3669_v55, 128.0  ;;  %v1489_v29 = vsel %vm1473_vm14, %v3672_v57, 128.0  ;;  %vm5287_vm0 = vcmp.eq.f32.partialorder %v4139_v12, %v4211_v11 }
 0x5e6   :  { %v1490_v51 = vsel %vm5287_vm0, %v3675_v18, 128.0  ;;  %v1491_v24 = vsel %vm1475_vm3, %v3678_v61, 128.0  ;;  %vm5288_vm13 = vcmp.eq.f32.partialorder %v4147_v30, %v4211_v11  ;;  %vm5289_vm5 = vcmp.eq.f32.partialorder %v4158_v26, %v4211_v11 }
 0x5e7   :  { %v1492_v50 = vsel %vm5288_vm13, %v3726_v23, 128.0  ;;  %v1493_v6 = vsel %vm5289_vm5, %v3729_v39, 128.0  ;;  %vm5290_vm14 = vcmp.eq.f32.partialorder %v4155_v25, %v4211_v11  ;;  %v1495_v47 = vmin.f32 %v1479_v58, %v1483_v3 }
 0x5e8   :  { %v1494_v12 = vsel %vm5290_vm14, %v3732_v41, 128.0  ;;  %v1496_v14 = vmin.f32 %v1480_v20, %v1484_v49  ;;  %v1497_v16 = vmin.f32 %v1481_v59, %v1485_v43  ;;  %v1498_v60 = vmin.f32 %v1482_v2, %v1486_v53  ;;  %v5292_v2 = vld [vmem:[#allocation60_spill] sm:$0xff]  ;;  %v5293_v43 = vld [vmem:[#allocation21_spill] sm:$0xff] }
 0x5e9   :  { %v1026_v61 = vmax.f32 %v1022_v5, %v4217_v7  ;;  %v4322_v18 = vadd.f32 %v2626_v46, %v5271_v0  ;;  %v4325_v30 = vadd.f32 %v1001_v8, %v5272_v1  ;;  %v4328_v26 = vadd.f32 %v2629_v40, %v3628_v31  ;;  %v5291_v5 = vld [vmem:[#allocation54_spill] sm:$0xff] }
 0x5ea   :  { %v1499_v39 = vmin.f32 %v1495_v47, %v1487_v37  ;;  %v1500_v23 = vmin.f32 %v1496_v14, %v1488_v35  ;;  %v1501_v57 = vmin.f32 %v1497_v16, %v1489_v29  ;;  %v1502_v25 = vmin.f32 %v1498_v60, %v1490_v51 }
 0x5eb   :  { %v1029_v58 = vmax.f32 %v4201_v52, %v4322_v18  ;;  %v1028_v20 = vmax.f32 %v4206_v19, %v4325_v30  ;;  %v1031_v0 = vmax.f32 %v4214_v36, %v4328_v26  ;;  %v4337_v46 = vadd.f32 %v1011_v33, %v5291_v5 }
 0x5ec   :  { %v1503_v1 = vmin.f32 %v1499_v39, %v1491_v24  ;;  %v1504_v8 = vmin.f32 %v1500_v23, %v1492_v50  ;;  %v1505_v31 = vmin.f32 %v1501_v57, %v1493_v6  ;;  %v1506_v59 = vmin.f32 %v1502_v25, %v1494_v12  ;;  %v5294_v23 = vld [vmem:[#allocation22_spill] sm:$0xff] }
 0x5ed   :  { %v1521_v40 = vrot.slane %v5292_v2, 7  ;;  %v1032_v3 = vmax.f32 %v1028_v20, %v1029_v58  ;;  %v1030_v49 = vmax.f32 %v1026_v61, %v4337_v46  ;;  %v1516_v52 = vadd.f32 %v4211_v11, %v5293_v43  ;;  %v4358_v58 = vld [vmem:[#allocation3 + $0x1] sm:$0x1] }
 0x5ee   :  { %v1507_v53 = vmin.f32 %v1503_v1, %v1504_v8  ;;  %v1508_v19 = vmin.f32 %v1505_v31, %v1506_v59  ;;  %v5295_v57 = vsub.s32 1, %v5294_v23  ;;  %5296 = vst [vmem:[#allocation40_spill] sm:$0xff] %v4358_v58  ;;  %v1096_v20 = vstv %s4355_s3 }
 0x5ef   :  { %v1033_v37 = vmax.f32 %v1030_v49, %v1031_v0  ;;  %v4345_v36 = vsel %vm4268_vm6, %v1516_v52, %v1521_v40  ;;  %v5305_v59 = vmov 0  ;;  %v5311_v40 = vld [vmem:[#allocation56_spill] sm:$0xff] }
 0x5f0   :  { %v1509_v39 = vmin.f32 %v1507_v53, %v1508_v19  ;;  %v1531_v33 = vrot.slane %v4345_v36, %v5295_v57 }
 0x5f1   :  { %v1034_v35 = vmax.f32 %v1032_v3, %v1033_v37  ;;  %v5312_v3 = vld [vmem:[#allocation57_spill] sm:$0xff] }
 0x5f2   :  { %v1510_v29 = vrot.slane %v1509_v39, 4  ;;  %v4350_v51 = vpack.c.bf16 %v1531_v33, %v1531_v33 }
 0x5f3   :  { %v1035_v61 = vrot.slane %v1034_v35, 4 }
 0x5f4   :  { %v1511_v24 = vmin.f32 %v1509_v39, %v1510_v29  ;;  %2948 = vmatprep.subr.bf16.mxu1 %v4350_v51 }
 0x5f5   :  { %v1036_v11 = vmax.f32 %v1034_v35, %v1035_v61  ;;  %2950 = vmatpush3.bf16.xpose.msra.mxu1 %v4350_v51 }
 0x5f6   :  { %v1512_v50 = vrot.slane %v1511_v24, 2  ;;  %2952 = vmatprep.subr.bf16.mxu1 %v4350_v51 }
 0x5f7   :  { %v1037_v6 = vrot.slane %v1036_v11, 2 }
 0x5f8   :  { %v1513_v12 = vmin.f32 %v1511_v24, %v1512_v50 }
 0x5f9   :  { %v1038_v47 = vmax.f32 %v1036_v11, %v1037_v6  ;;  %v4437_v11 = vld [vmem:[%s4946_s6] ss:$0 sm:$0xff]  ;;  %s2197_s6 = sld [smem:[#allocation5 + $0x82]] }
 0x5fa   :  { %v1514_v14 = vrot.slane %v1513_v12, 1  ;;  %5319 = vst [vmem:[#allocation42_spill] sm:$0xff] %v4437_v11 }
 0x5fb   :  { %v1039_v16 = vrot.slane %v1038_v47, 1 }
 0x5fc   :  { %v1515_v60 = vmin.f32 %v1513_v12, %v1514_v14 }
 0x5fd   :  { %v1040_v25 = vmax.f32 %v1038_v47, %v1039_v16  ;;  %2954 = vmatpush3.bf16.xpose.msra.mxu1 %v4350_v51 }
 0x5fe   :  { %2956 = vmatprep.subr.bf16.mxu1 %v4350_v51  ;;  %1524 = vst [vmem:[#allocation3 + $0x1] sm:$0x1] %v1515_v60 }
 0x5ff   :  { %vm1048_vm15 = vcmp.eq.f32.partialorder %v4185_v27, %v1040_v25  ;;  %vm1050_vm2 = vcmp.eq.f32.partialorder %v4195_v62, %v1040_v25  ;;  %vm1052_vm4 = vcmp.eq.f32.partialorder %v4209_v38, %v1040_v25  ;;  %vm1054_vm13 = vcmp.eq.f32.partialorder %v4322_v18, %v1040_v25  ;;  %v5314_v62 = vld [vmem:[#allocation58_spill] sm:$0xff]  ;;  %p1527_p5 = scmp.ne.s32.totalorder %s2197_s6, 0 }
 0x600   :  { %vm5297_vm6 = vcmp.eq.f32.partialorder %v4166_v34, %v1040_v25  ;;  %vm5298_vm1 = vcmp.eq.f32.partialorder %v4163_v13, %v1040_v25  ;;  %vm5299_vm3 = vcmp.eq.f32.partialorder %v4180_v42, %v1040_v25  ;;  %vm5300_vm0 = vcmp.eq.f32.partialorder %v4175_v4, %v1040_v25 }
 0x601   :  { %v1057_v0 = vsel %vm5297_vm6, %v3681_v63, 128.0  ;;  %v1058_v5 = vsel %vm5298_vm1, %v3645_v21, 128.0  ;;  %v1059_v1 = vsel %vm5299_vm3, %v3648_v28, 128.0  ;;  %v1060_v8 = vsel %vm5300_vm0, %v3651_v45, 128.0  ;;  %s4587_s13 = scalar_select %p1527_p5, 1, 0 }
 0x602   :  { %vm5301_vm5 = vcmp.eq.f32.partialorder %v4172_v48, %v1040_v25  ;;  %vm5302_vm14 = vcmp.eq.f32.partialorder %v4169_v56, %v1040_v25  ;;  %vm5303_vm6 = vcmp.eq.f32.partialorder %v4188_v17, %v1040_v25  ;;  %v1064_v42 = vsel %vm1048_vm15, %v3663_v44, 128.0  ;;  %v5308_v48 = vld [vmem:[#allocation61_spill] sm:$0xff]  ;;  %v5309_v17 = vld [vmem:[#allocation55_spill] sm:$0xff] }
 0x603   :  { %v1061_v31 = vsel %vm5301_vm5, %v3654_v15, 128.0  ;;  %v1062_v34 = vsel %vm5302_vm14, %v3657_v22, 128.0  ;;  %v1063_v13 = vsel %vm5303_vm6, %v3660_v32, 128.0  ;;  %vm5304_vm1 = vcmp.eq.f32.partialorder %v4198_v10, %v1040_v25 }
 0x604   :  { %v1065_v4 = vsel %vm5304_vm1, %v3666_v54, 128.0  ;;  %vm4405_vm3 = vcmp.eq.s32.totalorder %v1096_v20, 1  ;;  %v1099_v2 = vrot.slane %v5308_v48, 7  ;;  %v1066_v56 = vsel %vm1050_vm2, %v3669_v55, 128.0  ;;  %v5338_v48 = vld [vmem:[#allocation36_spill] sm:$0xff]  ;;  %v5382_v20 = vld [vmem:[#allocation37_spill] sm:$0xff] }
 0x605   :  { %v5306_v59 = vsel %vm4405_vm3, 4294967295, %v5305_v59  ;;  %2958 = vmatpush3.bf16.xpose.msra.mxu1 %v4350_v51  ;;  %vm5310_vm0 = vcmp.eq.f32.partialorder %v4217_v7, %v1040_v25  ;;  %v1068_v10 = vsel %vm1052_vm4, %v5311_v40, 128.0  ;;  %vm5313_vm15 = vcmp.eq.f32.partialorder %v4325_v30, %v1040_v25  ;;  %v5315_v7 = vld [vmem:[#allocation59_spill] sm:$0xff]  ;;  %v5318_v30 = vld [vmem:[#allocation24_spill] sm:$0xff] }
 0x606   :  { %5307 = vst [vmem:[#allocation41_spill] sm:$0xff] %v5306_v59  ;;  %v1067_v27 = vsel %vm5310_vm0, %v5309_v17, 128.0  ;;  %v1069_v49 = vsel %vm5313_vm15, %v5312_v3, 128.0  ;;  %2960 = vmatprep.subr.bf16.mxu1 %v4350_v51  ;;  %v1073_v52 = vmin.f32 %v1057_v0, %v1061_v31  ;;  %v1074_v53 = vmin.f32 %v1058_v5, %v1062_v34  ;;  %v5328_v31 = vld [vmem:[#allocation31_spill] sm:$0xff]  ;;  %v5330_v34 = vld [vmem:[#allocation32_spill] sm:$0xff]  ;;  %v5384_v0 = vld [vmem:[#allocation38_spill] sm:$0xff] }
 0x607   :  { %v1075_v19 = vmin.f32 %v1059_v1, %v1063_v13  ;;  %v1076_v37 = vmin.f32 %v1060_v8, %v1064_v42  ;;  %v1070_v39 = vsel %vm1054_vm13, %v5314_v62, 128.0  ;;  %vm5316_vm2 = vcmp.eq.f32.partialorder %v4337_v46, %v1040_v25  ;;  %v5326_v8 = vld [vmem:[#allocation29_spill] sm:$0xff]  ;;  %v5334_v42 = vld [vmem:[#allocation34_spill] sm:$0xff]  ;;  %v5386_v5 = vld [vmem:[#allocation39_spill] sm:$0xff] }
 0x608   :  { %v1071_v57 = vsel %vm5316_vm2, %v5315_v7, 128.0  ;;  %vm5317_vm4 = vcmp.eq.f32.partialorder %v4328_v26, %v1040_v25  ;;  %v1094_v33 = vadd.f32 %v1040_v25, %v5318_v30  ;;  %v1077_v35 = vmin.f32 %v1073_v52, %v1065_v4  ;;  %v5332_v13 = vld [vmem:[#allocation33_spill] sm:$0xff]  ;;  %v5336_v4 = vld [vmem:[#allocation35_spill] sm:$0xff] }
 0x609   :  { %v1072_v38 = vsel %vm5317_vm4, %v3732_v41, 128.0  ;;  %v1078_v29 = vmin.f32 %v1074_v53, %v1066_v56  ;;  %v1079_v61 = vmin.f32 %v1075_v19, %v1067_v27  ;;  %v1080_v24 = vmin.f32 %v1076_v37, %v1068_v10  ;;  %v5342_v56 = vld [vmem:[#allocation38_spill] sm:$0xff]  ;;  %v5344_v27 = vld [vmem:[#allocation39_spill] sm:$0xff] }
 0x60a   :  { %v1101_v18 = vsel %vm4405_vm3, %v1094_v33, %v1099_v2  ;;  %vm5077_vm13 = vcmask 1043459   ;;  %v1081_v46 = vmin.f32 %v1077_v35, %v1069_v49  ;;  %v5321_v25 = vmov 1.0   ;;  %v5340_v2 = vld [vmem:[#allocation37_spill] sm:$0xff]  ;;  %v4500_v35 = vld [vmem:[#allocation11 + $0x8] sm:$0xff] }
 0x60b   :  { %v1082_v50 = vmin.f32 %v1078_v29, %v1070_v39  ;;  %v1083_v6 = vmin.f32 %v1079_v61, %v1071_v57  ;;  %v1084_v26 = vmin.f32 %v1080_v24, %v1072_v38  ;;  %v4442_v12 = vadd.f32 %v4437_v11, %v1101_v18  ;;  %5346 = vst [vmem:[#allocation44_spill] sm:$0xff] %v4500_v35  ;;  %v4505_v61 = vld [vmem:[#allocation11 + $0x28] sm:$0xff] }
 0x60c   :  { %vm5329_vm5 = vnez %v5328_v31  ;;  %vm5331_vm14 = vnez %v5330_v34  ;;  %vm5333_vm6 = vnez %v5332_v13  ;;  %vm5335_vm1 = vnez %v5334_v42  ;;  %5347 = vst [vmem:[#allocation45_spill] sm:$0xff] %v4505_v61 }
 0x60d   :  { %5320 = vst [vmem:[#allocation43_spill] sm:$0xff] %v4442_v12  ;;  %v1085_v47 = vmin.f32 %v1081_v46, %v1082_v50  ;;  %v1086_v14 = vmin.f32 %v1083_v6, %v1084_v26  ;;  %2962 = vmatpush3.bf16.xpose.msra.mxu1 %v4350_v51  ;;  %v1111_v16 = vsel %vm5077_vm13, %v4442_v12, -inf  ;;  %vm5337_vm0 = vnez %v5336_v4  ;;  %v4510_v46 = vld [vmem:[#allocation11] sm:$0xff] }
 0x60e   :  { %2964 = vmatprep.subr.bf16.mxu1 %v4350_v51  ;;  %1112 = vmax.xlane.f32.xlu1 %v1111_v16  ;;  %vm5339_vm15 = vnez %v5338_v48  ;;  %vm5341_vm2 = vnez %v5340_v2  ;;  %vm5343_vm4 = vnez %v5342_v56  ;;  %vm5345_vm13 = vnez %v5344_v27  ;;  %5348 = vst [vmem:[#allocation46_spill] sm:$0xff] %v4510_v46  ;;  %v4515_v6 = vld [vmem:[#allocation11 + $0x20] sm:$0xff]  ;;  %v4584_v27 = vld [vmem:[#allocation11 + $0x70] sm:$0xff] }
 0x60f   :  { %v1087_v60 = vmin.f32 %v1085_v47, %v1086_v14  ;;  %5349 = vst [vmem:[#allocation47_spill] sm:$0xff] %v4515_v6 }
 0x611   :  { %v1088_v10 = vrot.slane %v1087_v60, 4 }
 0x613   :  { %v1089_v49 = vmin.f32 %v1087_v60, %v1088_v10  ;;  %v4524_v60 = vld [vmem:[#allocation11 + $0x18] sm:$0xff] }
 0x614   :  { %5350 = vst [vmem:[#allocation48_spill] sm:$0xff] %v4524_v60 }
 0x615   :  { %2966 = vmatpush3.bf16.xpose.msra.mxu1 %v4350_v51  ;;  %v1090_v52 = vrot.slane %v1089_v49, 2 }
 0x616   :  { %2968 = vmatprep.subr.bf16.mxu1 %v4350_v51 }
 0x617   :  { %v1091_v53 = vmin.f32 %v1089_v49, %v1090_v52  ;;  %v4529_v49 = vld [vmem:[#allocation11 + $0x38] sm:$0xff] }
 0x618   :  { %5351 = vst [vmem:[#allocation49_spill] sm:$0xff] %v4529_v49 }
 0x619   :  { %v1092_v19 = vrot.slane %v1091_v53, 1 }
 0x61b   :  { %v1093_v37 = vmin.f32 %v1091_v53, %v1092_v19  ;;  %v4534_v19 = vld [vmem:[#allocation11 + $0x10] sm:$0xff] }
 0x61c   :  { %5352 = vst [vmem:[#allocation50_spill] sm:$0xff] %v4534_v19 }
 0x61d   :  { %2970 = vmatpush3.bf16.xpose.msra.mxu1 %v4350_v51  ;;  %1102 = vst [vmem:[#allocation3 + $0x3] sm:$0x1] %v1093_v37 }
 0x61e   :  { %2972 = vmatprep.subr.bf16.mxu1 %v4350_v51 }
 0x625   :  { %2974 = vmatpush3.bf16.xpose.msra.mxu1 %v4350_v51 }
 0x626   :  { %2976 = vmatprep.subr.bf16.mxu1 %v4350_v51 }
 0x62d   :  { %2978 = vmatpush3.bf16.xpose.msra.mxu1 %v4350_v51  ;;  %v5327_v51 = vld [vmem:[#allocation30_spill] sm:$0xff] }
 0x634   :  { %2726 = vmatmul.mubr.msk.f32.vlgmr.msra.gmra.mrb[38].mxu1 %vm3371_vm7, %v5321_v25 }
 0x635   :  { %2728 = vmatprep.mubr.msk.f32.mxu1 %vm3380_vm8, %v5321_v25 }
 0x638   :  { %2729 = vmatmul.mubr.msk.f32.gmra.mrb[40].mxu1 %vm3395_vm9, %v5321_v25 }
 0x639   :  { %2731 = vmatprep.mubr.msk.f32.mxu1 %vm3404_vm10, %v5321_v25 }
 0x63c   :  { %2732 = vmatmul.mubr.msk.f32.gmra.mrb[42].mxu1 %vm3419_vm11, %v5321_v25 }
 0x63d   :  { %2734 = vmatprep.mubr.msk.f32.mxu1 %vm3428_vm12, %v5321_v25 }
 0x640   :  { %2735 = vmatmul.mubr.msk.f32.gmra.mrb[44].mxu1 %vm5329_vm5, %v5321_v25 }
 0x641   :  { %2737 = vmatprep.mubr.msk.f32.mxu1 %vm5331_vm14, %v5321_v25 }
 0x644   :  { %2738 = vmatmul.mubr.msk.f32.gmra.mrb[46].mxu1 %vm5333_vm6, %v5321_v25 }
 0x645   :  { %2740 = vmatprep.mubr.msk.f32.mxu1 %vm5335_vm1, %v5321_v25 }
 0x648   :  { %2741 = vmatmul.mubr.msk.f32.gmra.mrb[48].mxu1 %vm5337_vm0, %v5321_v25 }
 0x649   :  { %2743 = vmatprep.mubr.msk.f32.mxu1 %vm5339_vm15, %v5321_v25 }
 0x64c   :  { %2744 = vmatmul.mubr.msk.f32.gmra.mrb[50].mxu1 %vm5341_vm2, %v5321_v25 }
 0x64d   :  { %2746 = vmatprep.mubr.msk.f32.mxu1 %vm5343_vm4, %v5321_v25 }
 0x650   :  { %2747 = vmatmul.mubr.msk.f32.gmra.mrb[52].mxu1 %vm5345_vm13, %v5321_v25 }
 0x707   :  { %v2727_v39 = vpop.f32.mrb[38].mxu1 }
 0x708   :  { %v1598_v57 = vpop.f32.mrb[39].mxu1  ;;  %v4503_v29 = vadd.f32 %v4500_v35, %v2727_v39  ;;  %v4539_v39 = vld [vmem:[#allocation11 + $0x30] sm:$0xff] }
 0x709   :  { %v4513_v50 = vadd.f32 %v4510_v46, %v1598_v57  ;;  %5353 = vst [vmem:[#allocation51_spill] sm:$0xff] %v4539_v39  ;;  %v4577_v46 = vld [vmem:[#allocation11 + $0x60] sm:$0xff] }
 0x70a   :  { %5359 = vst [vmem:[#allocation22_spill] sm:$0xff] %v4577_v46 }
 0x70b   :  { %v2730_v38 = vpop.f32.mrb[40].mxu1 }
 0x70c   :  { %v1608_v30 = vpop.f32.mrb[41].mxu1  ;;  %v4527_v10 = vadd.f32 %v4524_v60, %v2730_v38  ;;  %v4565_v60 = vld [vmem:[#allocation11 + $0x50] sm:$0xff] }
 0x70d   :  { %v4537_v37 = vadd.f32 %v4534_v19, %v1608_v30  ;;  %v4553_v30 = vld [vmem:[#allocation11 + $0x40] sm:$0xff]  ;;  %5357 = vst [vmem:[#allocation60_spill] sm:$0xff] %v4565_v60 }
 0x70e   :  { %5355 = vst [vmem:[#allocation53_spill] sm:$0xff] %v4553_v30 }
 0x70f   :  { %v2733_v33 = vpop.f32.mrb[42].mxu1 }
 0x710   :  { %v4508_v24 = vadd.f32 %v4505_v61, %v2733_v33  ;;  %v1618_v18 = vpop.f32.mrb[43].mxu1 }
 0x711   :  { %v4518_v26 = vadd.f32 %v4515_v6, %v1618_v18 }
 0x712   :  { %v1678_v47 = vmax.f32 %v4503_v29, %v4508_v24 }
 0x713   :  { %v1677_v14 = vmax.f32 %v4513_v50, %v4518_v26  ;;  %v2736_v16 = vpop.f32.mrb[44].mxu1 }
 0x714   :  { %v4532_v52 = vadd.f32 %v4529_v49, %v2736_v16  ;;  %v1628_v53 = vpop.f32.mrb[45].mxu1  ;;  %v4548_v16 = vld [vmem:[#allocation11 + $0x48] sm:$0xff] }
 0x715   :  { %v4542_v57 = vadd.f32 %v4539_v39, %v1628_v53  ;;  %5354 = vst [vmem:[#allocation52_spill] sm:$0xff] %v4548_v16  ;;  %v4560_v39 = vld [vmem:[#allocation11 + $0x58] sm:$0xff] }
 0x716   :  { %v1680_v38 = vmax.f32 %v4527_v10, %v4532_v52  ;;  %5356 = vst [vmem:[#allocation54_spill] sm:$0xff] %v4560_v39 }
 0x717   :  { %v1679_v33 = vmax.f32 %v4537_v37, %v4542_v57  ;;  %v2739_v18 = vpop.f32.mrb[46].mxu1 }
 0x718   :  { %v4551_v9 = vadd.f32 %v4548_v16, %v2739_v18  ;;  %v1638_v58 = vpop.f32.mrb[47].mxu1 }
 0x719   :  { %v4556_v59 = vadd.f32 %v4553_v30, %v1638_v58 }
 0x71a   :  { %v1682_v53 = vmax.f32 %v1678_v47, %v4551_v9  ;;  %v4572_v47 = vld [vmem:[#allocation11 + $0x68] sm:$0xff] }
 0x71b   :  { %v1681_v11 = vmax.f32 %v1677_v14, %v4556_v59  ;;  %v2742_v12 = vpop.f32.mrb[48].mxu1  ;;  %5358 = vst [vmem:[#allocation21_spill] sm:$0xff] %v4572_v47 }
 0x71c   :  { %v4563_v19 = vadd.f32 %v4560_v39, %v2742_v12  ;;  %v1648_v49 = vpop.f32.mrb[49].mxu1 }
 0x71d   :  { %v4568_v18 = vadd.f32 %v4565_v60, %v1648_v49  ;;  %v4581_v60 = vld [vmem:[#allocation11 + $0x78] sm:$0xff] }
 0x71e   :  { %v1684_v16 = vmax.f32 %v1680_v38, %v4563_v19  ;;  %5360 = vst [vmem:[#allocation61_spill] sm:$0xff] %v4581_v60 }
 0x71f   :  { %v1683_v58 = vmax.f32 %v1679_v33, %v4568_v18  ;;  %v2745_v30 = vpop.f32.mrb[50].mxu1 }
 0x720   :  { %v4575_v14 = vadd.f32 %v4572_v47, %v2745_v30  ;;  %v1658_v6 = vpop.f32.mrb[51].mxu1 }
 0x721   :  { %v1659_v12 = vadd.f32 %v4577_v46, %v1658_v6 }
 0x722   :  { %v1686_v39 = vmax.f32 %v1682_v53, %v4575_v14 }
 0x723   :  { %v1685_v61 = vmax.f32 %v1681_v11, %v1659_v12  ;;  %v2748_v49 = vpop.f32.mrb[52].mxu1 }
 0x724   :  { %v1674_v38 = vadd.f32 %v4581_v60, %v2748_v49  ;;  %v1668_v33 = vpop.f32.mrb[53].mxu1 }
 0x725   :  { %v1689_v35 = vmax.f32 %v1685_v61, %v1686_v39  ;;  %v1669_v30 = vadd.f32 %v4584_v27, %v1668_v33  ;;  %v1753_v61 = vstv %s4587_s13  ;;  %v1756_v39 = vrot.slane %v4345_v36, 7 }
 0x726   :  { %v1688_v47 = vmax.f32 %v1684_v16, %v1674_v38 }
 0x727   :  { %v1687_v56 = vmax.f32 %v1683_v58, %v1669_v30 }
 0x729   :  { %v1690_v2 = vmax.f32 %v1687_v56, %v1688_v47 }
 0x72b   :  { %v1691_v48 = vmax.f32 %v1689_v35, %v1690_v2 }
 0x72d   :  { %v1692_v6 = vrot.slane %v1691_v48, 4 }
 0x72f   :  { %v1693_v46 = vmax.f32 %v1691_v48, %v1692_v6 }
 0x731   :  { %v1694_v11 = vrot.slane %v1693_v46, 2 }
 0x733   :  { %v1695_v53 = vmax.f32 %v1693_v46, %v1694_v11 }
 0x735   :  { %v1696_v49 = vrot.slane %v1695_v53, 1 }
 0x737   :  { %v1697_v60 = vmax.f32 %v1695_v53, %v1696_v49 }
 0x739   :  { %vm1702_vm15 = vcmp.eq.f32.partialorder %v4518_v26, %v1697_v60  ;;  %vm1704_vm1 = vcmp.eq.f32.partialorder %v4542_v57, %v1697_v60  ;;  %vm1706_vm14 = vcmp.eq.f32.partialorder %v4556_v59, %v1697_v60  ;;  %vm1708_vm3 = vcmp.eq.f32.partialorder %v4568_v18, %v1697_v60 }
 0x73a   :  { %vm1710_vm12 = vcmp.eq.f32.partialorder %v1659_v12, %v1697_v60  ;;  %vm1711_vm4 = vcmp.eq.f32.partialorder %v4575_v14, %v1697_v60  ;;  %vm1712_vm2 = vcmp.eq.f32.partialorder %v1669_v30, %v1697_v60  ;;  %vm5361_vm0 = vcmp.eq.f32.partialorder %v4513_v50, %v1697_v60 }
 0x73b   :  { %v1714_v48 = vsel %vm5361_vm0, %v3681_v63, 128.0  ;;  %vm5362_vm6 = vcmp.eq.f32.partialorder %v4503_v29, %v1697_v60  ;;  %vm5363_vm5 = vcmp.eq.f32.partialorder %v4537_v37, %v1697_v60  ;;  %vm5364_vm13 = vcmp.eq.f32.partialorder %v4527_v10, %v1697_v60 }
 0x73c   :  { %v1715_v2 = vsel %vm5362_vm6, %v3645_v21, 128.0  ;;  %v1716_v56 = vsel %vm5363_vm5, %v3648_v28, 128.0  ;;  %v1717_v35 = vsel %vm5364_vm13, %v3651_v45, 128.0  ;;  %v1718_v46 = vsel %vm1702_vm15, %v3654_v15, 128.0 }
 0x73d   :  { %vm5365_vm11 = vcmp.eq.f32.partialorder %v4508_v24, %v1697_v60  ;;  %v1720_v29 = vsel %vm1704_vm1, %v3660_v32, 128.0  ;;  %vm5366_vm6 = vcmp.eq.f32.partialorder %v4532_v52, %v1697_v60  ;;  %v1722_v10 = vsel %vm1706_vm14, %v3666_v54, 128.0 }
 0x73e   :  { %v1719_v50 = vsel %vm5365_vm11, %v3657_v22, 128.0  ;;  %v1721_v37 = vsel %vm5366_vm6, %v3663_v44, 128.0  ;;  %vm5367_vm13 = vcmp.eq.f32.partialorder %v4551_v9, %v1697_v60  ;;  %vm4634_vm5 = vcmp.eq.s32.totalorder %v1753_v61, 1 }
 0x73f   :  { %v1723_v26 = vsel %vm5367_vm13, %v3669_v55, 128.0  ;;  %v1730_v57 = vmin.f32 %v1714_v48, %v1718_v46  ;;  %v1731_v16 = vmin.f32 %v1715_v2, %v1719_v50  ;;  %v1732_v58 = vmin.f32 %v1716_v56, %v1720_v29 }
 0x740   :  { %v1733_v47 = vmin.f32 %v1717_v35, %v1721_v37  ;;  %v1724_v36 = vsel %vm1708_vm3, %v5309_v17, 128.0  ;;  %vm5370_vm11 = vcmp.eq.f32.partialorder %v4563_v19, %v1697_v60  ;;  %v1726_v9 = vsel %vm1710_vm12, %v5312_v3, 128.0 }
 0x741   :  { %v1725_v59 = vsel %vm5370_vm11, %v5311_v40, 128.0  ;;  %v1751_v52 = vadd.f32 %v1697_v60, %v5293_v43  ;;  %v1734_v33 = vmin.f32 %v1730_v57, %v1722_v10  ;;  %v1735_v6 = vmin.f32 %v1731_v16, %v1723_v26  ;;  %v4661_v57 = vld [vmem:[#allocation3 + $0x2] sm:$0x1] }
 0x742   :  { %v1736_v11 = vmin.f32 %v1732_v58, %v1724_v36  ;;  %v1737_v53 = vmin.f32 %v1733_v47, %v1725_v59  ;;  %v1727_v49 = vsel %vm1711_vm4, %v5314_v62, 128.0  ;;  %v1728_v18 = vsel %vm1712_vm2, %v5315_v7, 128.0  ;;  %v5390_v47 = vld [vmem:[#allocation46_spill] sm:$0xff]  ;;  %v5391_v59 = vld [vmem:[#allocation47_spill] sm:$0xff] }
 0x743   :  { %vm5371_vm3 = vcmp.eq.f32.partialorder %v1674_v38, %v1697_v60  ;;  %v4656_v12 = vsel %vm4634_vm5, %v1751_v52, %v1756_v39  ;;  %v1738_v61 = vmin.f32 %v1734_v33, %v1726_v9  ;;  %v1739_v48 = vmin.f32 %v1735_v6, %v1727_v49  ;;  %v5392_v6 = vld [vmem:[#allocation48_spill] sm:$0xff] }
 0x744   :  { %v1729_v19 = vsel %vm5371_vm3, %v3732_v41, 128.0  ;;  %v1740_v2 = vmin.f32 %v1736_v11, %v1728_v18  ;;  %v5372_v35 = vsub.s32 2, %v5294_v23  ;;  %vm5373_vm12 = vnez %v5326_v8  ;;  %v5380_v23 = vld [vmem:[#allocation36_spill] sm:$0xff] }
 0x745   :  { %v1741_v56 = vmin.f32 %v1737_v53, %v1729_v19  ;;  %v1742_v14 = vmin.f32 %v1738_v61, %v1739_v48  ;;  %vm5374_vm14 = vnez %v5327_v51  ;;  %vm5379_vm1 = vnez %v5336_v4  ;;  %v5389_v4 = vld [vmem:[#allocation45_spill] sm:$0xff]  ;;  %v5394_v19 = vld [vmem:[#allocation50_spill] sm:$0xff]  ;;  %v5395_v48 = vld [vmem:[#allocation51_spill] sm:$0xff] }
 0x746   :  { %v1766_v46 = vrot.slane %v4656_v12, %v5372_v35  ;;  %vm5381_vm0 = vnez %v5380_v23  ;;  %vm5383_vm15 = vnez %v5382_v20  ;;  %vm5385_vm2 = vnez %v5384_v0  ;;  %v5393_v53 = vld [vmem:[#allocation49_spill] sm:$0xff]  ;;  %v5399_v20 = vld [vmem:[#allocation60_spill] sm:$0xff] }
 0x747   :  { %v1743_v50 = vmin.f32 %v1740_v2, %v1741_v56  ;;  %vm5387_vm4 = vnez %v5386_v5 }
 0x748   :  { %v2979_v29 = vpack.c.bf16 %v1766_v46, %v1766_v46 }
 0x749   :  { %v1744_v30 = vmin.f32 %v1742_v14, %v1743_v50  ;;  %v5396_v14 = vld [vmem:[#allocation52_spill] sm:$0xff] }
 0x74a   :  { %2980 = vmatprep.subr.bf16.mxu0 %v2979_v29 }
 0x74b   :  { %v1745_v37 = vrot.slane %v1744_v30, 4  ;;  %2982 = vmatpush3.bf16.xpose.msra.mxu0 %v2979_v29 }
 0x74c   :  { %2984 = vmatprep.subr.bf16.mxu0 %v2979_v29 }
 0x74d   :  { %v1746_v60 = vmin.f32 %v1744_v30, %v1745_v37  ;;  %v5397_v30 = vld [vmem:[#allocation53_spill] sm:$0xff] }
 0x74f   :  { %v1747_v38 = vrot.slane %v1746_v60, 2 }
 0x751   :  { %v1748_v39 = vmin.f32 %v1746_v60, %v1747_v38 }
 0x753   :  { %v1749_v10 = vrot.slane %v1748_v39, 1  ;;  %2986 = vmatpush3.bf16.xpose.msra.mxu0 %v2979_v29 }
 0x754   :  { %2988 = vmatprep.subr.bf16.mxu0 %v2979_v29 }
 0x755   :  { %v1750_v26 = vmin.f32 %v1748_v39, %v1749_v10  ;;  %v5398_v10 = vld [vmem:[#allocation54_spill] sm:$0xff] }
 0x757   :  { %1759 = vst [vmem:[#allocation3 + $0x2] sm:$0x1] %v1750_v26 }
 0x75b   :  { %2990 = vmatpush3.bf16.xpose.msra.mxu0 %v2979_v29 }
 0x75c   :  { %2992 = vmatprep.subr.bf16.mxu0 %v2979_v29 }
 0x763   :  { %2994 = vmatpush3.bf16.xpose.msra.mxu0 %v2979_v29 }
 0x764   :  { %2996 = vmatprep.subr.bf16.mxu0 %v2979_v29 }
 0x76b   :  { %2998 = vmatpush3.bf16.xpose.msra.mxu0 %v2979_v29 }
 0x76c   :  { %3000 = vmatprep.subr.bf16.mxu0 %v2979_v29 }
 0x773   :  { %3002 = vmatpush3.bf16.xpose.msra.mxu0 %v2979_v29 }
 0x774   :  { %3004 = vmatprep.subr.bf16.mxu0 %v2979_v29 }
 0x77b   :  { %3006 = vmatpush3.bf16.xpose.msra.mxu0 %v2979_v29 }
 0x77c   :  { %3008 = vmatprep.subr.bf16.mxu0 %v2979_v29 }
 0x783   :  { %3010 = vmatpush3.bf16.xpose.msra.mxu0 %v2979_v29 }
 0x78a   :  { %2782 = vmatmul.mubr.msk.f32.vlgmr.msra.gmra.mrb[34].mxu0 %vm3371_vm7, %v5321_v25  ;;  %vm5375_vm7 = vnez %v5328_v31 }
 0x78b   :  { %2784 = vmatprep.mubr.msk.f32.mxu0 %vm3380_vm8, %v5321_v25  ;;  %vm5376_vm8 = vnez %v5330_v34 }
 0x78e   :  { %2785 = vmatmul.mubr.msk.f32.gmra.mrb[36].mxu0 %vm3395_vm9, %v5321_v25  ;;  %vm5377_vm9 = vnez %v5332_v13  ;;  %v5388_v13 = vld [vmem:[#allocation44_spill] sm:$0xff] }
 0x78f   :  { %2787 = vmatprep.mubr.msk.f32.mxu0 %vm3404_vm10, %v5321_v25  ;;  %vm5378_vm10 = vnez %v5334_v42 }
 0x792   :  { %2788 = vmatmul.mubr.msk.f32.gmra.mrb[38].mxu0 %vm5373_vm12, %v5321_v25 }
 0x793   :  { %2790 = vmatprep.mubr.msk.f32.mxu0 %vm5374_vm14, %v5321_v25 }
 0x796   :  { %2791 = vmatmul.mubr.msk.f32.gmra.mrb[40].mxu0 %vm5375_vm7, %v5321_v25 }
 0x797   :  { %2793 = vmatprep.mubr.msk.f32.mxu0 %vm5376_vm8, %v5321_v25 }
 0x79a   :  { %2794 = vmatmul.mubr.msk.f32.gmra.mrb[42].mxu0 %vm5377_vm9, %v5321_v25 }
 0x79b   :  { %2796 = vmatprep.mubr.msk.f32.mxu0 %vm5378_vm10, %v5321_v25 }
 0x79e   :  { %2797 = vmatmul.mubr.msk.f32.gmra.mrb[44].mxu0 %vm5379_vm1, %v5321_v25 }
 0x79f   :  { %2799 = vmatprep.mubr.msk.f32.mxu0 %vm5381_vm0, %v5321_v25 }
 0x7a2   :  { %2800 = vmatmul.mubr.msk.f32.gmra.mrb[46].mxu0 %vm5383_vm15, %v5321_v25 }
 0x7a3   :  { %2802 = vmatprep.mubr.msk.f32.mxu0 %vm5385_vm2, %v5321_v25 }
 0x7a6   :  { %2803 = vmatmul.mubr.msk.f32.gmra.mrb[48].mxu0 %vm5387_vm4, %v5321_v25 }
 0x85d   :  { %v2783_v1 = vpop.f32.mrb[34].mxu0 }
 0x85e   :  { %v1833_v8 = vpop.f32.mrb[35].mxu0  ;;  %v4709_v42 = vadd.f32 %v5388_v13, %v2783_v1  ;;  %v5401_v13 = vld [vmem:[#allocation22_spill] sm:$0xff] }
 0x85f   :  { %v4715_v36 = vadd.f32 %v5390_v47, %v1833_v8 }
 0x861   :  { %v2786_v51 = vpop.f32.mrb[36].mxu0 }
 0x862   :  { %v1843_v31 = vpop.f32.mrb[37].mxu0  ;;  %v4725_v11 = vadd.f32 %v5392_v6, %v2786_v51  ;;  %v5400_v51 = vld [vmem:[#allocation21_spill] sm:$0xff] }
 0x863   :  { %v1844_v61 = vadd.f32 %v5394_v19, %v1843_v31 }
 0x865   :  { %v2789_v34 = vpop.f32.mrb[38].mxu0 }
 0x866   :  { %v4712_v16 = vadd.f32 %v5389_v4, %v2789_v34  ;;  %v1853_v58 = vpop.f32.mrb[39].mxu0 }
 0x867   :  { %v4718_v9 = vadd.f32 %v5391_v59, %v1853_v58 }
 0x868   :  { %v1913_v25 = vmax.f32 %v4709_v42, %v4712_v16 }
 0x869   :  { %v1912_v52 = vmax.f32 %v4715_v36, %v4718_v9  ;;  %v2792_v33 = vpop.f32.mrb[40].mxu0 }
 0x86a   :  { %v4728_v49 = vadd.f32 %v5393_v53, %v2792_v33  ;;  %v1863_v18 = vpop.f32.mrb[41].mxu0 }
 0x86b   :  { %v4732_v2 = vadd.f32 %v5395_v48, %v1863_v18 }
 0x86c   :  { %v1915_v56 = vmax.f32 %v4725_v11, %v4728_v49 }
 0x86d   :  { %v1914_v35 = vmax.f32 %v1844_v61, %v4732_v2  ;;  %v2795_v46 = vpop.f32.mrb[42].mxu0 }
 0x86e   :  { %v4738_v50 = vadd.f32 %v5396_v14, %v2795_v46  ;;  %v1873_v29 = vpop.f32.mrb[43].mxu0 }
 0x86f   :  { %v1874_v37 = vadd.f32 %v5397_v30, %v1873_v29 }
 0x870   :  { %v1917_v60 = vmax.f32 %v1913_v25, %v4738_v50  ;;  %v5402_v25 = vld [vmem:[#allocation61_spill] sm:$0xff] }
 0x871   :  { %v1916_v38 = vmax.f32 %v1912_v52, %v1874_v37  ;;  %v2798_v39 = vpop.f32.mrb[44].mxu0 }
 0x872   :  { %v4743_v26 = vadd.f32 %v5398_v10, %v2798_v39  ;;  %v1883_v23 = vpop.f32.mrb[45].mxu0 }
 0x873   :  { %v1884_v0 = vadd.f32 %v5399_v20, %v1883_v23 }
 0x874   :  { %v1919_v5 = vmax.f32 %v1915_v56, %v4743_v26 }
 0x875   :  { %v1918_v1 = vmax.f32 %v1914_v35, %v1884_v0  ;;  %v2801_v8 = vpop.f32.mrb[46].mxu0 }
 0x876   :  { %v4748_v31 = vadd.f32 %v5400_v51, %v2801_v8  ;;  %v1893_v34 = vpop.f32.mrb[47].mxu0  ;;  %v5408_v51 = vld [vmem:[#allocation43_spill] sm:$0xff] }
 0x877   :  { %v1894_v4 = vadd.f32 %v5401_v13, %v1893_v34  ;;  %v5409_v34 = vld [vmem:[#allocation42_spill] sm:$0xff] }
 0x878   :  { %v1921_v58 = vmax.f32 %v1917_v60, %v4748_v31 }
 0x879   :  { %v1920_v47 = vmax.f32 %v1916_v38, %v1894_v4  ;;  %v2804_v59 = vpop.f32.mrb[48].mxu0  ;;  %v1988_v38 = vstv %s4757_s15 }
 0x87a   :  { %v4753_v52 = vadd.f32 %v5402_v25, %v2804_v59  ;;  %v1903_v33 = vpop.f32.mrb[49].mxu0 }
 0x87b   :  { %v1924_v6 = vmax.f32 %v1920_v47, %v1921_v58  ;;  %v1904_v53 = vadd.f32 %v4584_v27, %v1903_v33 }
 0x87c   :  { %v1923_v18 = vmax.f32 %v1919_v5, %v4753_v52 }
 0x87d   :  { %v1922_v19 = vmax.f32 %v1918_v1, %v1904_v53 }
 0x87f   :  { %v1925_v48 = vmax.f32 %v1922_v19, %v1923_v18 }
 0x881   :  { %v1926_v56 = vmax.f32 %v1924_v6, %v1925_v48 }
 0x883   :  { %v1927_v35 = vrot.slane %v1926_v56, 4 }
 0x885   :  { %v1928_v46 = vmax.f32 %v1926_v56, %v1927_v35 }
 0x887   :  { %v1929_v14 = vrot.slane %v1928_v46, 2 }
 0x889   :  { %v1930_v29 = vmax.f32 %v1928_v46, %v1929_v14 }
 0x88b   :  { %v1931_v30 = vrot.slane %v1930_v29, 1 }
 0x88d   :  { %v1932_v60 = vmax.f32 %v1930_v29, %v1931_v30 }
 0x88f   :  { %vm1933_vm6 = vcmp.eq.f32.partialorder %v4715_v36, %v1932_v60  ;;  %vm1934_vm13 = vcmp.eq.f32.partialorder %v4709_v42, %v1932_v60  ;;  %vm1935_vm11 = vcmp.eq.f32.partialorder %v1844_v61, %v1932_v60  ;;  %vm1937_vm12 = vcmp.eq.f32.partialorder %v4718_v9, %v1932_v60 }
 0x890   :  { %vm1938_vm14 = vcmp.eq.f32.partialorder %v4712_v16, %v1932_v60  ;;  %vm1939_vm7 = vcmp.eq.f32.partialorder %v4732_v2, %v1932_v60  ;;  %vm1940_vm8 = vcmp.eq.f32.partialorder %v4728_v49, %v1932_v60  ;;  %vm1941_vm9 = vcmp.eq.f32.partialorder %v1874_v37, %v1932_v60  ;;  %v1113_v2 = vpop.xlane.xlu1 %1112 }
 0x891   :  { %vm1942_vm10 = vcmp.eq.f32.partialorder %v4738_v50, %v1932_v60  ;;  %vm1943_vm1 = vcmp.eq.f32.partialorder %v1884_v0, %v1932_v60  ;;  %vm1945_vm15 = vcmp.eq.f32.partialorder %v1894_v4, %v1932_v60  ;;  %vm1946_vm2 = vcmp.eq.f32.partialorder %v4748_v31, %v1932_v60 }
 0x892   :  { %vm1947_vm4 = vcmp.eq.f32.partialorder %v1904_v53, %v1932_v60  ;;  %vm1948_vm3 = vcmp.eq.f32.partialorder %v4753_v52, %v1932_v60  ;;  %v1949_v27 = vsel %vm1933_vm6, %v3681_v63, 128.0  ;;  %v1950_v39 = vsel %vm1934_vm13, %v3645_v21, 128.0  ;;  %v1127_v53 = vld [vmem:[#allocation3 + $0x3] sm:$0x1] }
 0x893   :  { %v1951_v10 = vsel %vm1935_vm11, %v3648_v28, 128.0  ;;  %vm5403_vm0 = vcmp.eq.f32.partialorder %v4725_v11, %v1932_v60  ;;  %v1953_v20 = vsel %vm1937_vm12, %v3654_v15, 128.0  ;;  %v1954_v36 = vsel %vm1938_vm14, %v3657_v22, 128.0  ;;  %v5404_v28 = vld [vmem:[#allocation20_spill] sm:$0xff] }
 0x894   :  { %v1952_v23 = vsel %vm5403_vm0, %v3651_v45, 128.0  ;;  %v1955_v63 = vsel %vm1939_vm7, %v3660_v32, 128.0  ;;  %v1956_v21 = vsel %vm1940_vm8, %v3663_v44, 128.0  ;;  %v4795_v42 = vcvt.s32.f32 %v5404_v28 }
 0x895   :  { %v1957_v45 = vsel %vm1941_vm9, %v3666_v54, 128.0  ;;  %v1958_v15 = vsel %vm1942_vm10, %v3669_v55, 128.0  ;;  %vm4802_vm6 = vcmp.eq.s32.totalorder %v1988_v38, 1  ;;  %v1991_v32 = vrot.slane %v4656_v12, 7 }
 0x896   :  { %v1965_v16 = vmin.f32 %v1949_v27, %v1953_v20  ;;  %v1966_v9 = vmin.f32 %v1950_v39, %v1954_v36  ;;  %v1967_v11 = vmin.f32 %v1951_v10, %v1955_v63  ;;  %v1968_v44 = vmin.f32 %v1952_v23, %v1956_v21  ;;  %v5415_v10 = vld [vmem:[#allocation41_spill] sm:$0xff]  ;;  %v2028_v21 = vld [vmem:[#allocation3 + $0x2] sm:$0x1] }
 0x897   :  { %v1959_v49 = vsel %vm1943_vm1, %v5309_v17, 128.0  ;;  %vm5407_vm13 = vcmp.eq.f32.partialorder %v4743_v26, %v1932_v60  ;;  %v1961_v55 = vsel %vm1945_vm15, %v5312_v3, 128.0  ;;  %v1986_v61 = vadd.f32 %v1932_v60, %v5293_v43 }
 0x898   :  { %v1960_v54 = vsel %vm5407_vm13, %v5311_v40, 128.0  ;;  %v1969_v50 = vmin.f32 %v1965_v16, %v1957_v45  ;;  %v1970_v37 = vmin.f32 %v1966_v9, %v1958_v15  ;;  %v1971_v12 = vmin.f32 %v1967_v11, %v1959_v49 }
 0x899   :  { %v1972_v5 = vmin.f32 %v1968_v44, %v1960_v54  ;;  %v1962_v1 = vsel %vm1946_vm2, %v5314_v62, 128.0  ;;  %v1963_v17 = vsel %vm1947_vm4, %v5315_v7, 128.0  ;;  %v1964_v40 = vsel %vm1948_vm3, %v3732_v41, 128.0  ;;  %v5421_v54 = vld [vmem:[#allocation40_spill] sm:$0xff] }
 0x89a   :  { %v1993_v3 = vsel %vm4802_vm6, %v1986_v61, %v1991_v32  ;;  %v1973_v43 = vmin.f32 %v1969_v50, %v1961_v55  ;;  %v1974_v26 = vmin.f32 %v1970_v37, %v1962_v1  ;;  %v1975_v0 = vmin.f32 %v1971_v12, %v1963_v17  ;;  %v2045_v37 = vld [vmem:[#allocation3 + $0x1] sm:$0x1] }
 0x89b   :  { %v1976_v8 = vmin.f32 %v1972_v5, %v1964_v40  ;;  %vm1114_vm11 = vcmp.eq.f32.partialorder %v5408_v51, %v1113_v2  ;;  %v1995_v13 = vadd.f32 %v5409_v34, %v1993_v3  ;;  %vm5410_vm12 = vcmask 1043459  }
 0x89c   :  { %v1977_v31 = vmin.f32 %v1973_v43, %v1974_v26  ;;  %v1115_v58 = vsel %vm1114_vm11, %v4795_v42, 128.0  ;;  %vm5411_vm3 = vmmov %vm5410_vm12  ;;  %v1130_v35 = vrot.slane %v1127_v53, 5  ;;  %vm5416_vm0 = vnez %v5415_v10 }
 0x89d   :  { %v1978_v62 = vmin.f32 %v1975_v0, %v1976_v8  ;;  %v1996_v4 = vsel %vm5410_vm12, %v1995_v13, -inf  ;;  %v1116_v47 = vsel %vm5411_vm3, %v1115_v58, inf  ;;  %vm5412_vm7 = vmmov %vm5411_vm3  ;;  %v1148_v20 = vrot.slane %v4661_v57, 5 }
 0x89e   :  { %1997 = vmax.xlane.f32.xlu0 %v1996_v4  ;;  %vm5413_vm9 = vmmov %vm5411_vm3  ;;  %v2031_v32 = vrot.slane %v2028_v21, 5  ;;  %v1141_v16 = vstv %s1140_s17  ;;  %v1166_v55 = vrot.slane %v5421_v54, 5  ;;  %v1159_v50 = vstv %s1158_s20 }
 0x89f   :  { %v1979_v7 = vmin.f32 %v1977_v31, %v1978_v62  ;;  %vm5414_vm1 = vmmov %vm5411_vm3  ;;  %vm4856_vm11 = vcmp.eq.s32.totalorder %v1141_v16, 1  ;;  %v2048_v17 = vrot.slane %v2045_v37, 5  ;;  %v1177_v40 = vstv %s1176_s23 }
 0x8a0   :  { %vm5417_vm2 = vmmov %vm5414_vm1 }
 0x8a1   :  { %v1980_v41 = vrot.slane %v1979_v7, 4  ;;  %vm5418_vm13 = vmmov %vm5414_vm1 }
 0x8a2   :  { %1117 = vmin.xlane.f32.xlu0 %v1116_v47  ;;  %vm5422_vm3 = vmmov %vm5414_vm1 }
 0x8a3   :  { %v1981_v59 = vmin.f32 %v1979_v7, %v1980_v41 }
 0x8a5   :  { %v1982_v25 = vrot.slane %v1981_v59, 2 }
 0x8a7   :  { %v1983_v52 = vmin.f32 %v1981_v59, %v1982_v25 }
 0x8a9   :  { %v1984_v33 = vrot.slane %v1983_v52, 1 }
 0x8ab   :  { %v1985_v6 = vmin.f32 %v1983_v52, %v1984_v33 }
 0x8ad   :  { %1994 = vst [vmem:[#allocation3 + $0x3] sm:$0x1] %v1985_v6 }
 0x8b4   :  { %v2011_v29 = vld [vmem:[#allocation3 + $0x3] sm:$0x1] }
 0x8b5   :  { %v2014_v60 = vrot.slane %v2011_v29, 5 }
 0x92b   :  { %v1998_v18 = vpop.xlane.xlu0 %1997 }
 0x92c   :  { %vm1999_vm14 = vcmp.eq.f32.partialorder %v1995_v13, %v1998_v18 }
 0x92d   :  { %v2000_v19 = vsel %vm1999_vm14, %v4795_v42, 128.0  ;;  %vm4865_vm14 = vcmp.eq.s32.totalorder %v1159_v50, 1 }
 0x92e   :  { %v2001_v48 = vsel %vm5412_vm7, %v2000_v19, inf  ;;  %vm1121_vm7 = vcmp.eq.s32.totalorder %v5404_v28, 3 }
 0x92f   :  { %2002 = vmin.xlane.f32.xlu1 %v2001_v48  ;;  %v4832_v56 = vpop.xlane.xlu0 %1117 }
 0x930   :  { %vm1128_vm8 = vcmp.eq.f32.partialorder %v4795_v42, %v4832_v56  ;;  %v1125_v3 = vsel %vm5416_vm0, %v4832_v56, 0.0 }
 0x931   :  { %v1132_v46 = vsel %vm1128_vm8, %v1130_v35, 0.0  ;;  %v1126_v51 = vsel %vm1121_vm7, %v1125_v3, 0.0 }
 0x932   :  { %v1133_v14 = vsel %vm5413_vm9, %v1132_v46, 0.0  ;;  %vm1139_vm9 = vcmp.eq.s32.totalorder %v5404_v28, 2 }
 0x933   :  { %1134 = vadd.xlane.f32.xlu0 %v1133_v14 }
 0x9bc   :  { %v4837_v30 = vpop.xlane.xlu1 %2002 }
 0x9bd   :  { %vm2012_vm10 = vcmp.eq.f32.partialorder %v4795_v42, %v4837_v30 }
 0x9be   :  { %v2016_v38 = vsel %vm2012_vm10, %v2014_v60, 0.0  ;;  %vm1157_vm10 = vcmp.eq.s32.totalorder %v5404_v28, 1 }
 0x9bf   :  { %v2017_v27 = vsel %vm5414_vm1, %v2016_v38, 0.0 }
 0x9c0   :  { %2018 = vadd.xlane.f32.xlu1 %v2017_v27  ;;  %v1135_v39 = vpop.xlane.xlu0 %1134 }
 0x9c1   :  { %v1136_v23 = vsel %vm5416_vm0, %v1135_v39, %v4832_v56  ;;  %vm1175_vm0 = vcmp.eq.s32.totalorder %v5404_v28, 0 }
 0x9c2   :  { %vm1146_vm15 = vcmp.eq.f32.partialorder %v4795_v42, %v1136_v23  ;;  %v1143_v43 = vsel %vm4856_vm11, %v1136_v23, 0.0 }
 0x9c3   :  { %v1150_v36 = vsel %vm1146_vm15, %v1148_v20, 0.0  ;;  %vm1178_vm15 = vcmp.eq.s32.totalorder %v1177_v40, 1  ;;  %v1144_v34 = vsel %vm1139_vm9, %v1143_v43, %v1126_v51 }
 0x9c4   :  { %v1151_v63 = vsel %vm5417_vm2, %v1150_v36, 0.0  ;;  %vm1182_vm2 = vcmask 27651  }
 0x9c5   :  { %1152 = vadd.xlane.f32.xlu0 %v1151_v63 }
 0xa4d   :  { %v2019_v45 = vpop.xlane.xlu1 %2018 }
 0xa4e   :  { %v4851_v15 = vsel %vm4802_vm6, %v2019_v45, %v4837_v30 }
 0xa4f   :  { %vm2029_vm4 = vcmp.eq.f32.partialorder %v4795_v42, %v4851_v15 }
 0xa50   :  { %v2033_v57 = vsel %vm2029_vm4, %v2031_v32, 0.0 }
 0xa51   :  { %v2034_v9 = vsel %vm5418_vm13, %v2033_v57, 0.0 }
 0xa52   :  { %2035 = vadd.xlane.f32.xlu1 %v2034_v9  ;;  %v1153_v44 = vpop.xlane.xlu0 %1152 }
 0xa53   :  { %v1154_v49 = vsel %vm4856_vm11, %v1153_v44, %v1136_v23 }
 0xa54   :  { %vm1164_vm12 = vcmp.eq.f32.partialorder %v4795_v42, %v1154_v49  ;;  %v1161_v0 = vsel %vm4865_vm14, %v1154_v49, 0.0 }
 0xa55   :  { %v1168_v61 = vsel %vm1164_vm12, %v1166_v55, 0.0  ;;  %v1162_v31 = vsel %vm1157_vm10, %v1161_v0, %v1144_v34 }
 0xa56   :  { %v1169_v2 = vsel %vm5422_vm3, %v1168_v61, 0.0 }
 0xa57   :  { %1170 = vadd.xlane.f32.xlu0 %v1169_v2 }
 0xadf   :  { %v2036_v12 = vpop.xlane.xlu1 %2035 }
 0xae0   :  { %v2037_v1 = vsel %vm4634_vm5, %v2036_v12, %v4851_v15 }
 0xae1   :  { %vm2046_vm8 = vcmp.eq.f32.partialorder %v4795_v42, %v2037_v1 }
 0xae2   :  { %v2050_v26 = vsel %vm2046_vm8, %v2048_v17, 0.0 }
 0xae3   :  { %v2051_v8 = vsel %vm5414_vm1, %v2050_v26, 0.0 }
 0xae4   :  { %2052 = vadd.xlane.f32.xlu1 %v2051_v8  ;;  %v1171_v42 = vpop.xlane.xlu0 %1170 }
 0xae5   :  { %v1172_v13 = vsel %vm4865_vm14, %v1171_v42, %v1154_v49 }
 0xae6   :  { %v1179_v62 = vsel %vm1178_vm15, %v1172_v13, 0.0 }
 0xae7   :  { %v1180_v4 = vsel %vm1175_vm0, %v1179_v62, %v1162_v31 }
 0xae8   :  { %v3011_v7 = vtrunc.f32 %v1180_v4 }
 0xaea   :  { %v3012_v58 = vcvt.f32.s32 %v3011_v7 }
 0xaec   :  { %1183 = vst.msk [vmem:[#allocation12 - $0x3] sm:$0x8] %vm1182_vm2, %v3012_v58 }
 0xaed   :  { %3146 = shalt.err (!%p3143_p0)
}
 0xaee   :  { %s3147_s21 = scalar_lea.hbm %s4948_s8, 128 }
 0xaef   :  { %p3148_p1 = scmp.ne.s32.totalorder %s4948_s8, %s3147_s21  ;;  %p3151_p2 = scmp.lt.u32.totalorder %s3147_s21, %s4948_s8 }
 0xaf1   :  { %p3153_p3 = pnand %p3151_p2, %p3148_p1 }
 0xaf3   :  { %3156 = shalt.err (!%p3153_p3)
}
 0xaf4   :  { %s3203_s28 = smov 64   ;;  %s3204_s29 = smov 4   ;;  %v2009_v47 = vsel %vm4802_vm6, %v4837_v30, 0.0  ;;  %v2026_v59 = vsel %vm4634_vm5, %v4851_v15, 0.0  ;;  %v5425_v25 = vld [vmem:[#allocation23_spill] sm:$0xff] }
 0xaf5   :  { %2088 = dma.vmem_to_hbm [thread:$0]  %s2083_s12, 128, %s4948_s8, [#allocation14], %s3203_s28, %s3203_s28, %s3204_s29   ;;  %vm5426_vm4 = vnez %v5425_v25  ;;  %v2010_v33 = vsel %vm1121_vm7, %v2009_v47, 0.0 }
 0xaf6   :  { %s2234_s10 = sld [smem:[#allocation5 + $0x80]]  ;;  %v2043_v52 = vsel %vm5426_vm4, %v2037_v1, 0.0  ;;  %v2027_v53 = vsel %vm1139_vm9, %v2026_v59, %v2010_v33  ;;  %s3205_s8 = smov [#allocation12]  }
 0xaf7   :  { %v2044_v22 = vsel %vm1157_vm10, %v2043_v52, %v2027_v53  ;;  %s2070_s11 = sshll.u32 %s3205_s8, 4  ;;  %s2071_s11 = int_to_ptr.vmem [resolvable:$true] %s2070_s11 }
 0xaf8   :  { %s3157_s0 = scalar_lea.vmem %s2071_s11, 32  ;;  %p3162_p6 = scmp.lt.s32.totalorder %s2071_s11, %s2071_s11 }
 0xaf9   :  { %p3158_p5 = scmp.ne.s32.totalorder %s2071_s11, %s3157_s0  ;;  %p3163_p7 = scmp.lt.s32.totalorder %s3157_s0, %s3157_s0 }
 0xafb   :  { %p3164_p8 = por %p3163_p7, %p3162_p6 }
 0xafc   :  { %p2056_p4 = scmp.ne.s32.totalorder %s2234_s10, 0 }
 0xafd   :  { %p3165_p9 = pnand %p3164_p8, %p3158_p5 }
 0xafe   :  { %s2057_s3 = scalar_select %p2056_p4, 1, 0 }
 0xb00   :  { %v2058_v41 = vstv %s2057_s3 }
 0xb01   :  { %vm2059_vm13 = vcmp.eq.s32.totalorder %v2058_v41, 1 }
 0xb71   :  { %v2053_v6 = vpop.xlane.xlu1 %2052 }
 0xb72   :  { %v2054_v18 = vsel %vm5426_vm4, %v2053_v6, %v2037_v1 }
 0xb73   :  { %v2060_v19 = vsel %vm2059_vm13, %v2054_v18, 0.0 }
 0xb74   :  { %v2061_v24 = vsel %vm1175_vm0, %v2060_v19, %v2044_v22 }
 0xb75   :  { %v3013_v48 = vtrunc.f32 %v2061_v24 }
 0xb77   :  { %v3014_v56 = vcvt.f32.s32 %v3013_v48 }
 0xb79   :  { %2064 = vst.msk [vmem:[#allocation12 - $0x2] sm:$0x8] %vm1182_vm2, %v3014_v56 }
 0xb7a   :  { %3168 = shalt.err (!%p3165_p9)
}
 0xb7b   :  { %s3169_s14 = scalar_lea.hbm %s4947_s7, 32 }
 0xb7c   :  { %p3170_p10 = scmp.ne.s32.totalorder %s4947_s7, %s3169_s14  ;;  %p3173_p11 = scmp.lt.u32.totalorder %s3169_s14, %s4947_s7 }
 0xb7e   :  { %p3175_p12 = pnand %p3173_p11, %p3170_p10 }
 0xb80   :  { %3178 = shalt.err (!%p3175_p12)
}
 0xb81   :  { %s3206_s19 = smov 16  }
 0xb82   :  { %2076 = dma.vmem_to_hbm [thread:$0]  %s2071_s11, 32, %s4947_s7, [#allocation8], %s3206_s19, %s3206_s19, %s3197_s26  }
 0xb83   :  { %3185 = dma.done.wait [#allocation8], 32  }
 0xb84   :  { %3186 = vsyncadd [#allocation8], 4294967264 }
 0xb85   :  { %3187 = dma.done.wait [#allocation14], 128  }
 0xb86   :  { %3188 = vsyncadd [#allocation14], 4294967168 }
 0xb87   :  { %2095 = vsyncpa [#allocation7], 1 }
 0xb88   :  { %2096 = vsyncpa [#allocation10], 1 }
 0xb89   :  { %2097 = vsyncpa [#allocation8], 1 }
 0xb8a   :  { %2098 = vsyncpa [#allocation14], 1 }

</bundles_post_ra>
